<compile_context>
chip_gen: v5e
topology: v5e:2x2
jax: 0.10.0
libtpu: 0.0.40
codegen_flags: <defaults>
</compile_context>

<pallas_src>
import functools

import numpy as np
import jax
import jax.numpy as jnp
from jax.experimental import pallas as pl
from jax.experimental.pallas import tpu as pltpu

NUM_CLASSES = 20            # TALHead(20)
BRANCH_NUM = 2              # len(self.backbone)
HIDDEN = 32                 # FPN channel width
NUM_LEVELS = 3              # FPN levels (strides 1, 2, 4 relative to input)
OUT_CH = 5 + NUM_CLASSES    # 4 reg + 1 obj + NUM_CLASSES cls = 25
OUT_PAD = 32                # padded head width (25 live lanes + 7 pad lanes)


def _full_spec(shape):
    """BlockSpec covering the whole array (single invocation, no grid)."""
    n = len(shape)
    return pl.BlockSpec(shape, lambda *_: (0,) * n)


# --------------------------------------------------------------------------- router kernel

def _router_kernel(x_ref, w_ref, b_ref, o_ref):
    """Fused speed_detector: GAP over H*W (lane reduction) + linear -> (B, branch_num)."""
    pooled = jnp.mean(x_ref[...], axis=-1)                                   # (B, C)
    o_ref[...] = (jnp.dot(pooled, w_ref[...],
                          preferred_element_type=jnp.float32) + b_ref[...])


def compute_speed_score(x_nchw, sd_w, sd_b):
    """Router runs directly on NCHW (B, C, H*W): lane-dense GAP, no transpose dependency."""
    B, C, H, W = x_nchw.shape
    x3 = x_nchw.reshape(B, C, H * W)
    return pl.pallas_call(
        _router_kernel,
        out_shape=jax.ShapeDtypeStruct((B, BRANCH_NUM), jnp.float32),
        in_specs=[_full_spec(x3.shape),
                  _full_spec(sd_w.shape),
                  _full_spec(sd_b.shape)],
        out_specs=_full_spec((B, BRANCH_NUM)),
    )(x3, sd_w, sd_b)


# --------------------------------------------------------------------------- fused branch kernel

def _fused_branch_kernel(x_ref, stem_w_ref, stem_b_ref, lat_w_ref, lat_b_ref,
                         head_w_ref, head_b_ref, pool1_ref, pool2_ref, o_ref,
                         *, rows, offs):
    """backbone[N] + head[N] for ONE batch element; activations stay in VMEM across levels."""
    # Input arrives f32; cast to bf16 in VMEM (free VPU filler, no wrapper cast pass).
    x = x_ref[0].astype(jnp.bfloat16)                                        # (H*W, C)
    f = jnp.dot(x, stem_w_ref[...],
                preferred_element_type=jnp.float32) + stem_b_ref[...]
    f = f * jax.nn.sigmoid(f)                                                # SiLU (f32)

    pool_refs = (None, pool1_ref, pool2_ref)
    for lvl in range(NUM_LEVELS):
        if lvl > 0:
            # 2x2 average-pool as a per-sample pooling matmul (MXU, VMEM-resident operand).
            f = jnp.dot(pool_refs[lvl][...], f.astype(jnp.bfloat16),
                        preferred_element_type=jnp.float32)
        # lateral (FPN) conv + SiLU
        g = jnp.dot(f.astype(jnp.bfloat16), lat_w_ref[lvl],
                    preferred_element_type=jnp.float32) + lat_b_ref[lvl]
        f = g * jax.nn.sigmoid(g)
        # head conv -> 32 padded channels (4 reg, 1 obj, 20 cls, 7 pad lanes)
        p = jnp.dot(f.astype(jnp.bfloat16), head_w_ref[lvl],
                    preferred_element_type=jnp.float32) + head_b_ref[lvl]
        # eval-time sigmoid on obj+cls lanes (>= 4); reg lanes pass through unchanged.
        # (pad lanes end up at sigmoid(0)=0.5 and are sliced off by the wrapper)
        lane = jax.lax.broadcasted_iota(jnp.int32, p.shape, 1)
        p = jnp.where(lane >= 4, jax.nn.sigmoid(p), p)
        # static row window of this level inside the per-batch output block
        o_ref[0, offs[lvl]:offs[lvl] + rows[lvl], :] = p.astype(o_ref.dtype)


def branch_forward(bp, pools, x_nhwc):
    """One fused pallas_call (grid over batch) for backbone[N] + head[N]."""
    B, H, W, C = x_nhwc.shape
    rows = (H * W, (H // 2) * (W // 2), (H // 4) * (W // 4))
    offs = (0, rows[0], rows[0] + rows[1])
    total = sum(rows)
    pool1, pool2 = pools

    x3 = x_nhwc.reshape(B, H * W, C)            # f32; bf16 cast happens inside the kernel
    kernel = functools.partial(_fused_branch_kernel, rows=rows, offs=offs)

    const2 = lambda b: (0, 0)                   # weights stay VMEM-resident across grid steps
    const3 = lambda b: (0, 0, 0)

    out = pl.pallas_call(
        kernel,
        out_shape=jax.ShapeDtypeStruct((B, total, OUT_PAD), jnp.bfloat16),
        grid=(B,),
        in_specs=[
            pl.BlockSpec((1, H * W, C), lambda b: (b, 0, 0)),
            pl.BlockSpec(bp["stem_w"].shape, const2),
            pl.BlockSpec(bp["stem_b"].shape, const2),
            pl.BlockSpec(bp["lat_w"].shape, const3),
            pl.BlockSpec(bp["lat_b"].shape, const3),
            pl.BlockSpec(bp["head_w"].shape, const3),
            pl.BlockSpec(bp["head_b"].shape, const3),
            pl.BlockSpec(pool1.shape, const2),
            pl.BlockSpec(pool2.shape, const2),
        ],
        out_specs=pl.BlockSpec((1, total, OUT_PAD), lambda b: (b, 0, 0)),
        compiler_params=pltpu.CompilerParams(
            dimension_semantics=("parallel",),           # shards batch across TCs on v7x
            vmem_limit_bytes=32 * 1024 * 1024),          # per-block footprint << 1 MiB; fits v7x
    )(x3, bp["stem_w"], bp["stem_b"], bp["lat_w"], bp["lat_b"],
      bp["head_w"], bp["head_b"], pool1, pool2)

    # drop the 7 pad lanes -> (B, sum(HW), 25); tiny slab, negligible re-read
    return out[..., :OUT_CH].astype(jnp.float32)


# --------------------------------------------------------------------------- param prep (init time)

def _build_pool_matrix(H, W):
    """Per-sample 2x2 average-pool operator: (Ho*Wo, H*W) over one batch element."""
    Ho, Wo = H // 2, W // 2
    P = np.zeros((Ho * Wo, H * W), dtype=np.float32)
    r = np.arange(Ho * Wo)
    i, j = r // Wo, r % Wo
    for di in range(2):
        for dj in range(2):
            P[r, (2 * i + di) * W + (2 * j + dj)] = 0.25
    return jnp.asarray(P, dtype=jnp.bfloat16)


def _prepare_branch(bp):
    """Stack per-level weights, zero-pad head 25->32, cast matmul operands to bf16."""
    pad = OUT_PAD - OUT_CH
    return {
        "stem_w": bp["stem_w"].astype(jnp.bfloat16),                             # (C, HIDDEN)
        "stem_b": bp["stem_b"].reshape(1, HIDDEN).astype(jnp.float32),
        "lat_w": jnp.stack(bp["lat_w"]).astype(jnp.bfloat16),                    # (L, HIDDEN, HIDDEN)
        "lat_b": jnp.stack(bp["lat_b"]).reshape(NUM_LEVELS, 1, HIDDEN).astype(jnp.float32),
        "head_w": jnp.pad(jnp.stack(bp["head_w"]),
                          ((0, 0), (0, 0), (0, pad))).astype(jnp.bfloat16),      # (L, HIDDEN, 32)
        "head_b": jnp.pad(jnp.stack(bp["head_b"]),
                          ((0, 0), (0, pad))).reshape(NUM_LEVELS, 1, OUT_PAD).astype(jnp.float32),
    }


def prepare_params(params, H, W):
    """Hoisted out of the forward pass: run once at init, not at trace time."""
    return {
        "sd_w": params["sd_w"].astype(jnp.float32),
        "sd_b": params["sd_b"].reshape(1, BRANCH_NUM).astype(jnp.float32),
        "branches": [_prepare_branch(bp) for bp in params["branches"]],
        "pools": (_build_pool_matrix(H, W), _build_pool_matrix(H // 2, W // 2)),
    }


# --------------------------------------------------------------------------- forward

def yolox_forward(prepared, x_nchw):
    """Eval forward: mode='off_pipe', router_mode='max', branch=None."""
    # --- compute_speed_score: GAP + linear on the raw NCHW layout (one tiny kernel)
    speed_score = compute_speed_score(x_nchw, prepared["sd_w"], prepared["sd_b"])
    branch_ids = jnp.argmax(speed_score, axis=1)                     # (B,)
    N = jnp.max(branch_ids).astype(jnp.int32)                        # router_mode='max'

    # --- forward_process on the selected branch: backbone[N] -> head[N] (one fused kernel)
    x_nhwc = jnp.transpose(x_nchw, (0, 2, 3, 1)).astype(jnp.float32)  # NCHW -> NHWC (f32)
    branch_fns = [functools.partial(branch_forward, bp, prepared["pools"])
                  for bp in prepared["branches"]]
    return jax.lax.switch(N, branch_fns, x_nhwc)


# --------------------------------------------------------------------------- params

def init_params(key, cin):
    keys = iter(jax.random.split(key, 256))
    nxt = lambda: next(keys)
    params = {
        "sd_w": 0.1 * jax.random.normal(nxt(), (cin, BRANCH_NUM), jnp.float32),
        "sd_b": 0.1 * jax.random.normal(nxt(), (BRANCH_NUM,), jnp.float32),
        "branches": [],
    }
    for _ in range(BRANCH_NUM):
        bp = {
            "stem_w": 0.1 * jax.random.normal(nxt(), (cin, HIDDEN), jnp.float32),
            "stem_b": 0.01 * jax.random.normal(nxt(), (HIDDEN,), jnp.float32),
            "lat_w": [], "lat_b": [], "head_w": [], "head_b": [],
        }
        for _ in range(NUM_LEVELS):
            bp["lat_w"].append(0.1 * jax.random.normal(nxt(), (HIDDEN, HIDDEN), jnp.float32))
            bp["lat_b"].append(0.01 * jax.random.normal(nxt(), (HIDDEN,), jnp.float32))
            bp["head_w"].append(0.1 * jax.random.normal(nxt(), (HIDDEN, OUT_CH), jnp.float32))
            bp["head_b"].append(0.01 * jax.random.normal(nxt(), (OUT_CH,), jnp.float32))
        params["branches"].append(bp)
    return params


# --------------------------------------------------------------------------- main

if __name__ == "__main__":
    key = jax.random.PRNGKey(0)
    kp, kx = jax.random.split(key)

    B, C, H, W = 2, 4, 16, 16
    x = jax.random.normal(kx, (B, C, H, W), jnp.float32)   # PyTorch-style NCHW input

    params = init_params(kp, C)
    prepared = prepare_params(params, H, W)                 # hoisted weight prep / pool operators
    fwd = jax.jit(functools.partial(yolox_forward, prepared))
    out = fwd(x)
    jax.block_until_ready(out)

    n_anchors = H * W + (H // 2) * (W // 2) + (H // 4) * (W // 4)   # 256 + 64 + 16 = 336
    assert out.shape == (B, n_anchors, OUT_CH), out.shape
    assert bool(jnp.all(jnp.isfinite(out)))
    print("KERNEL_OK")
</pallas_src>

<mosaic_0001>
module attributes {stable_mosaic.version = 11 : i64} {
  func.func @_router_kernel(%arg0: memref<2x4x256xf32, #tpu.memory_space<vmem>>, %arg1: memref<4x2xf32, #tpu.memory_space<vmem>>, %arg2: memref<1x2xf32, #tpu.memory_space<vmem>>, %arg3: memref<2x2xf32, #tpu.memory_space<vmem>>) attributes {dimension_semantics = [], scalar_prefetch = 0 : i64, scratch_operands = 0 : i64, tpu.core_type = #tpu.core_type<tc>} {
    %c0 = arith.constant 0 : index
    %c0_0 = arith.constant 0 : index
    %c0_1 = arith.constant 0 : index
    %0 = vector.load %arg0[%c0, %c0_0, %c0_1] : memref<2x4x256xf32, #tpu.memory_space<vmem>>, vector<2x4x256xf32>
    %cst = arith.constant dense<0.000000e+00> : vector<2x4xf32>
    %1 = vector.multi_reduction <add>, %0, %cst [2] : vector<2x4x256xf32> to vector<2x4xf32>
    %cst_2 = arith.constant 2.560000e+02 : f32
    %2 = vector.broadcast %cst_2 : f32 to vector<2x4xf32>
    %3 = arith.divf %1, %2 : vector<2x4xf32>
    %c0_3 = arith.constant 0 : index
    %c0_4 = arith.constant 0 : index
    %4 = vector.load %arg1[%c0_3, %c0_4] : memref<4x2xf32, #tpu.memory_space<vmem>>, vector<4x2xf32>
    %cst_5 = arith.constant dense<0.000000e+00> : vector<2x2xf32>
    %5 = tpu.matmul %3, %4, %cst_5 {dimension_numbers = #tpu.dot_dimension_numbers<[1], [0], [0], [1], [0, 0, 1, 1], [], []>} : vector<2x4xf32>, vector<4x2xf32>, vector<2x2xf32> -> vector<2x2xf32>
    %c0_6 = arith.constant 0 : index
    %c0_7 = arith.constant 0 : index
    %6 = vector.load %arg2[%c0_6, %c0_7] : memref<1x2xf32, #tpu.memory_space<vmem>>, vector<1x2xf32>
    %7 = vector.broadcast %6 : vector<1x2xf32> to vector<2x2xf32>
    %8 = arith.addf %5, %7 : vector<2x2xf32>
    %c0_8 = arith.constant 0 : index
    %c0_9 = arith.constant 0 : index
    %9 = vector.load %arg3[%c0_8, %c0_9] : memref<2x2xf32, #tpu.memory_space<vmem>>, vector<2x2xf32>
    tpu.vector_store %arg3[%c0_8, %c0_9], %8 {strides = array<i32>} : memref<2x2xf32, #tpu.memory_space<vmem>>, vector<2x2xf32>,
    return
  }
}

module attributes {stable_mosaic.version = 11 : i64} {
  func.func @_fused_branch_kernel(%arg0: i32, %arg1: memref<1x256x4xf32, #tpu.memory_space<vmem>>, %arg2: memref<4x32xbf16, #tpu.memory_space<vmem>>, %arg3: memref<1x32xf32, #tpu.memory_space<vmem>>, %arg4: memref<3x32x32xbf16, #tpu.memory_space<vmem>>, %arg5: memref<3x1x32xf32, #tpu.memory_space<vmem>>, %arg6: memref<3x32x32xbf16, #tpu.memory_space<vmem>>, %arg7: memref<3x1x32xf32, #tpu.memory_space<vmem>>, %arg8: memref<64x256xbf16, #tpu.memory_space<vmem>>, %arg9: memref<16x64xbf16, #tpu.memory_space<vmem>>, %arg10: memref<1x336x32xbf16, #tpu.memory_space<vmem>>) attributes {dimension_semantics = [#tpu.dimension_semantics<parallel>], iteration_bounds = array<i64: 2>, scalar_prefetch = 0 : i64, scratch_operands = 0 : i64, tpu.core_type = #tpu.core_type<tc>, window_params = [{transform_indices = @transform_0, window_bounds = array<i64: 1, 256, 4>}, {pipeline_mode = #tpu.pipeline_mode<synchronous>, transform_indices = @transform_1, window_bounds = array<i64: 4, 32>}, {pipeline_mode = #tpu.pipeline_mode<synchronous>, transform_indices = @transform_2, window_bounds = array<i64: 1, 32>}, {pipeline_mode = #tpu.pipeline_mode<synchronous>, transform_indices = @transform_3, window_bounds = array<i64: 3, 32, 32>}, {pipeline_mode = #tpu.pipeline_mode<synchronous>, transform_indices = @transform_4, window_bounds = array<i64: 3, 1, 32>}, {pipeline_mode = #tpu.pipeline_mode<synchronous>, transform_indices = @transform_5, window_bounds = array<i64: 3, 32, 32>}, {pipeline_mode = #tpu.pipeline_mode<synchronous>, transform_indices = @transform_6, window_bounds = array<i64: 3, 1, 32>}, {pipeline_mode = #tpu.pipeline_mode<synchronous>, transform_indices = @transform_7, window_bounds = array<i64: 64, 256>}, {pipeline_mode = #tpu.pipeline_mode<synchronous>, transform_indices = @transform_8, window_bounds = array<i64: 16, 64>}, {transform_indices = @transform_9, window_bounds = array<i64: 1, 336, 32>}]} {
    %c0 = arith.constant 0 : index
    %c0_0 = arith.constant 0 : index
    %c0_1 = arith.constant 0 : index
    %0 = vector.load %arg1[%c0, %c0_0, %c0_1] : memref<1x256x4xf32, #tpu.memory_space<vmem>>, vector<1x256x4xf32>
    %1 = vector.shape_cast %0 : vector<1x256x4xf32> to vector<256x4xf32>
    %2 = arith.truncf %1 : vector<256x4xf32> to vector<256x4xbf16>
    %c0_2 = arith.constant 0 : index
    %c0_3 = arith.constant 0 : index
    %3 = vector.load %arg2[%c0_2, %c0_3] : memref<4x32xbf16, #tpu.memory_space<vmem>>, vector<4x32xbf16>
    %cst = arith.constant dense<0.000000e+00> : vector<256x32xf32>
    %4 = tpu.matmul %2, %3, %cst {dimension_numbers = #tpu.dot_dimension_numbers<[1], [0], [0], [1], [0, 0, 1, 1], [], []>} : vector<256x4xbf16>, vector<4x32xbf16>, vector<256x32xf32> -> vector<256x32xf32>
    %c0_4 = arith.constant 0 : index
    %c0_5 = arith.constant 0 : index
    %5 = vector.load %arg3[%c0_4, %c0_5] : memref<1x32xf32, #tpu.memory_space<vmem>>, vector<1x32xf32>
    %6 = vector.broadcast %5 : vector<1x32xf32> to vector<256x32xf32>
    %7 = arith.addf %4, %6 : vector<256x32xf32>
    %8 = arith.negf %7 : vector<256x32xf32>
    %9 = math.exp %8 : vector<256x32xf32>
    %cst_6 = arith.constant 1.000000e+00 : f32
    %10 = vector.broadcast %cst_6 : f32 to vector<256x32xf32>
    %11 = arith.addf %10, %9 : vector<256x32xf32>
    %12 = arith.divf %10, %11 : vector<256x32xf32>
    %13 = arith.mulf %7, %12 : vector<256x32xf32>
    %14 = arith.truncf %13 : vector<256x32xf32> to vector<256x32xbf16>
    %c0_7 = arith.constant 0 : index
    %c0_8 = arith.constant 0 : index
    %c0_9 = arith.constant 0 : index
    %15 = vector.load %arg4[%c0_7, %c0_8, %c0_9] : memref<3x32x32xbf16, #tpu.memory_space<vmem>>, vector<1x32x32xbf16>
    %16 = vector.shape_cast %15 : vector<1x32x32xbf16> to vector<32x32xbf16>
    %cst_10 = arith.constant dense<0.000000e+00> : vector<256x32xf32>
    %17 = tpu.matmul %14, %16, %cst_10 {dimension_numbers = #tpu.dot_dimension_numbers<[1], [0], [0], [1], [0, 0, 1, 1], [], []>} : vector<256x32xbf16>, vector<32x32xbf16>, vector<256x32xf32> -> vector<256x32xf32>
    %c0_11 = arith.constant 0 : index
    %c0_12 = arith.constant 0 : index
    %c0_13 = arith.constant 0 : index
    %18 = vector.load %arg5[%c0_11, %c0_12, %c0_13] : memref<3x1x32xf32, #tpu.memory_space<vmem>>, vector<1x1x32xf32>
    %19 = vector.shape_cast %18 : vector<1x1x32xf32> to vector<1x32xf32>
    %20 = vector.broadcast %19 : vector<1x32xf32> to vector<256x32xf32>
    %21 = arith.addf %17, %20 : vector<256x32xf32>
    %22 = arith.negf %21 : vector<256x32xf32>
    %23 = math.exp %22 : vector<256x32xf32>
    %cst_14 = arith.constant 1.000000e+00 : f32
    %24 = vector.broadcast %cst_14 : f32 to vector<256x32xf32>
    %25 = arith.addf %24, %23 : vector<256x32xf32>
    %26 = arith.divf %24, %25 : vector<256x32xf32>
    %27 = arith.mulf %21, %26 : vector<256x32xf32>
    %28 = arith.truncf %27 : vector<256x32xf32> to vector<256x32xbf16>
    %c0_15 = arith.constant 0 : index
    %c0_16 = arith.constant 0 : index
    %c0_17 = arith.constant 0 : index
    %29 = vector.load %arg6[%c0_15, %c0_16, %c0_17] : memref<3x32x32xbf16, #tpu.memory_space<vmem>>, vector<1x32x32xbf16>
    %30 = vector.shape_cast %29 : vector<1x32x32xbf16> to vector<32x32xbf16>
    %cst_18 = arith.constant dense<0.000000e+00> : vector<256x32xf32>
    %31 = tpu.matmul %28, %30, %cst_18 {dimension_numbers = #tpu.dot_dimension_numbers<[1], [0], [0], [1], [0, 0, 1, 1], [], []>} : vector<256x32xbf16>, vector<32x32xbf16>, vector<256x32xf32> -> vector<256x32xf32>
    %c0_19 = arith.constant 0 : index
    %c0_20 = arith.constant 0 : index
    %c0_21 = arith.constant 0 : index
    %32 = vector.load %arg7[%c0_19, %c0_20, %c0_21] : memref<3x1x32xf32, #tpu.memory_space<vmem>>, vector<1x1x32xf32>
    %33 = vector.shape_cast %32 : vector<1x1x32xf32> to vector<1x32xf32>
    %34 = vector.broadcast %33 : vector<1x32xf32> to vector<256x32xf32>
    %35 = arith.addf %31, %34 : vector<256x32xf32>
    %36 = tpu.iota {dimensions = array<i32: 1>} : vector<256x32xi32>
    %c4_i32 = arith.constant 4 : i32
    %37 = vector.broadcast %c4_i32 : i32 to vector<256x32xi32>
    %38 = arith.cmpi sge, %36, %37 : vector<256x32xi32>
    %39 = arith.negf %35 : vector<256x32xf32>
    %40 = math.exp %39 : vector<256x32xf32>
    %cst_22 = arith.constant 1.000000e+00 : f32
    %41 = vector.broadcast %cst_22 : f32 to vector<256x32xf32>
    %42 = arith.addf %41, %40 : vector<256x32xf32>
    %43 = arith.divf %41, %42 : vector<256x32xf32>
    %44 = arith.select %38, %43, %35 : vector<256x32xi1>, vector<256x32xf32>
    %45 = arith.truncf %44 : vector<256x32xf32> to vector<256x32xbf16>
    %c0_23 = arith.constant 0 : index
    %c0_24 = arith.constant 0 : index
    %c0_25 = arith.constant 0 : index
    %46 = vector.load %arg10[%c0_23, %c0_24, %c0_25] : memref<1x336x32xbf16, #tpu.memory_space<vmem>>, vector<1x256x32xbf16>
    %47 = vector.shape_cast %46 : vector<1x256x32xbf16> to vector<256x32xbf16>
    %48 = vector.shape_cast %45 : vector<256x32xbf16> to vector<1x256x32xbf16>
    tpu.vector_store %arg10[%c0_23, %c0_24, %c0_25], %48 {strides = array<i32>} : memref<1x336x32xbf16, #tpu.memory_space<vmem>>, vector<1x256x32xbf16>,
    %c0_26 = arith.constant 0 : index
    %c0_27 = arith.constant 0 : index
    %49 = vector.load %arg8[%c0_26, %c0_27] : memref<64x256xbf16, #tpu.memory_space<vmem>>, vector<64x256xbf16>
    %50 = arith.truncf %27 : vector<256x32xf32> to vector<256x32xbf16>
    %cst_28 = arith.constant dense<0.000000e+00> : vector<64x32xf32>
    %51 = tpu.matmul %49, %50, %cst_28 {dimension_numbers = #tpu.dot_dimension_numbers<[1], [0], [0], [1], [0, 0, 1, 1], [], []>} : vector<64x256xbf16>, vector<256x32xbf16>, vector<64x32xf32> -> vector<64x32xf32>
    %52 = arith.truncf %51 : vector<64x32xf32> to vector<64x32xbf16>
    %c1 = arith.constant 1 : index
    %c0_29 = arith.constant 0 : index
    %c0_30 = arith.constant 0 : index
    %53 = vector.load %arg4[%c1, %c0_29, %c0_30] : memref<3x32x32xbf16, #tpu.memory_space<vmem>>, vector<1x32x32xbf16>
    %54 = vector.shape_cast %53 : vector<1x32x32xbf16> to vector<32x32xbf16>
    %cst_31 = arith.constant dense<0.000000e+00> : vector<64x32xf32>
    %55 = tpu.matmul %52, %54, %cst_31 {dimension_numbers = #tpu.dot_dimension_numbers<[1], [0], [0], [1], [0, 0, 1, 1], [], []>} : vector<64x32xbf16>, vector<32x32xbf16>, vector<64x32xf32> -> vector<64x32xf32>
    %c1_32 = arith.constant 1 : index
    %c0_33 = arith.constant 0 : index
    %c0_34 = arith.constant 0 : index
    %56 = vector.load %arg5[%c1_32, %c0_33, %c0_34] : memref<3x1x32xf32, #tpu.memory_space<vmem>>, vector<1x1x32xf32>
    %57 = vector.shape_cast %56 : vector<1x1x32xf32> to vector<1x32xf32>
    %58 = vector.broadcast %57 : vector<1x32xf32> to vector<64x32xf32>
    %59 = arith.addf %55, %58 : vector<64x32xf32>
    %60 = arith.negf %59 : vector<64x32xf32>
    %61 = math.exp %60 : vector<64x32xf32>
    %cst_35 = arith.constant 1.000000e+00 : f32
    %62 = vector.broadcast %cst_35 : f32 to vector<64x32xf32>
    %63 = arith.addf %62, %61 : vector<64x32xf32>
    %64 = arith.divf %62, %63 : vector<64x32xf32>
    %65 = arith.mulf %59, %64 : vector<64x32xf32>
    %66 = arith.truncf %65 : vector<64x32xf32> to vector<64x32xbf16>
    %c1_36 = arith.constant 1 : index
    %c0_37 = arith.constant 0 : index
    %c0_38 = arith.constant 0 : index
    %67 = vector.load %arg6[%c1_36, %c0_37, %c0_38] : memref<3x32x32xbf16, #tpu.memory_space<vmem>>, vector<1x32x32xbf16>
    %68 = vector.shape_cast %67 : vector<1x32x32xbf16> to vector<32x32xbf16>
    %cst_39 = arith.constant dense<0.000000e+00> : vector<64x32xf32>
    %69 = tpu.matmul %66, %68, %cst_39 {dimension_numbers = #tpu.dot_dimension_numbers<[1], [0], [0], [1], [0, 0, 1, 1], [], []>} : vector<64x32xbf16>, vector<32x32xbf16>, vector<64x32xf32> -> vector<64x32xf32>
    %c1_40 = arith.constant 1 : index
    %c0_41 = arith.constant 0 : index
    %c0_42 = arith.constant 0 : index
    %70 = vector.load %arg7[%c1_40, %c0_41, %c0_42] : memref<3x1x32xf32, #tpu.memory_space<vmem>>, vector<1x1x32xf32>
    %71 = vector.shape_cast %70 : vector<1x1x32xf32> to vector<1x32xf32>
    %72 = vector.broadcast %71 : vector<1x32xf32> to vector<64x32xf32>
    %73 = arith.addf %69, %72 : vector<64x32xf32>
    %74 = tpu.iota {dimensions = array<i32: 1>} : vector<64x32xi32>
    %c4_i32_43 = arith.constant 4 : i32
    %75 = vector.broadcast %c4_i32_43 : i32 to vector<64x32xi32>
    %76 = arith.cmpi sge, %74, %75 : vector<64x32xi32>
    %77 = arith.negf %73 : vector<64x32xf32>
    %78 = math.exp %77 : vector<64x32xf32>
    %cst_44 = arith.constant 1.000000e+00 : f32
    %79 = vector.broadcast %cst_44 : f32 to vector<64x32xf32>
    %80 = arith.addf %79, %78 : vector<64x32xf32>
    %81 = arith.divf %79, %80 : vector<64x32xf32>
    %82 = arith.select %76, %81, %73 : vector<64x32xi1>, vector<64x32xf32>
    %83 = arith.truncf %82 : vector<64x32xf32> to vector<64x32xbf16>
    %c0_45 = arith.constant 0 : index
    %c256 = arith.constant 256 : index
    %c0_46 = arith.constant 0 : index
    %84 = vector.load %arg10[%c0_45, %c256, %c0_46] : memref<1x336x32xbf16, #tpu.memory_space<vmem>>, vector<1x64x32xbf16>
    %85 = vector.shape_cast %84 : vector<1x64x32xbf16> to vector<64x32xbf16>
    %86 = vector.shape_cast %83 : vector<64x32xbf16> to vector<1x64x32xbf16>
    tpu.vector_store %arg10[%c0_45, %c256, %c0_46], %86 {strides = array<i32>} : memref<1x336x32xbf16, #tpu.memory_space<vmem>>, vector<1x64x32xbf16>,
    %c0_47 = arith.constant 0 : index
    %c0_48 = arith.constant 0 : index
    %87 = vector.load %arg9[%c0_47, %c0_48] : memref<16x64xbf16, #tpu.memory_space<vmem>>, vector<16x64xbf16>
    %88 = arith.truncf %65 : vector<64x32xf32> to vector<64x32xbf16>
    %cst_49 = arith.constant dense<0.000000e+00> : vector<16x32xf32>
    %89 = tpu.matmul %87, %88, %cst_49 {dimension_numbers = #tpu.dot_dimension_numbers<[1], [0], [0], [1], [0, 0, 1, 1], [], []>} : vector<16x64xbf16>, vector<64x32xbf16>, vector<16x32xf32> -> vector<16x32xf32>
    %90 = arith.truncf %89 : vector<16x32xf32> to vector<16x32xbf16>
    %c2 = arith.constant 2 : index
    %c0_50 = arith.constant 0 : index
    %c0_51 = arith.constant 0 : index
    %91 = vector.load %arg4[%c2, %c0_50, %c0_51] : memref<3x32x32xbf16, #tpu.memory_space<vmem>>, vector<1x32x32xbf16>
    %92 = vector.shape_cast %91 : vector<1x32x32xbf16> to vector<32x32xbf16>
    %cst_52 = arith.constant dense<0.000000e+00> : vector<16x32xf32>
    %93 = tpu.matmul %90, %92, %cst_52 {dimension_numbers = #tpu.dot_dimension_numbers<[1], [0], [0], [1], [0, 0, 1, 1], [], []>} : vector<16x32xbf16>, vector<32x32xbf16>, vector<16x32xf32> -> vector<16x32xf32>
    %c2_53 = arith.constant 2 : index
    %c0_54 = arith.constant 0 : index
    %c0_55 = arith.constant 0 : index
    %94 = vector.load %arg5[%c2_53, %c0_54, %c0_55] : memref<3x1x32xf32, #tpu.memory_space<vmem>>, vector<1x1x32xf32>
    %95 = vector.shape_cast %94 : vector<1x1x32xf32> to vector<1x32xf32>
    %96 = vector.broadcast %95 : vector<1x32xf32> to vector<16x32xf32>
    %97 = arith.addf %93, %96 : vector<16x32xf32>
    %98 = arith.negf %97 : vector<16x32xf32>
    %99 = math.exp %98 : vector<16x32xf32>
    %cst_56 = arith.constant 1.000000e+00 : f32
    %100 = vector.broadcast %cst_56 : f32 to vector<16x32xf32>
    %101 = arith.addf %100, %99 : vector<16x32xf32>
    %102 = arith.divf %100, %101 : vector<16x32xf32>
    %103 = arith.mulf %97, %102 : vector<16x32xf32>
    %104 = arith.truncf %103 : vector<16x32xf32> to vector<16x32xbf16>
    %c2_57 = arith.constant 2 : index
    %c0_58 = arith.constant 0 : index
    %c0_59 = arith.constant 0 : index
    %105 = vector.load %arg6[%c2_57, %c0_58, %c0_59] : memref<3x32x32xbf16, #tpu.memory_space<vmem>>, vector<1x32x32xbf16>
    %106 = vector.shape_cast %105 : vector<1x32x32xbf16> to vector<32x32xbf16>
    %cst_60 = arith.constant dense<0.000000e+00> : vector<16x32xf32>
    %107 = tpu.matmul %104, %106, %cst_60 {dimension_numbers = #tpu.dot_dimension_numbers<[1], [0], [0], [1], [0, 0, 1, 1], [], []>} : vector<16x32xbf16>, vector<32x32xbf16>, vector<16x32xf32> -> vector<16x32xf32>
    %c2_61 = arith.constant 2 : index
    %c0_62 = arith.constant 0 : index
    %c0_63 = arith.constant 0 : index
    %108 = vector.load %arg7[%c2_61, %c0_62, %c0_63] : memref<3x1x32xf32, #tpu.memory_space<vmem>>, vector<1x1x32xf32>
    %109 = vector.shape_cast %108 : vector<1x1x32xf32> to vector<1x32xf32>
    %110 = vector.broadcast %109 : vector<1x32xf32> to vector<16x32xf32>
    %111 = arith.addf %107, %110 : vector<16x32xf32>
    %112 = tpu.iota {dimensions = array<i32: 1>} : vector<16x32xi32>
    %c4_i32_64 = arith.constant 4 : i32
    %113 = vector.broadcast %c4_i32_64 : i32 to vector<16x32xi32>
    %114 = arith.cmpi sge, %112, %113 : vector<16x32xi32>
    %115 = arith.negf %111 : vector<16x32xf32>
    %116 = math.exp %115 : vector<16x32xf32>
    %cst_65 = arith.constant 1.000000e+00 : f32
    %117 = vector.broadcast %cst_65 : f32 to vector<16x32xf32>
    %118 = arith.addf %117, %116 : vector<16x32xf32>
    %119 = arith.divf %117, %118 : vector<16x32xf32>
    %120 = arith.select %114, %119, %111 : vector<16x32xi1>, vector<16x32xf32>
    %121 = arith.truncf %120 : vector<16x32xf32> to vector<16x32xbf16>
    %c0_66 = arith.constant 0 : index
    %c320 = arith.constant 320 : index
    %c0_67 = arith.constant 0 : index
    %122 = vector.load %arg10[%c0_66, %c320, %c0_67] : memref<1x336x32xbf16, #tpu.memory_space<vmem>>, vector<1x16x32xbf16>
    %123 = vector.shape_cast %122 : vector<1x16x32xbf16> to vector<16x32xbf16>
    %124 = vector.shape_cast %121 : vector<16x32xbf16> to vector<1x16x32xbf16>
    tpu.vector_store %arg10[%c0_66, %c320, %c0_67], %124 {strides = array<i32>} : memref<1x336x32xbf16, #tpu.memory_space<vmem>>, vector<1x16x32xbf16>,
    return
  }
  func.func @transform_0(%arg0: i32) -> (i32, i32, i32) {
    %c0_i32 = arith.constant 0 : i32
    %c0_i32_0 = arith.constant 0 : i32
    %c0_i32_1 = arith.constant 0 : i32
    return %arg0, %c0_i32, %c0_i32_0 : i32, i32, i32
  }
  func.func @transform_1(%arg0: i32) -> (i32, i32) {
    %c0_i32 = arith.constant 0 : i32
    %c0_i32_0 = arith.constant 0 : i32
    %c0_i32_1 = arith.constant 0 : i32
    return %c0_i32, %c0_i32_0 : i32, i32
  }
  func.func @transform_2(%arg0: i32) -> (i32, i32) {
    %c0_i32 = arith.constant 0 : i32
    %c0_i32_0 = arith.constant 0 : i32
    %c0_i32_1 = arith.constant 0 : i32
    return %c0_i32, %c0_i32_0 : i32, i32
  }
  func.func @transform_3(%arg0: i32) -> (i32, i32, i32) {
    %c0_i32 = arith.constant 0 : i32
    %c0_i32_0 = arith.constant 0 : i32
    %c0_i32_1 = arith.constant 0 : i32
    %c0_i32_2 = arith.constant 0 : i32
    return %c0_i32, %c0_i32_0, %c0_i32_1 : i32, i32, i32
  }
  func.func @transform_4(%arg0: i32) -> (i32, i32, i32) {
    %c0_i32 = arith.constant 0 : i32
    %c0_i32_0 = arith.constant 0 : i32
    %c0_i32_1 = arith.constant 0 : i32
    %c0_i32_2 = arith.constant 0 : i32
    return %c0_i32, %c0_i32_0, %c0_i32_1 : i32, i32, i32
  }
  func.func @transform_5(%arg0: i32) -> (i32, i32, i32) {
    %c0_i32 = arith.constant 0 : i32
    %c0_i32_0 = arith.constant 0 : i32
    %c0_i32_1 = arith.constant 0 : i32
    %c0_i32_2 = arith.constant 0 : i32
    return %c0_i32, %c0_i32_0, %c0_i32_1 : i32, i32, i32
  }
  func.func @transform_6(%arg0: i32) -> (i32, i32, i32) {
    %c0_i32 = arith.constant 0 : i32
    %c0_i32_0 = arith.constant 0 : i32
    %c0_i32_1 = arith.constant 0 : i32
    %c0_i32_2 = arith.constant 0 : i32
    return %c0_i32, %c0_i32_0, %c0_i32_1 : i32, i32, i32
  }
  func.func @transform_7(%arg0: i32) -> (i32, i32) {
    %c0_i32 = arith.constant 0 : i32
    %c0_i32_0 = arith.constant 0 : i32
    %c0_i32_1 = arith.constant 0 : i32
    return %c0_i32, %c0_i32_0 : i32, i32
  }
  func.func @transform_8(%arg0: i32) -> (i32, i32) {
    %c0_i32 = arith.constant 0 : i32
    %c0_i32_0 = arith.constant 0 : i32
    %c0_i32_1 = arith.constant 0 : i32
    return %c0_i32, %c0_i32_0 : i32, i32
  }
  func.func @transform_9(%arg0: i32) -> (i32, i32, i32) {
    %c0_i32 = arith.constant 0 : i32
    %c0_i32_0 = arith.constant 0 : i32
    %c0_i32_1 = arith.constant 0 : i32
    return %arg0, %c0_i32, %c0_i32_0 : i32, i32, i32
  }
}

</mosaic_0001>

<bundles_post_ra>
// kernel: yolox_forward.1
= control target key start
LH: loop header
LB: loop body
LE: loop exit
PB: predicated region body
PF: predicated region fallthrough
CT: control target
= control target key end

     0   :  { %vm29_vm0 = vcmask 1043456   ;;  %v100_v12 = vmov 256.0   ;;  %v56_v20 = vlaneseq  ;;  %vm60_vm2 = vcmask 1041409   ;;  %s141_s0 = inlined_call_operand.vmem [shape: f32[2,4,256], index: 0, kind: input, shape index: {}]   ;;  %s142_s2 = inlined_call_operand.vmem [shape: f32[1,2], index: 2, kind: input, shape index: {}]   ;;  %s143_s1 = inlined_call_operand.vmem [shape: f32[4,2], index: 1, kind: input, shape index: {}]   ;;  %s144_s3 = inlined_call_operand.vmem [shape: f32[2,2], index: 3, kind: output, shape index: {}]  }
   0x1   :  { %v14_v0 = vld [vmem:[%s141_s0] sm:$0xff]  ;;  %v15_v1 = vld [vmem:[%s141_s0 + $0x8] sm:$0xff]  ;;  %98 = vrcp.f32 %v100_v12  ;;  %vm62_vm3 = vcmask 31744   ;;  %vm88_vm4 = vcmask 9216  }
   0x2   :  { %18 = vst [vmem:[#allocation1] ss:$2 sm:$0xff] %v14_v0  ;;  %v49_v13 = vld [vmem:[%s143_s1] sm:$0xf]  ;;  %v57_v22 = vand.u32 127, %v56_v20 }
   0x3   :  { %22 = vst [vmem:[#allocation1 + $0x10] ss:$2 sm:$0xff] %v15_v1  ;;  %94 = vmatpush.msk.msra.mxu0 %vm29_vm0, %v49_v13  ;;  %v97_v29 = vld [vmem:[%s142_s2] ss:$0 sm:$0xff] }
   0x7   :  { %v99_v14 = vpop.eup %98 }
   0x8   :  { %v41_v15 = vmul.f32 256.0, %v99_v14  ;;  %vm45_vm1 = vweird.f32 %v99_v14 }
   0x9   :  { %v19_v2 = vld.sshfl [vmem:[#allocation1] sm:$0xff pattern:$0x75316420]  ;;  %v20_v3 = vld.sshfl [vmem:[#allocation1 + $0x8] sm:$0xff pattern:$0x75316420] }
   0xa   :  { %v30_v4 = vsel %vm29_vm0, %v19_v2, 0.0  ;;  %v31_v5 = vsel %vm29_vm0, %v20_v3, 0.0  ;;  %v23_v7 = vld.sshfl [vmem:[#allocation1 + $0x10] sm:$0xff pattern:$0x75316420]  ;;  %v42_v16 = vsub.f32 1.0, %v41_v15 }
   0xb   :  { %v32_v6 = vadd.f32 %v31_v5, %v30_v4  ;;  %v24_v8 = vld.sshfl [vmem:[#allocation1 + $0x18] sm:$0xff pattern:$0x75316420]  ;;  %v35_v9 = vsel %vm29_vm0, %v23_v7, 0.0 }
   0xc   :  { %v36_v10 = vsel %vm29_vm0, %v24_v8, 0.0  ;;  %v43_v17 = vmul.f32 %v99_v14, %v42_v16 }
   0xd   :  { %33 = vadd.xlane.f32.xlu0 %v32_v6  ;;  %v37_v11 = vadd.f32 %v36_v10, %v35_v9 }
   0xe   :  { %v44_v18 = vadd.f32 %v99_v14, %v43_v17 }
  0x10   :  { %v46_v21 = vsel %vm45_vm1, %v99_v14, %v44_v18 }
  0x15   :  { %38 = vadd.xlane.f32.xlu0 %v37_v11 }
  0x80   :  { %v34_v19 = vpop.xlane.xlu0 %33 }
  0x81   :  { %v47_v23 = vmul.f32 %v46_v21, %v34_v19 }
  0x83   :  { %v58_v26 = vperm.slane %v47_v23, %v57_v22 }
  0x88   :  { %v39_v24 = vpop.xlane.xlu0 %38 }
  0x89   :  { %v48_v25 = vmul.f32 %v46_v21, %v39_v24 }
  0x8b   :  { %v59_v27 = vperm.slane %v48_v25, %v57_v22 }
  0x8d   :  { %v61_v28 = vsel %vm60_vm2, %v59_v27, %v58_v26 }
  0x8e   :  { %95 = vmatmul.msk.f32.vlgmr.msra.gmra.mxu0 %vm62_vm3, %v61_v28 }
 0x10b   :  { %v85_v30 = vpop.f32.mrf.mxu0 }
 0x10c   :  { %v86_v31 = vadd.f32 %v97_v29, %v85_v30 }
 0x10e   :  { %89 = vst.msk [vmem:[%s144_s3] sm:$0x3] %vm88_vm4, %v86_v31 }

// kernel: branch_0_fun.1
= control target key start
LH: loop header
LB: loop body
LE: loop exit
PB: predicated region body
PF: predicated region fallthrough
CT: control target
= control target key end

     0   :  { %14 = vsyncpa [#allocation3], 0  ;;  %s7095_s0 = inlined_call_operand.vmem [shape: f32[2,256,4], index: 0, kind: input, shape index: {}]   ;;  %s7096_s1 = inlined_call_operand.vmem [shape: bf16[4,32], index: 1, kind: input, shape index: {}]   ;;  %s7097_s2 = inlined_call_operand.vmem [shape: f32[1,32], index: 2, kind: input, shape index: {}]   ;;  %s7098_s3 = inlined_call_operand.hbm [shape: bf16[3,32,32], index: 3, kind: input, shape index: {}]   ;;  %s7099_s4 = inlined_call_operand.vmem [shape: f32[3,1,32], index: 4, kind: input, shape index: {}]   ;;  %s7100_s5 = inlined_call_operand.hbm [shape: bf16[3,32,32], index: 5, kind: input, shape index: {}]   ;;  %s7101_s6 = inlined_call_operand.hbm [shape: f32[3,1,32], index: 6, kind: input, shape index: {}]   ;;  %s7102_s7 = inlined_call_operand.hbm [shape: bf16[64,256], index: 7, kind: input, shape index: {}]   ;;  %s7103_s8 = inlined_call_operand.hbm [shape: bf16[16,64], index: 8, kind: input, shape index: {}]   ;;  %s7104_s9 = inlined_call_operand.vmem [shape: bf16[2,336,32], index: 9, kind: output, shape index: {}]  }
   0x1   :  { %15 = vsyncpa [#allocation5], 0 }
   0x2   :  { %16 = vsyncpa [#allocation8], 0  ;;  %s4893_s30 = smov 0  }
   0x3 LB: > { %s4899_s10 = sadd.s32 4294967295, %s4830_s30   ;;  %p3819_p0 = scmp.ge.s32.totalorder %s4830_s30, 1  ;;  %s4830_s30 = sphi %s4893_s30, %s22_s30  }
   0x4   : > { %p247_p1 = scmp.lt.s32.totalorder %s4830_s30, 3  ;;  %p4157_p2 = scmp.eq.s32.totalorder %s4899_s10, 0 }
   0x5   : > { %s281_s13 = sshll.u32 %s7100_s5, 4  ;;  %s309_s17 = sshll.u32 %s7102_s7, 4  ;;  %s282_s13 = int_to_ptr.hbm [resolvable:$true] %s281_s13  ;;  %s310_s17 = int_to_ptr.hbm [resolvable:$true] %s309_s17 }
   0x6   : > { %p4907_p3 = pnand %p3819_p0, %p247_p1  ;;  %s4832_s18 = smov [#allocation4]  }
   0x7   : > { %s283_s19 = sshll.u32 %s4832_s18, 4  ;;  %s4833_s21 = smov [#allocation7]   ;;  %s284_s19 = int_to_ptr.vmem [resolvable:$true] %s283_s19 }
   0x8   : > { %p4141_p4 = pneg %p4907_p3  ;;  %s311_s22 = sshll.u32 %s4833_s21, 4  ;;  %s312_s22 = int_to_ptr.vmem [resolvable:$true] %s311_s22 }
   0x9   : > { %s4834_s23 = smov 64   ;;  %s4835_s24 = smov 4  }
   0xa   : > { %p4918_p5 = pnand %p4157_p2, %p4141_p4  ;;  %s264_s27 = sshll.u32 %s7098_s3, 4  ;;  %s265_s27 = int_to_ptr.hbm [resolvable:$true] %s264_s27 }
   0xb   : > { %s4836_s28 = smov 128   ;;  %s4837_s29 = smov 8  }
   0xc   : > { %4147 = dma.hbm_to_vmem [thread:$0]  (!%p4918_p5), %s282_s13, 768, %s284_s19, [#allocation5], %s4834_s23, %s4834_s23, %s4835_s24  }
   0xd   : > { %4153 = dma.hbm_to_vmem [thread:$0]  (!%p4918_p5), %s310_s17, 1024, %s312_s22, [#allocation8], %s4836_s28, %s4836_s28, %s4837_s29  }
   0xe   : > { %s4838_s11 = smov [#allocation2]   ;;  %s295_s18 = sshll.u32 %s7101_s6, 4  ;;  %s296_s18 = int_to_ptr.hbm [resolvable:$true] %s295_s18 }
   0xf   : > { %s266_s12 = sshll.u32 %s4838_s11, 4  ;;  %s4839_s13 = smov [#allocation6]   ;;  %s267_s12 = int_to_ptr.vmem [resolvable:$true] %s266_s12 }
  0x10   : > { %4144 = dma.hbm_to_vmem [thread:$0]  (!%p4918_p5), %s265_s27, 768, %s267_s12, [#allocation3], %s4834_s23, %s4834_s23, %s4835_s24  }
  0x11   : > { %s297_s19 = sshll.u32 %s4839_s13, 4  ;;  %s323_s26 = sshll.u32 %s7103_s8, 4  ;;  %s298_s19 = int_to_ptr.vmem [resolvable:$true] %s297_s19  ;;  %s324_s26 = int_to_ptr.hbm [resolvable:$true] %s323_s26 }
  0x12   : > { %s4840_s17 = smov 16   ;;  %s4841_s22 = smov 1  }
  0x13   : > { %4150 = dma.hbm_to_vmem [thread:$0]  (!%p4918_p5), %s296_s18, 48, %s298_s19, [#allocation5], %s4840_s17, %s4840_s17, %s4841_s22  }
  0x14   : > { %s4842_s28 = smov [#allocation9]   ;;  %349 = sbr.rel (%p4907_p3) target bundleno = 1521 (0x5f1), region = 56 }
  0x15   : > { %s325_s29 = sshll.u32 %s4842_s28, 4  ;;  %s326_s29 = int_to_ptr.vmem [resolvable:$true] %s325_s29 }
  0x16   : > { %4156 = dma.hbm_to_vmem [thread:$0]  (!%p4918_p5), %s324_s26, 128, %s326_s29, [#allocation8], %s4834_s23, %s4834_s23, %s4835_s24  }
  0x19   : > { %4817 = dma.done.wait (%p4157_p2), [#allocation3], 768  }
  0x1a   : > { %4819 = vsyncadd (%p4157_p2), [#allocation3], 4294966528 }
  0x1b   : > { %4821 = dma.done.wait (%p4157_p2), [#allocation5], 816  }
  0x1c   : > { %4823 = vsyncadd (%p4157_p2), [#allocation5], 4294966480 }
  0x1d   : > { %4825 = dma.done.wait (%p4157_p2), [#allocation8], 1152  }
  0x1e   : > { %4827 = vsyncadd (%p4157_p2), [#allocation8], 4294966144  ;;  %p406_p6 = scmp.lt.s32.totalorder %s4899_s10, 1  ;;  %vm519_vm0 = vcmask 1041408   ;;  %v465_v0 = vld [vmem:[%s7096_s1] sm:$0x3] }
  0x1f   : > { %v521_v3 = vsel %vm519_vm0, %v465_v0, 0  ;;  %vm470_vm1 = vcmask 31744   ;;  %v4997_v28 = vld [vmem:[%s7097_s2] ss:$0 sm:$0xff]  ;;  %v4100_v33 = vld [vmem:[#allocation2 + $0x8] sm:$0xff]  ;;  %vm1288_vm10 = vcmask 261120  }
  0x20   : > { %s7244_s10 = smov (!%p406_p6, %s4899_s10), 1  ;;  %530 = vmatpush.bf16.msra.mxu0 %v521_v3  ;;  %1343 = vmatpush.bf16.msra.mxu1 %v4100_v33  ;;  %v4099_v34 = vld [vmem:[#allocation2] sm:$0xff] }
  0x21   : > { %s4098_s14 = sshll.u32 %s7244_s10, 8  ;;  %s4120_s26 = smul.u32 168, %s7244_s10 }
  0x22   : > { %s4963_s24 = scalar_lea.vmem %s7095_s0, %s4098_s14 }
  0x23   : > { %v417_v1 = vld [vmem:[%s4963_s24] sm:$0xff]  ;;  %v418_v2 = vld [vmem:[%s4963_s24 + $0x8] sm:$0xff]  ;;  %v419_v5 = vld [vmem:[%s4963_s24 + $0x10] sm:$0xff]  ;;  %s6218_s22 = scalar_lea.vmem %s7104_s9, %s4120_s26 }
  0x24   : > { %v449_v4 = vpack.c.bf16 %v418_v2, %v417_v1  ;;  %v420_v6 = vld [vmem:[%s4963_s24 + $0x18] sm:$0xff]  ;;  %v421_v8 = vld [vmem:[%s4963_s24 + $0x20] sm:$0xff]  ;;  %v422_v9 = vld [vmem:[%s4963_s24 + $0x28] sm:$0xff]  ;;  %1344 = vmatpush.bf16.msra.mxu1 %v4099_v34 }
  0x25   : > { %v450_v7 = vpack.c.bf16 %v420_v6, %v419_v5  ;;  %v451_v10 = vpack.c.bf16 %v422_v9, %v421_v8  ;;  %v423_v11 = vld [vmem:[%s4963_s24 + $0x30] sm:$0xff]  ;;  %v424_v12 = vld [vmem:[%s4963_s24 + $0x38] sm:$0xff]  ;;  %v425_v14 = vld [vmem:[%s4963_s24 + $0x40] sm:$0xff] }
  0x26   : > { %3835 = vmatmul.msk.bf16.vlgmr.msra.gmra.mxu0 %vm470_vm1, %v449_v4  ;;  %v452_v13 = vpack.c.bf16 %v424_v12, %v423_v11  ;;  %v426_v15 = vld [vmem:[%s4963_s24 + $0x48] sm:$0xff]  ;;  %v427_v17 = vld [vmem:[%s4963_s24 + $0x50] sm:$0xff]  ;;  %v428_v18 = vld [vmem:[%s4963_s24 + $0x58] sm:$0xff] }
  0x27   : > { %v453_v16 = vpack.c.bf16 %v426_v15, %v425_v14  ;;  %v454_v19 = vpack.c.bf16 %v428_v18, %v427_v17  ;;  %v429_v20 = vld [vmem:[%s4963_s24 + $0x60] sm:$0xff]  ;;  %v430_v21 = vld [vmem:[%s4963_s24 + $0x68] sm:$0xff]  ;;  %v431_v23 = vld [vmem:[%s4963_s24 + $0x70] sm:$0xff] }
  0x28   : > { %v455_v22 = vpack.c.bf16 %v430_v21, %v429_v20  ;;  %v432_v24 = vld [vmem:[%s4963_s24 + $0x78] sm:$0xff]  ;;  %v433_v26 = vld [vmem:[%s4963_s24 + $0x80] sm:$0xff]  ;;  %v434_v27 = vld [vmem:[%s4963_s24 + $0x88] sm:$0xff] }
  0x29   : > { %v456_v25 = vpack.c.bf16 %v432_v24, %v431_v23  ;;  %v457_v29 = vpack.c.bf16 %v434_v27, %v433_v26  ;;  %v435_v40 = vld [vmem:[%s4963_s24 + $0x90] sm:$0xff]  ;;  %v436_v41 = vld [vmem:[%s4963_s24 + $0x98] sm:$0xff]  ;;  %v437_v58 = vld [vmem:[%s4963_s24 + $0xa0] sm:$0xff] }
  0x2a   : > { %v458_v42 = vpack.c.bf16 %v436_v41, %v435_v40  ;;  %v438_v59 = vld [vmem:[%s4963_s24 + $0xa8] sm:$0xff]  ;;  %v439_v33 = vld [vmem:[%s4963_s24 + $0xb0] sm:$0xff] }
  0x2b   : > { %v459_v1 = vpack.c.bf16 %v438_v59, %v437_v58 }
  0x36   : > { %3836 = vmatmul.msk.bf16.gmra.mxu0 %vm470_vm1, %v450_v7 }
  0x46   : > { %3837 = vmatmul.msk.bf16.gmra.mxu0 %vm470_vm1, %v451_v10 }
  0x56   : > { %3838 = vmatmul.msk.bf16.gmra.mxu0 %vm470_vm1, %v452_v13 }
  0x66   : > { %3839 = vmatmul.msk.bf16.gmra.mxu0 %vm470_vm1, %v453_v16 }
  0x76   : > { %3840 = vmatmul.msk.bf16.gmra.mxu0 %vm470_vm1, %v454_v19 }
  0x86   : > { %3841 = vmatmul.msk.bf16.gmra.mxu0 %vm470_vm1, %v455_v22 }
  0x96   : > { %3842 = vmatmul.msk.bf16.gmra.mxu0 %vm470_vm1, %v456_v25 }
  0xa3   : > { %v532_v30 = vpop.f32.mrf.mxu0 }
  0xa4   : > { %v5000_v31 = vadd.f32 %v4997_v28, %v532_v30 }
  0xa6   : > { %v3851_v32 = vmul.f32 -1.442695, %v5000_v31  ;;  %3843 = vmatmul.msk.bf16.gmra.mxu0 %vm470_vm1, %v457_v29 }
  0xa8   : > { %4193 = vpow2.f32 %v3851_v32 }
  0xab   : > { %v534_v35 = vpop.f32.mrf.mxu0 }
  0xac   : > { %v5005_v36 = vadd.f32 %v4997_v28, %v534_v35 }
  0xae   : > { %v4194_v37 = vpop.eup %4193  ;;  %v3852_v38 = vmul.f32 -1.442695, %v5005_v36 }
  0xaf   : > { %v708_v39 = vadd.f32 1.0, %v4194_v37 }
  0xb0   : > { %4195 = vpow2.f32 %v3852_v38 }
  0xb1   : > { %4197 = vrcp.f32 %v708_v39  ;;  %v751_v62 = vand.u32 2147483648, %v708_v39  ;;  %vm745_vm3 = vweird.f32 %v708_v39  ;;  %v749_v63 = vand.u32 2147483647, %v708_v39 }
  0xb3   : > { %v537_v43 = vpop.f32.mrf.mxu0  ;;  %v752_v9 = vor.u32 1.1754944e-38, %v751_v62  ;;  %vm750_vm6 = vcmp.eq.f32.partialorder %v749_v63, 8.507059e+37 }
  0xb4   : > { %v5011_v44 = vadd.f32 %v4997_v28, %v537_v43 }
  0xb6   : > { %v4196_v45 = vpop.eup %4195  ;;  %v3853_v46 = vmul.f32 -1.442695, %v5011_v44  ;;  %3844 = vmatmul.msk.bf16.gmra.mxu0 %vm470_vm1, %v458_v42 }
  0xb7   : > { %v4198_v47 = vpop.eup %4197  ;;  %v709_v48 = vadd.f32 1.0, %v4196_v45 }
  0xb8   : > { %v741_v49 = vmul.f32 %v4198_v47, %v708_v39  ;;  %4199 = vpow2.f32 %v3853_v46  ;;  %vm746_vm2 = vweird.f32 %v4198_v47 }
  0xb9   : > { %4201 = vrcp.f32 %v709_v48  ;;  %vm5024_vm4 = vmor %vm745_vm3, %vm746_vm2  ;;  %v764_v3 = vand.u32 2147483647, %v709_v48  ;;  %v766_v4 = vand.u32 2147483648, %v709_v48  ;;  %vm760_vm7 = vweird.f32 %v709_v48 }
  0xba   : > { %v742_v50 = vsub.f32 1.0, %v741_v49 }
  0xbb   : > { %v539_v51 = vpop.f32.mrf.mxu0  ;;  %v767_v15 = vor.u32 1.1754944e-38, %v766_v4  ;;  %vm765_vm9 = vcmp.eq.f32.partialorder %v764_v3, 8.507059e+37 }
  0xbc   : > { %v743_v52 = vmul.f32 %v4198_v47, %v742_v50  ;;  %v5016_v53 = vadd.f32 %v4997_v28, %v539_v51 }
  0xbe   : > { %v4200_v54 = vpop.eup %4199  ;;  %v3854_v55 = vmul.f32 -1.442695, %v5016_v53  ;;  %v744_v60 = vadd.f32 %v4198_v47, %v743_v52 }
  0xbf   : > { %v4202_v56 = vpop.eup %4201  ;;  %v5019_v57 = vadd.f32 1.0, %v4200_v54 }
  0xc0   : > { %v756_v61 = vmul.f32 %v4202_v56, %v709_v48  ;;  %4203 = vpow2.f32 %v3854_v55  ;;  %v748_v6 = vsel %vm5024_vm4, %v4198_v47, %v744_v60  ;;  %vm761_vm5 = vweird.f32 %v4202_v56 }
  0xc1   : > { %4205 = vrcp.f32 %v5019_v57  ;;  %v753_v14 = vsel %vm750_vm6, %v752_v9, %v748_v6  ;;  %vm762_vm8 = vmor %vm760_vm7, %vm761_vm5  ;;  %vm775_vm12 = vweird.f32 %v5019_v57  ;;  %v779_v37 = vand.u32 2147483647, %v5019_v57  ;;  %v442_v9 = vld [vmem:[%s4963_s24 + $0xc8] sm:$0xff] }
  0xc2   : > { %v757_v0 = vsub.f32 1.0, %v756_v61  ;;  %v1220_v20 = vmul.f32 %v753_v14, %v5000_v31  ;;  %v440_v31 = vld [vmem:[%s4963_s24 + $0xb8] sm:$0xff] }
  0xc3   : > { %v542_v5 = vpop.f32.mrf.mxu0  ;;  %v460_v39 = vpack.c.bf16 %v440_v31, %v439_v33  ;;  %vm780_vm15 = vcmp.eq.f32.partialorder %v779_v37, 8.507059e+37 }
  0xc4   : > { %v758_v7 = vmul.f32 %v4202_v56, %v757_v0  ;;  %v5031_v8 = vadd.f32 %v4997_v28, %v542_v5 }
  0xc6   : > { %v4204_v10 = vpop.eup %4203  ;;  %v759_v11 = vadd.f32 %v4202_v56, %v758_v7  ;;  %v3855_v12 = vmul.f32 -1.442695, %v5031_v8  ;;  %3845 = vmatmul.msk.bf16.gmra.mxu0 %vm470_vm1, %v459_v1  ;;  %v441_v7 = vld [vmem:[%s4963_s24 + $0xc0] sm:$0xff] }
  0xc7   : > { %v4206_v13 = vpop.eup %4205  ;;  %v711_v16 = vadd.f32 1.0, %v4204_v10 }
  0xc8   : > { %v763_v17 = vsel %vm762_vm8, %v4202_v56, %v759_v11  ;;  %v771_v18 = vmul.f32 %v4206_v13, %v5019_v57  ;;  %4207 = vpow2.f32 %v3855_v12  ;;  %vm776_vm11 = vweird.f32 %v4206_v13 }
  0xc9   : > { %v768_v19 = vsel %vm765_vm9, %v767_v15, %v763_v17  ;;  %4209 = vrcp.f32 %v711_v16  ;;  %vm5051_vm13 = vmor %vm775_vm12, %vm776_vm11  ;;  %v794_v41 = vand.u32 2147483647, %v711_v16  ;;  %v796_v42 = vand.u32 2147483648, %v711_v16 }
  0xca   : > { %v1221_v21 = vmul.f32 %v768_v19, %v5005_v36  ;;  %v772_v22 = vsub.f32 1.0, %v771_v18  ;;  %v781_v36 = vand.u32 2147483648, %v5019_v57  ;;  %vm790_vm0 = vweird.f32 %v711_v16 }
  0xcb   : > { %v544_v23 = vpop.f32.mrf.mxu0  ;;  %v797_v55 = vor.u32 1.1754944e-38, %v796_v42  ;;  %vm795_vm3 = vcmp.eq.f32.partialorder %v794_v41, 8.507059e+37 }
  0xcc   : > { %v773_v24 = vmul.f32 %v4206_v13, %v772_v22  ;;  %v5039_v25 = vadd.f32 %v4997_v28, %v544_v23  ;;  %v1252_v26 = vpack.c.bf16 %v1221_v21, %v1220_v20  ;;  %v782_v48 = vor.u32 1.1754944e-38, %v781_v36 }
  0xce   : > { %v4208_v27 = vpop.eup %4207  ;;  %v3856_v29 = vmul.f32 -1.442695, %v5039_v25  ;;  %3891 = vmatmul.msk.bf16.vlgmr.msra.gmra.mxu1 %vm1288_vm10, %v1252_v26  ;;  %v774_v34 = vadd.f32 %v4206_v13, %v773_v24 }
  0xcf   : > { %v4210_v30 = vpop.eup %4209  ;;  %v5043_v32 = vadd.f32 1.0, %v4208_v27 }
  0xd0   : > { %v786_v35 = vmul.f32 %v4210_v30, %v711_v16  ;;  %4211 = vpow2.f32 %v3856_v29  ;;  %v778_v45 = vsel %vm5051_vm13, %v4206_v13, %v774_v34  ;;  %vm791_vm14 = vweird.f32 %v4210_v30 }
  0xd1   : > { %4213 = vrcp.f32 %v5043_v32  ;;  %v783_v54 = vsel %vm780_vm15, %v782_v48, %v778_v45  ;;  %vm792_vm2 = vmor %vm790_vm0, %vm791_vm14  ;;  %v811_v10 = vand.u32 2147483648, %v5043_v32  ;;  %vm805_vm5 = vweird.f32 %v5043_v32  ;;  %v444_v48 = vld [vmem:[%s4963_s24 + $0xd8] sm:$0xff] }
  0xd2   : > { %v787_v38 = vsub.f32 1.0, %v786_v35  ;;  %v1222_v60 = vmul.f32 %v783_v54, %v5011_v44  ;;  %v809_v11 = vand.u32 2147483647, %v5043_v32  ;;  %v461_v13 = vpack.c.bf16 %v442_v9, %v441_v7 }
  0xd3   : > { %v547_v43 = vpop.f32.mrf.mxu0  ;;  %v812_v21 = vor.u32 1.1754944e-38, %v811_v10 }
  0xd4   : > { %v788_v46 = vmul.f32 %v4210_v30, %v787_v38  ;;  %v5058_v47 = vadd.f32 %v4997_v28, %v547_v43  ;;  %vm810_vm8 = vcmp.eq.f32.partialorder %v809_v11, 8.507059e+37 }
  0xd6   : > { %v4212_v49 = vpop.eup %4211  ;;  %v789_v50 = vadd.f32 %v4210_v30, %v788_v46  ;;  %v3857_v51 = vmul.f32 -1.442695, %v5058_v47  ;;  %3846 = vmatmul.msk.bf16.gmra.mxu0 %vm470_vm1, %v460_v39  ;;  %v443_v46 = vld [vmem:[%s4963_s24 + $0xd0] sm:$0xff] }
  0xd7   : > { %v4214_v52 = vpop.eup %4213  ;;  %v713_v56 = vadd.f32 1.0, %v4212_v49 }
  0xd8   : > { %v793_v57 = vsel %vm792_vm2, %v4210_v30, %v789_v50  ;;  %v801_v58 = vmul.f32 %v4214_v52, %v5043_v32  ;;  %4215 = vpow2.f32 %v3857_v51  ;;  %vm806_vm4 = vweird.f32 %v4214_v52 }
  0xd9   : > { %v798_v59 = vsel %vm795_vm3, %v797_v55, %v793_v57  ;;  %4217 = vrcp.f32 %v713_v56  ;;  %vm5078_vm6 = vmor %vm805_vm5, %vm806_vm4  ;;  %v824_v15 = vand.u32 2147483647, %v713_v56  ;;  %v826_v16 = vand.u32 2147483648, %v713_v56 }
  0xda   : > { %v1223_v61 = vmul.f32 %v798_v59, %v5016_v53  ;;  %v802_v62 = vsub.f32 1.0, %v801_v58  ;;  %vm820_vm9 = vweird.f32 %v713_v56 }
  0xdb   : > { %v549_v63 = vpop.f32.mrf.mxu0  ;;  %v827_v29 = vor.u32 1.1754944e-38, %v826_v16  ;;  %vm825_vm12 = vcmp.eq.f32.partialorder %v824_v15, 8.507059e+37 }
  0xdc   : > { %v803_v0 = vmul.f32 %v4214_v52, %v802_v62  ;;  %v5066_v1 = vadd.f32 %v4997_v28, %v549_v63  ;;  %v1253_v2 = vpack.c.bf16 %v1223_v61, %v1222_v60 }
  0xde   : > { %v4216_v3 = vpop.eup %4215  ;;  %v3858_v4 = vmul.f32 -1.442695, %v5066_v1  ;;  %3892 = vmatmul.msk.bf16.gmra.mxu1 %vm1288_vm10, %v1253_v2  ;;  %v804_v44 = vadd.f32 %v4214_v52, %v803_v0 }
  0xdf   : > { %v4218_v5 = vpop.eup %4217  ;;  %v5070_v6 = vadd.f32 1.0, %v4216_v3 }
  0xe0   : > { %v816_v53 = vmul.f32 %v4218_v5, %v713_v56  ;;  %4219 = vpow2.f32 %v3858_v4  ;;  %v808_v18 = vsel %vm5078_vm6, %v4214_v52, %v804_v44  ;;  %vm821_vm7 = vweird.f32 %v4218_v5 }
  0xe1   : > { %4221 = vrcp.f32 %v5070_v6  ;;  %v813_v27 = vsel %vm810_vm8, %v812_v21, %v808_v18  ;;  %vm822_vm11 = vmor %vm820_vm9, %vm821_vm7  ;;  %v841_v49 = vand.u32 2147483648, %v5070_v6  ;;  %vm835_vm14 = vweird.f32 %v5070_v6  ;;  %v446_v21 = vld [vmem:[%s4963_s24 + $0xe8] sm:$0xff] }
  0xe2   : > { %v817_v12 = vsub.f32 1.0, %v816_v53  ;;  %v1224_v34 = vmul.f32 %v813_v27, %v5031_v8  ;;  %v839_v50 = vand.u32 2147483647, %v5070_v6  ;;  %v462_v52 = vpack.c.bf16 %v444_v48, %v443_v46 }
  0xe3   : > { %v552_v17 = vpop.f32.mrf.mxu0  ;;  %v842_v61 = vor.u32 1.1754944e-38, %v841_v49 }
  0xe4   : > { %v818_v19 = vmul.f32 %v4218_v5, %v817_v12  ;;  %v5085_v20 = vadd.f32 %v4997_v28, %v552_v17  ;;  %vm840_vm2 = vcmp.eq.f32.partialorder %v839_v50, 8.507059e+37 }
  0xe6   : > { %v4220_v22 = vpop.eup %4219  ;;  %v819_v23 = vadd.f32 %v4218_v5, %v818_v19  ;;  %v3859_v24 = vmul.f32 -1.442695, %v5085_v20  ;;  %3847 = vmatmul.msk.bf16.gmra.mxu0 %vm470_vm1, %v461_v13  ;;  %v445_v19 = vld [vmem:[%s4963_s24 + $0xe0] sm:$0xff] }
  0xe7   : > { %v4222_v26 = vpop.eup %4221  ;;  %v715_v30 = vadd.f32 1.0, %v4220_v22 }
  0xe8   : > { %v823_v32 = vsel %vm822_vm11, %v4218_v5, %v819_v23  ;;  %v831_v33 = vmul.f32 %v4222_v26, %v5070_v6  ;;  %4223 = vpow2.f32 %v3859_v24  ;;  %vm836_vm13 = vweird.f32 %v4222_v26 }
  0xe9   : > { %v828_v31 = vsel %vm825_vm12, %v827_v29, %v823_v32  ;;  %4225 = vrcp.f32 %v715_v30  ;;  %vm5105_vm15 = vmor %vm835_vm14, %vm836_vm13  ;;  %v854_v55 = vand.u32 2147483647, %v715_v30  ;;  %v856_v56 = vand.u32 2147483648, %v715_v30 }
  0xea   : > { %v1225_v35 = vmul.f32 %v828_v31, %v5039_v25  ;;  %v832_v36 = vsub.f32 1.0, %v831_v33  ;;  %vm850_vm3 = vweird.f32 %v715_v30 }
  0xeb   : > { %v554_v37 = vpop.f32.mrf.mxu0  ;;  %v857_v4 = vor.u32 1.1754944e-38, %v856_v56  ;;  %vm855_vm5 = vcmp.eq.f32.partialorder %v854_v55, 8.507059e+37 }
  0xec   : > { %v833_v38 = vmul.f32 %v4222_v26, %v832_v36  ;;  %v5093_v39 = vadd.f32 %v4997_v28, %v554_v37  ;;  %v1254_v40 = vpack.c.bf16 %v1225_v35, %v1224_v34 }
  0xee   : > { %v4224_v41 = vpop.eup %4223  ;;  %v3860_v42 = vmul.f32 -1.442695, %v5093_v39  ;;  %3893 = vmatmul.msk.bf16.gmra.mxu1 %vm1288_vm10, %v1254_v40  ;;  %v834_v8 = vadd.f32 %v4222_v26, %v833_v38 }
  0xef   : > { %v4226_v43 = vpop.eup %4225  ;;  %v5097_v45 = vadd.f32 1.0, %v4224_v41 }
  0xf0   : > { %v846_v25 = vmul.f32 %v4226_v43, %v715_v30  ;;  %4227 = vpow2.f32 %v3860_v42  ;;  %v838_v58 = vsel %vm5105_vm15, %v4222_v26, %v834_v8  ;;  %vm851_vm0 = vweird.f32 %v4226_v43 }
  0xf1   : > { %4229 = vrcp.f32 %v5097_v45  ;;  %v843_v3 = vsel %vm840_vm2, %v842_v61, %v838_v58  ;;  %vm852_vm4 = vmor %vm850_vm3, %vm851_vm0  ;;  %v871_v22 = vand.u32 2147483648, %v5097_v45  ;;  %vm865_vm7 = vweird.f32 %v5097_v45  ;;  %v448_v61 = vld [vmem:[%s4963_s24 + $0xf8] sm:$0xff] }
  0xf2   : > { %v847_v51 = vsub.f32 1.0, %v846_v25  ;;  %v1226_v44 = vmul.f32 %v843_v3, %v5058_v47  ;;  %v869_v23 = vand.u32 2147483647, %v5097_v45  ;;  %v463_v26 = vpack.c.bf16 %v446_v21, %v445_v19 }
  0xf3   : > { %v557_v57 = vpop.f32.mrf.mxu0  ;;  %v872_v35 = vor.u32 1.1754944e-38, %v871_v22 }
  0xf4   : > { %v848_v59 = vmul.f32 %v4226_v43, %v847_v51  ;;  %v5112_v60 = vadd.f32 %v4997_v28, %v557_v57  ;;  %vm870_vm11 = vcmp.eq.f32.partialorder %v869_v23, 8.507059e+37 }
  0xf6   : > { %v4228_v62 = vpop.eup %4227  ;;  %v849_v63 = vadd.f32 %v4226_v43, %v848_v59  ;;  %v3861_v0 = vmul.f32 -1.442695, %v5112_v60  ;;  %3848 = vmatmul.msk.bf16.gmra.mxu0 %vm470_vm1, %v462_v52  ;;  %v447_v59 = vld [vmem:[%s4963_s24 + $0xf0] sm:$0xff] }
  0xf7   : > { %v4230_v2 = vpop.eup %4229  ;;  %v717_v5 = vadd.f32 1.0, %v4228_v62 }
  0xf8   : > { %v853_v6 = vsel %vm852_vm4, %v4226_v43, %v849_v63  ;;  %v861_v7 = vmul.f32 %v4230_v2, %v5097_v45  ;;  %4231 = vpow2.f32 %v3861_v0  ;;  %vm866_vm6 = vweird.f32 %v4230_v2 }
  0xf9   : > { %v858_v9 = vsel %vm855_vm5, %v857_v4, %v853_v6  ;;  %4233 = vrcp.f32 %v717_v5  ;;  %vm5132_vm8 = vmor %vm865_vm7, %vm866_vm6  ;;  %v884_v29 = vand.u32 2147483647, %v717_v5  ;;  %v886_v30 = vand.u32 2147483648, %v717_v5 }
  0xfa   : > { %v1227_v53 = vmul.f32 %v858_v9, %v5066_v1  ;;  %v862_v10 = vsub.f32 1.0, %v861_v7  ;;  %vm880_vm12 = vweird.f32 %v717_v5 }
  0xfb   : > { %v559_v11 = vpop.f32.mrf.mxu0  ;;  %v887_v42 = vor.u32 1.1754944e-38, %v886_v30  ;;  %vm885_vm14 = vcmp.eq.f32.partialorder %v884_v29, 8.507059e+37 }
  0xfc   : > { %v863_v12 = vmul.f32 %v4230_v2, %v862_v10  ;;  %v5120_v13 = vadd.f32 %v4997_v28, %v559_v11  ;;  %v1255_v14 = vpack.c.bf16 %v1227_v53, %v1226_v44 }
  0xfe   : > { %v4232_v15 = vpop.eup %4231  ;;  %v3862_v16 = vmul.f32 -1.442695, %v5120_v13  ;;  %3894 = vmatmul.msk.bf16.gmra.mxu1 %vm1288_vm10, %v1255_v14  ;;  %v864_v47 = vadd.f32 %v4230_v2, %v863_v12 }
  0xff   : > { %v4234_v17 = vpop.eup %4233  ;;  %v5124_v18 = vadd.f32 1.0, %v4232_v15 }
 0x100   : > { %v876_v1 = vmul.f32 %v4234_v17, %v717_v5  ;;  %4235 = vpow2.f32 %v3862_v16  ;;  %v868_v33 = vsel %vm5132_vm8, %v4230_v2, %v864_v47  ;;  %vm881_vm9 = vweird.f32 %v4234_v17 }
 0x101   : > { %4237 = vrcp.f32 %v5124_v18  ;;  %v873_v41 = vsel %vm870_vm11, %v872_v35, %v868_v33  ;;  %vm882_vm13 = vmor %vm880_vm12, %vm881_vm9  ;;  %v901_v62 = vand.u32 2147483648, %v5124_v18  ;;  %vm895_vm0 = vweird.f32 %v5124_v18 }
 0x102   : > { %v877_v24 = vsub.f32 1.0, %v876_v1  ;;  %v1228_v8 = vmul.f32 %v873_v41, %v5085_v20  ;;  %v899_v63 = vand.u32 2147483647, %v5124_v18  ;;  %v464_v2 = vpack.c.bf16 %v448_v61, %v447_v59 }
 0x103   : > { %v562_v32 = vpop.f32.mrf.mxu0  ;;  %v902_v53 = vor.u32 1.1754944e-38, %v901_v62 }
 0x104   : > { %v878_v31 = vmul.f32 %v4234_v17, %v877_v24  ;;  %v5139_v34 = vadd.f32 %v4997_v28, %v562_v32  ;;  %vm900_vm4 = vcmp.eq.f32.partialorder %v899_v63, 8.507059e+37 }
 0x106   : > { %v4236_v36 = vpop.eup %4235  ;;  %v879_v37 = vadd.f32 %v4234_v17, %v878_v31  ;;  %v3863_v38 = vmul.f32 -1.442695, %v5139_v34  ;;  %3849 = vmatmul.msk.bf16.gmra.mxu0 %vm470_vm1, %v463_v26 }
 0x107   : > { %v4238_v40 = vpop.eup %4237  ;;  %v719_v43 = vadd.f32 1.0, %v4236_v36 }
 0x108   : > { %v883_v45 = vsel %vm882_vm13, %v4234_v17, %v879_v37  ;;  %v891_v46 = vmul.f32 %v4238_v40, %v5124_v18  ;;  %4239 = vpow2.f32 %v3863_v38  ;;  %vm896_vm15 = vweird.f32 %v4238_v40 }
 0x109   : > { %v888_v48 = vsel %vm885_vm14, %v887_v42, %v883_v45  ;;  %4241 = vrcp.f32 %v719_v43  ;;  %vm5159_vm2 = vmor %vm895_vm0, %vm896_vm15  ;;  %v914_v4 = vand.u32 2147483647, %v719_v43  ;;  %v916_v5 = vand.u32 2147483648, %v719_v43 }
 0x10a   : > { %v1229_v25 = vmul.f32 %v888_v48, %v5093_v39  ;;  %v892_v49 = vsub.f32 1.0, %v891_v46  ;;  %vm910_vm5 = vweird.f32 %v719_v43 }
 0x10b   : > { %v564_v50 = vpop.f32.mrf.mxu0  ;;  %v917_v16 = vor.u32 1.1754944e-38, %v916_v5  ;;  %vm915_vm7 = vcmp.eq.f32.partialorder %v914_v4, 8.507059e+37 }
 0x10c   : > { %v893_v51 = vmul.f32 %v4238_v40, %v892_v49  ;;  %v5147_v52 = vadd.f32 %v4997_v28, %v564_v50  ;;  %v1256_v54 = vpack.c.bf16 %v1229_v25, %v1228_v8 }
 0x10e   : > { %v4240_v55 = vpop.eup %4239  ;;  %v3864_v56 = vmul.f32 -1.442695, %v5147_v52  ;;  %3895 = vmatmul.msk.bf16.gmra.mxu1 %vm1288_vm10, %v1256_v54  ;;  %v894_v20 = vadd.f32 %v4238_v40, %v893_v51 }
 0x10f   : > { %v4242_v57 = vpop.eup %4241  ;;  %v5151_v58 = vadd.f32 1.0, %v4240_v55 }
 0x110   : > { %v906_v39 = vmul.f32 %v4242_v57, %v719_v43  ;;  %4243 = vpow2.f32 %v3864_v56  ;;  %v898_v7 = vsel %vm5159_vm2, %v4238_v40, %v894_v20  ;;  %vm911_vm3 = vweird.f32 %v4242_v57 }
 0x111   : > { %4245 = vrcp.f32 %v5151_v58  ;;  %v903_v15 = vsel %vm900_vm4, %v902_v53, %v898_v7  ;;  %vm912_vm6 = vmor %vm910_vm5, %vm911_vm3  ;;  %vm925_vm8 = vweird.f32 %v5151_v58  ;;  %v929_v35 = vand.u32 2147483647, %v5151_v58 }
 0x112   : > { %v907_v0 = vsub.f32 1.0, %v906_v39  ;;  %v1230_v47 = vmul.f32 %v903_v15, %v5112_v60 }
 0x113   : > { %v567_v6 = vpop.f32.mrf.mxu0  ;;  %vm930_vm12 = vcmp.eq.f32.partialorder %v929_v35, 8.507059e+37 }
 0x114   : > { %v908_v9 = vmul.f32 %v4242_v57, %v907_v0  ;;  %v5166_v44 = vadd.f32 %v4997_v28, %v567_v6 }
 0x116   : > { %v4244_v10 = vpop.eup %4243  ;;  %v909_v11 = vadd.f32 %v4242_v57, %v908_v9  ;;  %v3865_v12 = vmul.f32 -1.442695, %v5166_v44  ;;  %3850 = vmatmul.msk.bf16.gmra.mxu0 %vm470_vm1, %v464_v2 }
 0x117   : > { %v4246_v14 = vpop.eup %4245  ;;  %v721_v17 = vadd.f32 1.0, %v4244_v10 }
 0x118   : > { %v913_v18 = vsel %vm912_vm6, %v4242_v57, %v909_v11  ;;  %v921_v19 = vmul.f32 %v4246_v14, %v5151_v58  ;;  %4247 = vpow2.f32 %v3865_v12  ;;  %vm926_vm1 = vweird.f32 %v4246_v14 }
 0x119   : > { %v918_v21 = vsel %vm915_vm7, %v917_v16, %v913_v18  ;;  %4249 = vrcp.f32 %v721_v17  ;;  %vm5184_vm9 = vmor %vm925_vm8, %vm926_vm1  ;;  %v944_v38 = vand.u32 2147483647, %v721_v17  ;;  %v946_v40 = vand.u32 2147483648, %v721_v17 }
 0x11a   : > { %v1231_v1 = vmul.f32 %v918_v21, %v5120_v13  ;;  %v922_v22 = vsub.f32 1.0, %v921_v19  ;;  %v931_v13 = vand.u32 2147483648, %v5151_v58  ;;  %vm940_vm13 = vweird.f32 %v721_v17 }
 0x11b   : > { %v569_v23 = vpop.f32.mrf.mxu0  ;;  %v947_v51 = vor.u32 1.1754944e-38, %v946_v40  ;;  %vm945_vm15 = vcmp.eq.f32.partialorder %v944_v38, 8.507059e+37 }
 0x11c   : > { %v923_v24 = vmul.f32 %v4246_v14, %v922_v22  ;;  %v5174_v26 = vadd.f32 %v4997_v28, %v569_v23  ;;  %v1257_v27 = vpack.c.bf16 %v1231_v1, %v1230_v47  ;;  %v932_v46 = vor.u32 1.1754944e-38, %v931_v13 }
 0x11e   : > { %v4248_v29 = vpop.eup %4247  ;;  %v3866_v30 = vmul.f32 -1.442695, %v5174_v26  ;;  %3896 = vmatmul.msk.bf16.gmra.mxu1 %vm1288_vm10, %v1257_v27  ;;  %v924_v31 = vadd.f32 %v4246_v14, %v923_v24 }
 0x11f   : > { %v4250_v32 = vpop.eup %4249  ;;  %v5178_v33 = vadd.f32 1.0, %v4248_v29 }
 0x120   : > { %v936_v60 = vmul.f32 %v4250_v32, %v721_v17  ;;  %4251 = vpow2.f32 %v3866_v30  ;;  %v928_v42 = vsel %vm5184_vm9, %v4246_v14, %v924_v31  ;;  %vm941_vm11 = vweird.f32 %v4250_v32 }
 0x121   : > { %4253 = vrcp.f32 %v5178_v33  ;;  %v933_v50 = vsel %vm930_vm12, %v932_v46, %v928_v42  ;;  %vm942_vm14 = vmor %vm940_vm13, %vm941_vm11  ;;  %vm955_vm2 = vweird.f32 %v5178_v33  ;;  %v959_v6 = vand.u32 2147483647, %v5178_v33 }
 0x122   : > { %v937_v36 = vsub.f32 1.0, %v936_v60  ;;  %v1232_v58 = vmul.f32 %v933_v50, %v5139_v34 }
 0x123   : > { %v572_v41 = vpop.f32.mrf.mxu0  ;;  %vm960_vm5 = vcmp.eq.f32.partialorder %v959_v6, 8.507059e+37 }
 0x124   : > { %v938_v43 = vmul.f32 %v4250_v32, %v937_v36  ;;  %v5191_v45 = vadd.f32 %v4997_v28, %v572_v41 }
 0x126   : > { %v4252_v48 = vpop.eup %4251  ;;  %v939_v8 = vadd.f32 %v4250_v32, %v938_v43  ;;  %v3867_v25 = vmul.f32 -1.442695, %v5191_v45 }
 0x127   : > { %v4254_v49 = vpop.eup %4253  ;;  %v723_v54 = vadd.f32 1.0, %v4252_v48 }
 0x128   : > { %v943_v55 = vsel %vm942_vm14, %v4250_v32, %v939_v8  ;;  %v951_v56 = vmul.f32 %v4254_v49, %v5178_v33  ;;  %4255 = vpow2.f32 %v3867_v25  ;;  %vm956_vm0 = vweird.f32 %v4254_v49 }
 0x129   : > { %v948_v57 = vsel %vm945_vm15, %v947_v51, %v943_v55  ;;  %4257 = vrcp.f32 %v723_v54  ;;  %vm5208_vm3 = vmor %vm955_vm2, %vm956_vm0  ;;  %v974_v53 = vand.u32 2147483647, %v723_v54  ;;  %v976_v10 = vand.u32 2147483648, %v723_v54 }
 0x12a   : > { %v1233_v59 = vmul.f32 %v948_v57, %v5147_v52  ;;  %v952_v61 = vsub.f32 1.0, %v951_v56  ;;  %v961_v52 = vand.u32 2147483648, %v5178_v33  ;;  %vm970_vm6 = vweird.f32 %v723_v54 }
 0x12b   : > { %v574_v20 = vpop.f32.mrf.mxu0  ;;  %v977_v1 = vor.u32 1.1754944e-38, %v976_v10  ;;  %vm975_vm1 = vcmp.eq.f32.partialorder %v974_v53, 8.507059e+37 }
 0x12c   : > { %v953_v39 = vmul.f32 %v4254_v49, %v952_v61  ;;  %v5198_v62 = vadd.f32 %v4997_v28, %v574_v20  ;;  %v1258_v63 = vpack.c.bf16 %v1233_v59, %v1232_v58  ;;  %v962_v16 = vor.u32 1.1754944e-38, %v961_v52 }
 0x12e   : > { %v4256_v0 = vpop.eup %4255  ;;  %v3868_v2 = vmul.f32 -1.442695, %v5198_v62  ;;  %3897 = vmatmul.msk.bf16.gmra.mxu1 %vm1288_vm10, %v1258_v63  ;;  %v954_v5 = vadd.f32 %v4254_v49, %v953_v39  ;;  %v5249_v63 = vld [vmem:[%s7099_s4] ss:$0 sm:$0xff] }
 0x12f   : > { %v4258_v3 = vpop.eup %4257  ;;  %v5202_v4 = vadd.f32 1.0, %v4256_v0 }
 0x130   : > { %v966_v34 = vmul.f32 %v4258_v3, %v723_v54  ;;  %4259 = vpow2.f32 %v3868_v2  ;;  %v958_v12 = vsel %vm5208_vm3, %v4254_v49, %v954_v5  ;;  %vm971_vm4 = vweird.f32 %v4258_v3 }
 0x131   : > { %4261 = vrcp.f32 %v5202_v4  ;;  %v963_v47 = vsel %vm960_vm5, %v962_v16, %v958_v12  ;;  %vm972_vm7 = vmor %vm970_vm6, %vm971_vm4  ;;  %vm985_vm9 = vweird.f32 %v5202_v4  ;;  %v989_v42 = vand.u32 2147483647, %v5202_v4 }
 0x132   : > { %v967_v7 = vsub.f32 1.0, %v966_v34  ;;  %v1234_v29 = vmul.f32 %v963_v47, %v5166_v44 }
 0x133   : > { %v577_v11 = vpop.f32.mrf.mxu0  ;;  %vm990_vm14 = vcmp.eq.f32.partialorder %v989_v42, 8.507059e+37 }
 0x134   : > { %v968_v14 = vmul.f32 %v4258_v3, %v967_v7  ;;  %v5215_v15 = vadd.f32 %v4997_v28, %v577_v11 }
 0x136   : > { %v4260_v17 = vpop.eup %4259  ;;  %v969_v18 = vadd.f32 %v4258_v3, %v968_v14  ;;  %v3869_v19 = vmul.f32 -1.442695, %v5215_v15 }
 0x137   : > { %v4262_v21 = vpop.eup %4261  ;;  %v725_v22 = vadd.f32 1.0, %v4260_v17 }
 0x138   : > { %v973_v23 = vsel %vm972_vm7, %v4258_v3, %v969_v18  ;;  %v981_v24 = vmul.f32 %v4262_v21, %v5202_v4  ;;  %4263 = vpow2.f32 %v3869_v19  ;;  %vm986_vm8 = vweird.f32 %v4262_v21 }
 0x139   : > { %v978_v27 = vsel %vm975_vm1, %v977_v1, %v973_v23  ;;  %4265 = vrcp.f32 %v725_v22  ;;  %v1004_v43 = vand.u32 2147483647, %v725_v22  ;;  %v1006_v46 = vand.u32 2147483648, %v725_v22  ;;  %vm5232_vm11 = vmor %vm985_vm9, %vm986_vm8 }
 0x13a   : > { %v1235_v30 = vmul.f32 %v978_v27, %v5174_v26  ;;  %v982_v32 = vsub.f32 1.0, %v981_v24  ;;  %v991_v26 = vand.u32 2147483648, %v5202_v4  ;;  %vm1000_vm13 = vweird.f32 %v725_v22 }
 0x13b   : > { %v579_v33 = vpop.f32.mrf.mxu0  ;;  %vm1005_vm0 = vcmp.eq.f32.partialorder %v1004_v43, 8.507059e+37  ;;  %v1007_v58 = vor.u32 1.1754944e-38, %v1006_v46 }
 0x13c   : > { %v5222_v31 = vadd.f32 %v4997_v28, %v579_v33  ;;  %v1259_v60 = vpack.c.bf16 %v1235_v30, %v1234_v29  ;;  %v983_v13 = vmul.f32 %v4262_v21, %v982_v32  ;;  %v992_v54 = vor.u32 1.1754944e-38, %v991_v26 }
 0x13e   : > { %v4264_v35 = vpop.eup %4263  ;;  %v3870_v36 = vmul.f32 -1.442695, %v5222_v31  ;;  %3898 = vmatmul.msk.bf16.gmra.mxu1 %vm1288_vm10, %v1259_v60  ;;  %v984_v44 = vadd.f32 %v4262_v21, %v983_v13 }
 0x13f   : > { %v4266_v37 = vpop.eup %4265  ;;  %v5226_v38 = vadd.f32 1.0, %v4264_v35 }
 0x140   : > { %v996_v40 = vmul.f32 %v4266_v37, %v725_v22  ;;  %4267 = vpow2.f32 %v3870_v36  ;;  %vm1001_vm12 = vweird.f32 %v4266_v37  ;;  %v988_v50 = vsel %vm5232_vm11, %v4262_v21, %v984_v44 }
 0x141   : > { %4269 = vrcp.f32 %v5226_v38  ;;  %vm1002_vm15 = vmor %vm1000_vm13, %vm1001_vm12  ;;  %v993_v61 = vsel %vm990_vm14, %v992_v54, %v988_v50  ;;  %v1019_v14 = vand.u32 2147483647, %v5226_v38  ;;  %vm1015_vm3 = vweird.f32 %v5226_v38  ;;  %v5308_v54 = vld [vmem:[%s7097_s2] ss:$0 sm:$0xff] }
 0x142   : > { %v997_v41 = vsub.f32 1.0, %v996_v40  ;;  %v1236_v4 = vmul.f32 %v993_v61, %v5191_v45  ;;  %v1021_v18 = vand.u32 2147483648, %v5226_v38 }
 0x143   : > { %v582_v48 = vpop.f32.mrf.mxu0  ;;  %vm5281_vm6 = vcmp.eq.f32.partialorder %v1019_v14, 8.507059e+37 }
 0x144   : > { %v998_v25 = vmul.f32 %v4266_v37, %v997_v41  ;;  %v5237_v49 = vadd.f32 %v4997_v28, %v582_v48  ;;  %v1022_v13 = vor.u32 1.1754944e-38, %v1021_v18  ;;  %v4102_v48 = vld [vmem:[#allocation4 + $0x8] sm:$0xff] }
 0x145   : > { %2156 = vmatpush.bf16.msra.mxu2 %v4102_v48 }
 0x146   : > { %v4268_v51 = vpop.eup %4267  ;;  %v999_v55 = vadd.f32 %v4266_v37, %v998_v25  ;;  %v3871_v56 = vmul.f32 -1.442695, %v5237_v49 }
 0x147   : > { %v5242_v57 = vpop.eup %4269  ;;  %v727_v59 = vadd.f32 1.0, %v4268_v51 }
 0x148   : > { %v1003_v20 = vsel %vm1002_vm15, %v4266_v37, %v999_v55  ;;  %v1011_v39 = vmul.f32 %v5242_v57, %v5226_v38  ;;  %4271 = vpow2.f32 %v3871_v56  ;;  %vm1016_vm2 = vweird.f32 %v5242_v57 }
 0x149   : > { %v1008_v0 = vsel %vm1005_vm0, %v1007_v58, %v1003_v20  ;;  %4273 = vrcp.f32 %v727_v59  ;;  %v1034_v19 = vand.u32 2147483647, %v727_v59  ;;  %v1036_v21 = vand.u32 2147483648, %v727_v59  ;;  %vm5277_vm5 = vmor %vm1015_vm3, %vm1016_vm2  ;;  %v4101_v58 = vld [vmem:[#allocation4] sm:$0xff] }
 0x14a   : > { %v1237_v2 = vmul.f32 %v1008_v0, %v5198_v62  ;;  %v1012_v3 = vsub.f32 1.0, %v1011_v39  ;;  %vm1030_vm7 = vweird.f32 %v727_v59  ;;  %2157 = vmatpush.bf16.msra.mxu2 %v4101_v58 }
 0x14b   : > { %v584_v5 = vpop.f32.mrf.mxu0  ;;  %v1346_v34 = vpop.f32.mrf.mxu1  ;;  %v1037_v35 = vor.u32 1.1754944e-38, %v1036_v21  ;;  %vm1035_vm8 = vcmp.eq.f32.partialorder %v1034_v19, 8.507059e+37 }
 0x14c   : > { %v5254_v52 = vadd.f32 %v4997_v28, %v584_v5  ;;  %v5257_v6 = vadd.f32 %v5249_v63, %v1346_v34  ;;  %v1260_v7 = vpack.c.bf16 %v1237_v2, %v1236_v4  ;;  %v1013_v53 = vmul.f32 %v5242_v57, %v1012_v3 }
 0x14e   : > { %v4272_v9 = vpop.eup %4271  ;;  %v3872_v10 = vmul.f32 -1.442695, %v5254_v52  ;;  %v3907_v11 = vmul.f32 -1.442695, %v5257_v6  ;;  %3899 = vmatmul.msk.bf16.gmra.mxu1 %vm1288_vm10, %v1260_v7  ;;  %v1014_v16 = vadd.f32 %v5242_v57, %v1013_v53 }
 0x14f   : > { %v4274_v62 = vpop.eup %4273  ;;  %v5262_v12 = vadd.f32 1.0, %v4272_v9 }
 0x150   : > { %v1026_v45 = vmul.f32 %v4274_v62, %v727_v59  ;;  %4275 = vpow2.f32 %v3872_v10  ;;  %vm1031_vm4 = vweird.f32 %v4274_v62  ;;  %v1018_v32 = vsel %vm5277_vm5, %v5242_v57, %v1014_v16 }
 0x151   : > { %4277 = vrcp.f32 %v5262_v12  ;;  %vm1032_vm1 = vmor %vm1030_vm7, %vm1031_vm4  ;;  %v1023_v26 = vsel %vm5281_vm6, %v1022_v13, %v1018_v32  ;;  %v1049_v59 = vand.u32 2147483647, %v5262_v12  ;;  %v1051_v61 = vand.u32 2147483648, %v5262_v12 }
 0x152   : > { %v1027_v17 = vsub.f32 1.0, %v1026_v45  ;;  %4279 = vpow2.f32 %v3907_v11  ;;  %v1238_v50 = vmul.f32 %v1023_v26, %v5215_v15  ;;  %vm1045_vm11 = vweird.f32 %v5262_v12 }
 0x153   : > { %v587_v47 = vpop.f32.mrf.mxu0  ;;  %v1348_v1 = vpop.f32.mrf.mxu1  ;;  %vm5334_vm12 = vcmp.eq.f32.partialorder %v1049_v59, 8.507059e+37  ;;  %v1052_v11 = vor.u32 1.1754944e-38, %v1051_v61 }
 0x154   : > { %v1028_v22 = vmul.f32 %v4274_v62, %v1027_v17  ;;  %v5272_v23 = vadd.f32 %v4997_v28, %v587_v47  ;;  %v5275_v24 = vadd.f32 %v5249_v63, %v1348_v1 }
 0x156   : > { %v4276_v30 = vpop.eup %4275  ;;  %v1029_v33 = vadd.f32 %v4274_v62, %v1028_v22  ;;  %v3873_v28 = vmul.f32 -1.442695, %v5272_v23  ;;  %v3908_v37 = vmul.f32 -1.442695, %v5275_v24 }
 0x157   : > { %v5289_v60 = vpop.eup %4277  ;;  %v5291_v36 = vadd.f32 1.0, %v4276_v30 }
 0x158   : > { %v4280_v38 = vpop.eup %4279  ;;  %v1033_v40 = vsel %vm1032_vm1, %v4274_v62, %v1029_v33  ;;  %v1041_v44 = vmul.f32 %v5289_v60, %v5262_v12  ;;  %4281 = vpow2.f32 %v3873_v28  ;;  %vm1046_vm9 = vweird.f32 %v5289_v60 }
 0x159   : > { %v1038_v41 = vsel %vm1035_vm8, %v1037_v35, %v1033_v40  ;;  %4283 = vrcp.f32 %v5291_v36  ;;  %v5300_v46 = vadd.f32 1.0, %v4280_v38  ;;  %v1064_v4 = vand.u32 2147483647, %v5291_v36  ;;  %vm5342_vm13 = vmor %vm1045_vm11, %vm1046_vm9 }
 0x15a   : > { %v1239_v42 = vmul.f32 %v1038_v41, %v5222_v31  ;;  %v1042_v43 = vsub.f32 1.0, %v1041_v44  ;;  %4285 = vpow2.f32 %v3908_v37  ;;  %v1066_v9 = vand.u32 2147483648, %v5291_v36 }
 0x15b   : > { %v589_v8 = vpop.f32.mrf.mxu0  ;;  %v1351_v25 = vpop.f32.mrf.mxu1  ;;  %4287 = vrcp.f32 %v5300_v46  ;;  %vm1060_vm14 = vweird.f32 %v5291_v36  ;;  %vm5351_vm0 = vcmp.eq.f32.partialorder %v1064_v4, 8.507059e+37  ;;  %vm1559_vm3 = vweird.f32 %v5300_v46 }
 0x15c   : > { %v1043_v51 = vmul.f32 %v5289_v60, %v1042_v43  ;;  %v5311_v31 = vadd.f32 %v5308_v54, %v589_v8  ;;  %v5314_v55 = vadd.f32 %v5249_v63, %v1351_v25  ;;  %v1261_v57 = vpack.c.bf16 %v1239_v42, %v1238_v50 }
 0x15d   : > { %v1067_v47 = vor.u32 1.1754944e-38, %v1066_v9  ;;  %v1563_v30 = vand.u32 2147483647, %v5300_v46  ;;  %v1565_v32 = vand.u32 2147483648, %v5300_v46 }
 0x15e   : > { %v4282_v56 = vpop.eup %4281  ;;  %v3874_v39 = vmul.f32 -1.442695, %v5311_v31  ;;  %3900 = vmatmul.msk.bf16.gmra.mxu1 %vm1288_vm10, %v1261_v57  ;;  %v1044_v3 = vadd.f32 %v5289_v60, %v1043_v51  ;;  %v3909_v5 = vmul.f32 -1.442695, %v5314_v55 }
 0x15f   : > { %v4284_v15 = vpop.eup %4283  ;;  %v5318_v20 = vadd.f32 1.0, %v4282_v56  ;;  %vm5383_vm5 = vcmp.eq.f32.partialorder %v1563_v30, 8.507059e+37  ;;  %v1566_v56 = vor.u32 1.1754944e-38, %v1565_v32 }
 0x160   : > { %v1056_v0 = vmul.f32 %v4284_v15, %v5291_v36  ;;  %v4286_v2 = vpop.eup %4285  ;;  %vm1061_vm15 = vweird.f32 %v4284_v15  ;;  %v1048_v17 = vsel %vm5342_vm13, %v5289_v60, %v1044_v3 }
 0x161   : > { %4289 = vrcp.f32 %v5318_v20  ;;  %v5328_v34 = vpop.eup %4287  ;;  %v5332_v53 = vadd.f32 1.0, %v4286_v2  ;;  %vm1062_vm2 = vmor %vm1060_vm14, %vm1061_vm15  ;;  %v1053_v33 = vsel %vm5334_vm12, %v1052_v11, %v1048_v17  ;;  %v1079_v37 = vand.u32 2147483647, %v5318_v20 }
 0x162   : > { %v1057_v7 = vsub.f32 1.0, %v1056_v0  ;;  %v1555_v62 = vmul.f32 %v5328_v34, %v5300_v46  ;;  %4291 = vpow2.f32 %v3874_v39  ;;  %v1081_v38 = vand.u32 2147483648, %v5318_v20 }
 0x163   : > { %v592_v45 = vpop.f32.mrf.mxu0  ;;  %v1353_v14 = vpop.f32.mrf.mxu1  ;;  %4293 = vrcp.f32 %v5332_v53  ;;  %vm1560_vm4 = vweird.f32 %v5328_v34  ;;  %v1240_v58 = vmul.f32 %v1053_v33, %v5237_v49  ;;  %vm1075_vm6 = vweird.f32 %v5318_v20 }
 0x164   : > { %v1058_v16 = vmul.f32 %v4284_v15, %v1057_v7  ;;  %v1556_v19 = vsub.f32 1.0, %v1555_v62  ;;  %4295 = vpow2.f32 %v3909_v5  ;;  %v5356_v1 = vadd.f32 %v5308_v54, %v592_v45  ;;  %vm5396_vm7 = vmor %vm1559_vm3, %vm1560_vm4 }
 0x165   : > { %v5359_v22 = vadd.f32 %v5249_v63, %v1353_v14  ;;  %vm5400_vm1 = vcmp.eq.f32.partialorder %v1079_v37, 8.507059e+37  ;;  %v1082_v39 = vor.u32 1.1754944e-38, %v1081_v38  ;;  %v1580_v49 = vand.u32 2147483648, %v5332_v53 }
 0x166   : > { %v1059_v21 = vadd.f32 %v4284_v15, %v1058_v16  ;;  %v1557_v29 = vmul.f32 %v5328_v34, %v1556_v19  ;;  %v3875_v13 = vmul.f32 -1.442695, %v5356_v1  ;;  %vm1574_vm11 = vweird.f32 %v5332_v53 }
 0x167   : > { %v5361_v27 = vpop.eup %4289  ;;  %v3910_v40 = vmul.f32 -1.442695, %v5359_v22  ;;  %v1581_v14 = vor.u32 1.1754944e-38, %v1580_v49 }
 0x168   : > { %v1063_v28 = vsel %vm1062_vm2, %v4284_v15, %v1059_v21  ;;  %v1071_v60 = vmul.f32 %v5361_v27, %v5318_v20  ;;  %v4292_v35 = vpop.eup %4291  ;;  %4297 = vpow2.f32 %v3875_v13  ;;  %v1558_v48 = vadd.f32 %v5328_v34, %v1557_v29 }
 0x169   : > { %v1068_v36 = vsel %vm5351_vm0, %v1067_v47, %v1063_v28  ;;  %v4294_v44 = vpop.eup %4293  ;;  %v5378_v41 = vadd.f32 1.0, %v4292_v35  ;;  %4299 = vpow2.f32 %v3910_v40  ;;  %v1578_v15 = vand.u32 2147483647, %v5332_v53 }
 0x16a   : > { %v1072_v26 = vsub.f32 1.0, %v1071_v60  ;;  %v4296_v42 = vpop.eup %4295  ;;  %v1241_v43 = vmul.f32 %v1068_v36, %v5254_v52  ;;  %v1570_v8 = vmul.f32 %v4294_v44, %v5332_v53  ;;  %v1562_v2 = vsel %vm5396_vm7, %v5328_v34, %v1558_v48 }
 0x16b   : > { %v594_v25 = vpop.f32.mrf.mxu0  ;;  %v1356_v50 = vpop.f32.mrf.mxu1  ;;  %4301 = vrcp.f32 %v5378_v41  ;;  %v5405_v0 = vadd.f32 1.0, %v4296_v42  ;;  %vm1575_vm8 = vweird.f32 %v4294_v44  ;;  %vm1076_vm9 = vweird.f32 %v5361_v27 }
 0x16c   : > { %v1073_v57 = vmul.f32 %v5361_v27, %v1072_v26  ;;  %v1571_v52 = vsub.f32 1.0, %v1570_v8  ;;  %v1262_v46 = vpack.c.bf16 %v1241_v43, %v1240_v58  ;;  %v5414_v7 = vadd.f32 %v5308_v54, %v594_v25  ;;  %vm1576_vm13 = vmor %vm1574_vm11, %vm1575_vm8 }
 0x16d   : > { %4303 = vrcp.f32 %v5405_v0  ;;  %vm5417_vm12 = vcmp.eq.f32.partialorder %v1578_v15, 8.507059e+37  ;;  %v1567_v45 = vsel %vm5383_vm5, %v1566_v56, %v1562_v2  ;;  %v1094_v12 = vand.u32 2147483647, %v5378_v41  ;;  %vm5434_vm14 = vmor %vm1075_vm6, %vm1076_vm9 }
 0x16e   : > { %v1572_v3 = vmul.f32 %v4294_v44, %v1571_v52  ;;  %v4298_v4 = vpop.eup %4297  ;;  %v1074_v5 = vadd.f32 %v5361_v27, %v1073_v57  ;;  %3901 = vmatmul.msk.bf16.gmra.mxu1 %vm1288_vm10, %v1262_v46  ;;  %v1096_v19 = vand.u32 2147483648, %v5378_v41  ;;  %v5441_v21 = vadd.f32 %v5249_v63, %v1356_v50 }
 0x16f   : > { %v4300_v9 = vpop.eup %4299  ;;  %v5421_v34 = vadd.f32 1.0, %v4298_v4  ;;  %v3876_v32 = vmul.f32 -1.442695, %v5414_v7  ;;  %v2034_v33 = vmul.f32 %v1567_v45, %v5257_v6  ;;  %vm1090_vm15 = vweird.f32 %v5378_v41 }
 0x170   : > { %v1573_v10 = vadd.f32 %v4294_v44, %v1572_v3  ;;  %v5428_v16 = vadd.f32 1.0, %v4300_v9  ;;  %v1078_v30 = vsel %vm5434_vm14, %v5361_v27, %v1074_v5  ;;  %vm5456_vm0 = vcmp.eq.f32.partialorder %v1094_v12, 8.507059e+37 }
 0x171   : > { %v4302_v62 = vpop.eup %4301  ;;  %4305 = vrcp.f32 %v5421_v34  ;;  %v1593_v35 = vand.u32 2147483647, %v5405_v0  ;;  %v1595_v36 = vand.u32 2147483648, %v5405_v0  ;;  %v1083_v6 = vsel %vm5400_vm1, %v1082_v39, %v1078_v30 }
 0x172   : > { %v1577_v17 = vsel %vm1576_vm13, %v4294_v44, %v1573_v10  ;;  %v1086_v18 = vmul.f32 %v4302_v62, %v5378_v41  ;;  %4307 = vrcp.f32 %v5428_v16  ;;  %vm1091_vm2 = vweird.f32 %v4302_v62 }
 0x173   : > { %v597_v47 = vpop.f32.mrf.mxu0  ;;  %v1358_v29 = vpop.f32.mrf.mxu1  ;;  %v1582_v20 = vsel %vm5417_vm12, %v1581_v14, %v1577_v17  ;;  %v1097_v40 = vor.u32 1.1754944e-38, %v1096_v19  ;;  %vm1589_vm3 = vweird.f32 %v5405_v0  ;;  %4309 = vpow2.f32 %v3876_v32  ;;  %vm1092_vm4 = vmor %vm1090_vm15, %vm1091_vm2 }
 0x174   : > { %v1087_v28 = vsub.f32 1.0, %v1086_v18  ;;  %v5453_v60 = vpop.eup %4303  ;;  %v2035_v13 = vmul.f32 %v1582_v20, %v5275_v24  ;;  %v3911_v24 = vmul.f32 -1.442695, %v5441_v21  ;;  %v5469_v42 = vadd.f32 %v5308_v54, %v597_v47 }
 0x175   : > { %v1585_v38 = vmul.f32 %v5453_v60, %v5405_v0  ;;  %v5472_v43 = vadd.f32 %v5249_v63, %v1358_v29  ;;  %v5477_v8 = vmul.f32 %v1083_v6, %v5272_v23  ;;  %v1596_v25 = vor.u32 1.1754944e-38, %v1595_v36 }
 0x176   : > { %v1088_v37 = vmul.f32 %v4302_v62, %v1087_v28  ;;  %4311 = vpow2.f32 %v3911_v24  ;;  %v5481_v50 = vpack.c.bf16 %v2035_v13, %v2034_v33  ;;  %vm5486_vm5 = vcmp.eq.f32.partialorder %v1593_v35, 8.507059e+37 }
 0x177   : > { %v1586_v26 = vsub.f32 1.0, %v1585_v38  ;;  %v5474_v48 = vpop.eup %4305  ;;  %vm1105_vm6 = vweird.f32 %v5421_v34  ;;  %v1109_v59 = vand.u32 2147483647, %v5421_v34  ;;  %v3877_v39 = vmul.f32 -1.442695, %v5469_v42 }
 0x178   : > { %v1089_v44 = vadd.f32 %v4302_v62, %v1088_v37  ;;  %v5483_v51 = vpop.eup %4307  ;;  %v1101_v23 = vmul.f32 %v5474_v48, %v5421_v34  ;;  %3947 = vmatmul.msk.bf16.vlgmr.msra.gmra.mxu2 %vm1288_vm10, %v5481_v50  ;;  %vm1590_vm7 = vweird.f32 %v5453_v60  ;;  %v3912_v3 = vmul.f32 -1.442695, %v5472_v43 }
 0x179   : > { %v1587_v57 = vmul.f32 %v5453_v60, %v1586_v26  ;;  %v1600_v61 = vmul.f32 %v5483_v51, %v5428_v16  ;;  %v4310_v46 = vpop.eup %4309  ;;  %4313 = vpow2.f32 %v3877_v39  ;;  %vm5516_vm1 = vmor %vm1589_vm3, %vm1590_vm7  ;;  %vm1106_vm8 = vweird.f32 %v5474_v48 }
 0x17a   : > { %v1093_v56 = vsel %vm1092_vm4, %v4302_v62, %v1089_v44  ;;  %v1102_v2 = vsub.f32 1.0, %v1101_v23  ;;  %v5509_v11 = vadd.f32 1.0, %v4310_v46  ;;  %4315 = vpow2.f32 %v3912_v3  ;;  %vm5537_vm11 = vmor %vm1105_vm6, %vm1106_vm8 }
 0x17b   : > { %v599_v41 = vpop.f32.mrf.mxu0  ;;  %v1361_v52 = vpop.f32.mrf.mxu1  ;;  %v1098_v15 = vsel %vm5456_vm0, %v1097_v40, %v1093_v56  ;;  %v1588_v49 = vadd.f32 %v5453_v60, %v1587_v57  ;;  %v1601_v5 = vsub.f32 1.0, %v1600_v61  ;;  %vm1605_vm9 = vweird.f32 %v5483_v51 }
 0x17c   : > { %v1243_v4 = vmul.f32 %v1098_v15, %v5311_v31  ;;  %v5506_v9 = vadd.f32 %v5308_v54, %v599_v41  ;;  %v1103_v10 = vmul.f32 %v5474_v48, %v1102_v2  ;;  %v5512_v62 = vadd.f32 %v5249_v63, %v1361_v52  ;;  %v4312_v45 = vpop.eup %4311 }
 0x17d   : > { %v1111_v31 = vand.u32 2147483648, %v5421_v34  ;;  %v1602_v12 = vmul.f32 %v5483_v51, %v1601_v5  ;;  %v1592_v17 = vsel %vm5516_vm1, %v5453_v60, %v1588_v49  ;;  %4317 = vrcp.f32 %v5509_v11 }
 0x17e   : > { %v3878_v53 = vmul.f32 -1.442695, %v5506_v9  ;;  %v1104_v18 = vadd.f32 %v5474_v48, %v1103_v10  ;;  %v1608_v19 = vand.u32 2147483647, %v5428_v16  ;;  %v1610_v47 = vand.u32 2147483648, %v5428_v16 }
 0x17f   : > { %v1603_v0 = vadd.f32 %v5483_v51, %v1602_v12  ;;  %v5533_v29 = vadd.f32 1.0, %v4312_v45  ;;  %vm1604_vm12 = vweird.f32 %v5428_v16  ;;  %v3913_v20 = vmul.f32 -1.442695, %v5512_v62  ;;  %v4314_v60 = vpop.eup %4313 }
 0x180   : > { %4319 = vpow2.f32 %v3878_v53  ;;  %v1263_v32 = vpack.c.bf16 %v1243_v4, %v5477_v8  ;;  %v1597_v13 = vsel %vm5486_vm5, %v1596_v25, %v1592_v17  ;;  %v1108_v34 = vsel %vm5537_vm11, %v5474_v48, %v1104_v18  ;;  %vm5551_vm13 = vmor %vm1604_vm12, %vm1605_vm9  ;;  %v4316_v35 = vpop.eup %4315 }
 0x181   : > { %v1124_v16 = vand.u32 2147483647, %v5509_v11  ;;  %v1112_v36 = vor.u32 1.1754944e-38, %v1111_v31  ;;  %v1607_v6 = vsel %vm5551_vm13, %v5483_v51, %v1603_v0  ;;  %v1126_v37 = vand.u32 2147483648, %v5509_v11 }
 0x182   : > { %4321 = vrcp.f32 %v5533_v29  ;;  %3902 = vmatmul.msk.bf16.gmra.mxu1 %vm1288_vm10, %v1263_v32  ;;  %vm1110_vm14 = vcmp.eq.f32.partialorder %v1109_v59, 8.507059e+37  ;;  %vm1609_vm15 = vcmp.eq.f32.partialorder %v1608_v19, 8.507059e+37  ;;  %v1611_v38 = vor.u32 1.1754944e-38, %v1610_v47 }
 0x183   : > { %v602_v33 = vpop.f32.mrf.mxu0  ;;  %v1363_v28 = vpop.f32.mrf.mxu1  ;;  %v5562_v40 = vadd.f32 1.0, %v4314_v60  ;;  %v2036_v44 = vmul.f32 %v1597_v13, %v5314_v55  ;;  %v1113_v26 = vsel %vm1110_vm14, %v1112_v36, %v1108_v34  ;;  %v5565_v48 = vadd.f32 1.0, %v4316_v35 }
 0x184   : > { %v4318_v24 = vpop.eup %4317  ;;  %4323 = vpow2.f32 %v3913_v20  ;;  %v1612_v8 = vsel %vm1609_vm15, %v1611_v38, %v1607_v6  ;;  %vm1120_vm0 = vweird.f32 %v5509_v11  ;;  %vm5569_vm2 = vcmp.eq.f32.partialorder %v1124_v16, 8.507059e+37 }
 0x185   : > { %v1116_v25 = vmul.f32 %v4318_v24, %v5509_v11  ;;  %v1127_v57 = vor.u32 1.1754944e-38, %v1126_v37  ;;  %v1623_v58 = vand.u32 2147483647, %v5533_v29  ;;  %v1625_v23 = vand.u32 2147483648, %v5533_v29 }
 0x186   : > { %v4320_v56 = vpop.eup %4319  ;;  %4325 = vrcp.f32 %v5562_v40  ;;  %v5577_v55 = vmul.f32 %v1113_v26, %v5356_v1  ;;  %vm1619_vm3 = vweird.f32 %v5533_v29  ;;  %v2037_v15 = vmul.f32 %v1612_v8, %v5359_v22 }
 0x187   : > { %v1117_v41 = vsub.f32 1.0, %v1116_v25  ;;  %4327 = vrcp.f32 %v5565_v48  ;;  %v1141_v59 = vand.u32 2147483648, %v5562_v40  ;;  %v5583_v61 = vadd.f32 1.0, %v4320_v56 }
 0x188   : > { %v4322_v52 = vpop.eup %4321  ;;  %v5586_v39 = vadd.f32 %v5308_v54, %v602_v33  ;;  %vm1121_vm4 = vweird.f32 %v4318_v24  ;;  %v5590_v46 = vadd.f32 %v5249_v63, %v1363_v28  ;;  %vm5592_vm5 = vcmp.eq.f32.partialorder %v1623_v58, 8.507059e+37 }
 0x189   : > { %v1118_v3 = vmul.f32 %v4318_v24, %v1117_v41  ;;  %v1615_v1 = vmul.f32 %v4322_v52, %v5533_v29  ;;  %v1626_v22 = vor.u32 1.1754944e-38, %v1625_v23  ;;  %v1638_v10 = vand.u32 2147483647, %v5565_v48  ;;  %vm1122_vm7 = vmor %vm1120_vm0, %vm1121_vm4 }
 0x18a   : > { %v4324_v4 = vpop.eup %4323  ;;  %v1640_v45 = vand.u32 2147483648, %v5565_v48  ;;  %4329 = vrcp.f32 %v5583_v61  ;;  %vm1135_vm6 = vweird.f32 %v5562_v40  ;;  %v1139_v17 = vand.u32 2147483647, %v5562_v40 }
 0x18b   : > { %v604_v49 = vpop.f32.mrf.mxu0  ;;  %v1366_v2 = vpop.f32.mrf.mxu1  ;;  %v1119_v14 = vadd.f32 %v4318_v24, %v1118_v3  ;;  %v1616_v31 = vsub.f32 1.0, %v1615_v1  ;;  %v5600_v12 = vadd.f32 1.0, %v4324_v4  ;;  %v5607_v18 = vor.u32 1.1754944e-38, %v1141_v59 }
 0x18c   : > { %v5602_v53 = vpop.eup %4325  ;;  %vm1634_vm1 = vweird.f32 %v5565_v48  ;;  %v5610_v0 = vpack.c.bf16 %v2037_v15, %v2036_v44  ;;  %vm1620_vm8 = vweird.f32 %v4322_v52  ;;  %vm5617_vm9 = vcmp.eq.f32.partialorder %v1638_v10, 8.507059e+37 }
 0x18d   : > { %v4328_v19 = vpop.eup %4327  ;;  %v1123_v47 = vsel %vm1122_vm7, %v4318_v24, %v1119_v14  ;;  %v1617_v30 = vmul.f32 %v4322_v52, %v1616_v31  ;;  %v1131_v20 = vmul.f32 %v5602_v53, %v5562_v40  ;;  %v1641_v28 = vor.u32 1.1754944e-38, %v1640_v45  ;;  %vm5628_vm11 = vmor %vm1619_vm3, %vm1620_vm8 }
 0x18e   : > { %v1128_v32 = vsel %vm5569_vm2, %v1127_v57, %v1123_v47  ;;  %v1630_v11 = vmul.f32 %v4328_v19, %v5565_v48  ;;  %v1154_v60 = vand.u32 2147483647, %v5583_v61  ;;  %3948 = vmatmul.msk.bf16.gmra.mxu2 %vm1288_vm10, %v5610_v0  ;;  %4331 = vrcp.f32 %v5600_v12 }
 0x18f   : > { %v1245_v13 = vmul.f32 %v1128_v32, %v5414_v7  ;;  %v1618_v34 = vadd.f32 %v4322_v52, %v1617_v30  ;;  %v1132_v27 = vsub.f32 1.0, %v1131_v20  ;;  %vm1136_vm12 = vweird.f32 %v5602_v53 }
 0x190   : > { %v4330_v16 = vpop.eup %4329  ;;  %vm5633_vm13 = vcmp.eq.f32.partialorder %v1139_v17, 8.507059e+37  ;;  %v1631_v6 = vsub.f32 1.0, %v1630_v11  ;;  %v3879_v7 = vmul.f32 -1.442695, %v5586_v39  ;;  %v3914_v37 = vmul.f32 -1.442695, %v5590_v46  ;;  %vm5658_vm2 = vmor %vm1135_vm6, %vm1136_vm12 }
 0x191   : > { %v1264_v24 = vpack.c.bf16 %v1245_v13, %v5577_v55  ;;  %v1622_v29 = vsel %vm5628_vm11, %v4322_v52, %v1618_v34  ;;  %v1133_v44 = vmul.f32 %v5602_v53, %v1132_v27  ;;  %v1146_v26 = vmul.f32 %v4330_v16, %v5583_v61 }
 0x192   : > { %v1632_v8 = vmul.f32 %v4328_v19, %v1631_v6  ;;  %vm1635_vm14 = vweird.f32 %v4328_v19  ;;  %vm1150_vm15 = vweird.f32 %v5583_v61  ;;  %v1156_v25 = vand.u32 2147483648, %v5583_v61 }
 0x193   : > { %v1368_v38 = vpop.f32.mrf.mxu1  ;;  %v607_v51 = vpop.f32.mrf.mxu0  ;;  %v1627_v56 = vsel %vm5592_vm5, %v1626_v22, %v1622_v29  ;;  %v1134_v57 = vadd.f32 %v5602_v53, %v1133_v44  ;;  %v1147_v58 = vsub.f32 1.0, %v1146_v26  ;;  %vm5649_vm0 = vcmp.eq.f32.partialorder %v1154_v60, 8.507059e+37  ;;  %3903 = vmatmul.msk.bf16.gmra.mxu1 %vm1288_vm10, %v1264_v24  ;;  %vm1636_vm3 = vmor %vm1634_vm1, %vm1635_vm14 }
 0x194   : > { %v1633_v41 = vadd.f32 %v4328_v19, %v1632_v8  ;;  %4333 = vpow2.f32 %v3879_v7  ;;  %v5663_v52 = vadd.f32 %v5308_v54, %v604_v49  ;;  %v5666_v15 = vadd.f32 %v5249_v63, %v1366_v2  ;;  %v5668_v59 = vpop.eup %4331 }
 0x195   : > { %v1148_v3 = vmul.f32 %v4330_v16, %v1147_v58  ;;  %vm1151_vm4 = vweird.f32 %v4330_v16  ;;  %4335 = vpow2.f32 %v3914_v37  ;;  %v5674_v40 = vadd.f32 %v5308_v54, %v607_v51 }
 0x196   : > { %v1138_v49 = vsel %vm5658_vm2, %v5602_v53, %v1134_v57  ;;  %v1637_v1 = vsel %vm1636_vm3, %v4328_v19, %v1633_v41  ;;  %v1157_v4 = vor.u32 1.1754944e-38, %v1156_v25  ;;  %v1645_v2 = vmul.f32 %v5668_v59, %v5600_v12  ;;  %vm1152_vm5 = vmor %vm1150_vm15, %vm1151_vm4 }
 0x197   : > { %v2038_v5 = vmul.f32 %v1627_v56, %v5441_v21  ;;  %v1642_v48 = vsel %vm5617_vm9, %v1641_v28, %v1637_v1  ;;  %v1149_v22 = vadd.f32 %v4330_v16, %v1148_v3  ;;  %v3880_v10 = vmul.f32 -1.442695, %v5663_v52 }
 0x198   : > { %v2039_v45 = vmul.f32 %v1642_v48, %v5472_v43  ;;  %v1646_v14 = vsub.f32 1.0, %v1645_v2  ;;  %v3915_v31 = vmul.f32 -1.442695, %v5666_v15  ;;  %v3881_v53 = vmul.f32 -1.442695, %v5674_v40 }
 0x199   : > { %v1143_v21 = vsel %vm5633_vm13, %v5607_v18, %v1138_v49  ;;  %v1153_v19 = vsel %vm1152_vm5, %v4330_v16, %v1149_v22  ;;  %4337 = vpow2.f32 %v3880_v10  ;;  %v5694_v47 = vadd.f32 %v5249_v63, %v1368_v38 }
 0x19a   : > { %v4334_v30 = vpop.eup %4333  ;;  %v1158_v43 = vsel %vm5649_vm0, %v1157_v4, %v1153_v19  ;;  %v1647_v61 = vmul.f32 %v5668_v59, %v1646_v14  ;;  %4339 = vpow2.f32 %v3915_v31  ;;  %v5699_v20 = vpack.c.bf16 %v2039_v45, %v2038_v5 }
 0x19b   : > { %v1371_v17 = vpop.f32.mrf.mxu1  ;;  %v4336_v32 = vpop.eup %4335  ;;  %v1247_v11 = vmul.f32 %v1158_v43, %v5506_v9  ;;  %v5702_v33 = vadd.f32 1.0, %v4334_v30  ;;  %4341 = vpow2.f32 %v3881_v53  ;;  %v3916_v28 = vmul.f32 -1.442695, %v5694_v47 }
 0x19c   : > { %v5704_v18 = vadd.f32 1.0, %v4336_v32  ;;  %v609_v60 = vpop.f32.mrf.mxu0  ;;  %v1246_v13 = vmul.f32 %v1143_v21, %v5469_v42  ;;  %v1648_v34 = vadd.f32 %v5668_v59, %v1647_v61  ;;  %vm1650_vm6 = vweird.f32 %v5668_v59 }
 0x19d   : > { %4343 = vrcp.f32 %v5702_v33  ;;  %v1655_v27 = vand.u32 2147483648, %v5600_v12  ;;  %vm1649_vm7 = vweird.f32 %v5600_v12  ;;  %v1653_v35 = vand.u32 2147483647, %v5600_v12 }
 0x19e   : > { %4345 = vrcp.f32 %v5704_v18  ;;  %3949 = vmatmul.msk.bf16.gmra.mxu2 %vm1288_vm10, %v5699_v20  ;;  %v1265_v16 = vpack.c.bf16 %v1247_v11, %v1246_v13  ;;  %v5718_v42 = vadd.f32 %v5308_v54, %v609_v60  ;;  %vm5720_vm1 = vmor %vm1649_vm7, %vm1650_vm6  ;;  %v1169_v44 = vand.u32 2147483647, %v5702_v33 }
 0x19f   : > { %v4338_v9 = vpop.eup %4337  ;;  %4347 = vpow2.f32 %v3916_v28  ;;  %v1652_v38 = vsel %vm5720_vm1, %v5668_v59, %v1648_v34  ;;  %v1656_v12 = vor.u32 1.1754944e-38, %v1655_v27  ;;  %vm1654_vm8 = vcmp.eq.f32.partialorder %v1653_v35, 8.507059e+37 }
 0x1a0   : > { %v4340_v36 = vpop.eup %4339  ;;  %v5724_v7 = vadd.f32 1.0, %v4338_v9  ;;  %v3882_v26 = vmul.f32 -1.442695, %v5718_v42  ;;  %v1171_v56 = vand.u32 2147483648, %v5702_v33  ;;  %vm1165_vm9 = vweird.f32 %v5702_v33 }
 0x1a1   : > { %v5729_v24 = vadd.f32 1.0, %v4340_v36  ;;  %v4342_v29 = vpop.eup %4341  ;;  %v1657_v25 = vsel %vm1654_vm8, %v1656_v12, %v1652_v38  ;;  %v1668_v58 = vand.u32 2147483647, %v5704_v18  ;;  %v5745_v23 = vadd.f32 %v5249_v63, %v1371_v17 }
 0x1a2   : > { %4349 = vrcp.f32 %v5724_v7  ;;  %vm1664_vm11 = vweird.f32 %v5704_v18  ;;  %v1670_v59 = vand.u32 2147483648, %v5704_v18  ;;  %v5749_v3 = vadd.f32 1.0, %v4342_v29 }
 0x1a3   : > { %v1373_v37 = vpop.f32.mrf.mxu1  ;;  %v5732_v54 = vpop.eup %4343  ;;  %4351 = vrcp.f32 %v5729_v24  ;;  %3904 = vmatmul.msk.bf16.gmra.mxu1 %vm1288_vm10, %v1265_v16  ;;  %v2040_v49 = vmul.f32 %v1657_v25, %v5512_v62  ;;  %vm5752_vm12 = vcmp.eq.f32.partialorder %v1169_v44, 8.507059e+37  ;;  %v1172_v22 = vor.u32 1.1754944e-38, %v1171_v56 }
 0x1a4   : > { %v4346_v8 = vpop.eup %4345  ;;  %v1161_v51 = vmul.f32 %v5732_v54, %v5702_v33  ;;  %4353 = vpow2.f32 %v3882_v26  ;;  %vm1166_vm13 = vweird.f32 %v5732_v54  ;;  %vm5765_vm15 = vcmp.eq.f32.partialorder %v1668_v58, 8.507059e+37 }
 0x1a5   : > { %v1660_v57 = vmul.f32 %v4346_v8, %v5704_v18  ;;  %v4348_v55 = vpop.eup %4347  ;;  %4355 = vrcp.f32 %v5749_v3  ;;  %vm1665_vm14 = vweird.f32 %v4346_v8  ;;  %v1671_v17 = vor.u32 1.1754944e-38, %v1670_v59  ;;  %vm5776_vm0 = vmor %vm1165_vm9, %vm1166_vm13 }
 0x1a6   : > { %v1162_v41 = vsub.f32 1.0, %v1161_v51  ;;  %v5756_v2 = vadd.f32 1.0, %v4348_v55  ;;  %v1184_v21 = vand.u32 2147483647, %v5724_v7  ;;  %v1186_v32 = vand.u32 2147483648, %v5724_v7  ;;  %vm1666_vm2 = vmor %vm1664_vm11, %vm1665_vm14 }
 0x1a7   : > { %v1661_v4 = vsub.f32 1.0, %v1660_v57  ;;  %vm1180_vm3 = vweird.f32 %v5724_v7  ;;  %v3917_v28 = vmul.f32 -1.442695, %v5745_v23  ;;  %v5787_v33 = vadd.f32 %v5249_v63, %v1373_v37 }
 0x1a8   : > { %v4350_v5 = vpop.eup %4349  ;;  %v1163_v48 = vmul.f32 %v5732_v54, %v1162_v41  ;;  %4357 = vrcp.f32 %v5756_v2  ;;  %vm5796_vm5 = vcmp.eq.f32.partialorder %v1184_v21, 8.507059e+37  ;;  %v1683_v35 = vand.u32 2147483647, %v5729_v24 }
 0x1a9   : > { %v5763_v45 = vpop.eup %4351  ;;  %v1662_v62 = vmul.f32 %v4346_v8, %v1661_v4  ;;  %v1176_v31 = vmul.f32 %v4350_v5, %v5724_v7  ;;  %vm1181_vm4 = vweird.f32 %v4350_v5  ;;  %v1187_v37 = vor.u32 1.1754944e-38, %v1186_v32 }
 0x1aa   : > { %v1164_v53 = vadd.f32 %v5732_v54, %v1163_v48  ;;  %v1675_v19 = vmul.f32 %v5763_v45, %v5729_v24  ;;  %v4354_v60 = vpop.eup %4353  ;;  %vm1182_vm6 = vmor %vm1180_vm3, %vm1181_vm4  ;;  %vm1680_vm7 = vweird.f32 %v5763_v45  ;;  %4359 = vpow2.f32 %v3917_v28 }
 0x1ab   : > { %v5761_v10 = vpop.f32.mrf.mxu1  ;;  %v1663_v43 = vadd.f32 %v4346_v8, %v1662_v62  ;;  %v1177_v61 = vsub.f32 1.0, %v1176_v31  ;;  %v5792_v9 = vpop.eup %4355  ;;  %v5810_v12 = vadd.f32 1.0, %v4354_v60  ;;  %vm1679_vm1 = vweird.f32 %v5729_v24 }
 0x1ac   : > { %v1676_v11 = vsub.f32 1.0, %v1675_v19  ;;  %v1168_v13 = vsel %vm5776_vm0, %v5732_v54, %v1164_v53  ;;  %v1191_v38 = vmul.f32 %v5792_v9, %v5749_v3  ;;  %v1685_v55 = vand.u32 2147483648, %v5729_v24  ;;  %vm5828_vm8 = vmor %vm1679_vm1, %vm1680_vm7 }
 0x1ad   : > { %v1667_v34 = vsel %vm1666_vm2, %v4346_v8, %v1663_v43  ;;  %v1178_v27 = vmul.f32 %v4350_v5, %v1177_v61  ;;  %v1173_v29 = vsel %vm5752_vm12, %v1172_v22, %v1168_v13  ;;  %v3918_v8 = vmul.f32 -1.442695, %v5787_v33  ;;  %v5845_v22 = vld [vmem:[%s7099_s4] ss:$0 sm:$0xff] }
 0x1ae   : > { %v1672_v18 = vsel %vm5765_vm15, %v1671_v17, %v1667_v34  ;;  %v1677_v63 = vmul.f32 %v5763_v45, %v1676_v11  ;;  %v4358_v44 = vpop.eup %4357  ;;  %v1192_v7 = vsub.f32 1.0, %v1191_v38  ;;  %v1248_v57 = vmul.f32 %v1173_v29, %v5586_v39 }
 0x1af   : > { %v2041_v36 = vmul.f32 %v1672_v18, %v5590_v46  ;;  %v1179_v6 = vadd.f32 %v4350_v5, %v1178_v27  ;;  %v1690_v56 = vmul.f32 %v4358_v44, %v5756_v2  ;;  %4361 = vrcp.f32 %v5810_v12 }
 0x1b0   : > { %v1678_v46 = vadd.f32 %v5763_v45, %v1677_v63  ;;  %vm5832_vm9 = vcmp.eq.f32.partialorder %v1683_v35, 8.507059e+37  ;;  %v1700_v24 = vand.u32 2147483648, %v5756_v2  ;;  %vm1695_vm11 = vweird.f32 %v4358_v44  ;;  %v4360_v4 = vpop.eup %4359 }
 0x1b1   : > { %v1183_v26 = vsel %vm1182_vm6, %v4350_v5, %v1179_v6  ;;  %v5814_v25 = vpack.c.bf16 %v2041_v36, %v2040_v49  ;;  %v1691_v39 = vsub.f32 1.0, %v1690_v56  ;;  %4363 = vpow2.f32 %v3918_v8 }
 0x1b2   : > { %v1188_v51 = vsel %vm5796_vm5, %v1187_v37, %v1183_v26  ;;  %v1682_v1 = vsel %vm5828_vm8, %v5763_v45, %v1678_v46  ;;  %v1193_v5 = vmul.f32 %v5792_v9, %v1192_v7  ;;  %v5849_v62 = vadd.f32 %v5845_v22, %v5761_v10 }
 0x1b3   : > { %v1378_v54 = vpop.f32.mrf.mxu1  ;;  %v1249_v58 = vmul.f32 %v1188_v51, %v5663_v52  ;;  %3950 = vmatmul.msk.bf16.gmra.mxu2 %vm1288_vm10, %v5814_v25  ;;  %v1698_v52 = vand.u32 2147483647, %v5756_v2  ;;  %v1692_v48 = vmul.f32 %v4358_v44, %v1691_v39  ;;  %v1686_v31 = vor.u32 1.1754944e-38, %v1685_v55 }
 0x1b4   : > { %v5852_v14 = vadd.f32 %v5845_v22, %v1378_v54  ;;  %vm1195_vm12 = vweird.f32 %v5749_v3  ;;  %v1199_v45 = vand.u32 2147483647, %v5749_v3  ;;  %v5856_v53 = vadd.f32 1.0, %v4360_v4 }
 0x1b5   : > { %v1266_v49 = vpack.c.bf16 %v1249_v58, %v1248_v57  ;;  %v1693_v17 = vadd.f32 %v4358_v44, %v1692_v48  ;;  %vm1694_vm13 = vweird.f32 %v5756_v2  ;;  %vm1699_vm14 = vcmp.eq.f32.partialorder %v1698_v52, 8.507059e+37  ;;  %v4362_v19 = vpop.eup %4361 }
 0x1b6   : > { %v3919_v21 = vmul.f32 -1.442695, %v5849_v62  ;;  %v1687_v30 = vsel %vm5832_vm9, %v1686_v31, %v1682_v1  ;;  %vm1696_vm15 = vmor %vm1694_vm13, %vm1695_vm11  ;;  %v1701_v43 = vor.u32 1.1754944e-38, %v1700_v24  ;;  %4365 = vrcp.f32 %v5856_v53 }
 0x1b7   : > { %3905 = vmatmul.msk.bf16.gmra.mxu1 %vm1288_vm10, %v1266_v49  ;;  %v3920_v61 = vmul.f32 -1.442695, %v5852_v14  ;;  %v1194_v32 = vadd.f32 %v5792_v9, %v1193_v5  ;;  %vm1196_vm0 = vweird.f32 %v5792_v9  ;;  %v1697_v2 = vsel %vm1696_vm15, %v4358_v44, %v1693_v17  ;;  %v4364_v28 = vpop.eup %4363 }
 0x1b8   : > { %v1206_v11 = vmul.f32 %v4362_v19, %v5810_v12  ;;  %v1201_v60 = vand.u32 2147483648, %v5749_v3  ;;  %v1702_v13 = vsel %vm1699_vm14, %v1701_v43, %v1697_v2  ;;  %4367 = vpow2.f32 %v3919_v21  ;;  %vm5879_vm2 = vmor %vm1195_vm12, %vm1196_vm0 }
 0x1b9   : > { %v2042_v27 = vmul.f32 %v1687_v30, %v5666_v15  ;;  %v2043_v18 = vmul.f32 %v1702_v13, %v5694_v47  ;;  %v5875_v63 = vadd.f32 1.0, %v4364_v28  ;;  %v1214_v36 = vand.u32 2147483647, %v5810_v12 }
 0x1ba   : > { %v1207_v16 = vsub.f32 1.0, %v1206_v11  ;;  %v1216_v6 = vand.u32 2147483648, %v5810_v12  ;;  %4369 = vpow2.f32 %v3920_v61  ;;  %v1198_v15 = vsel %vm5879_vm2, %v5792_v9, %v1194_v32 }
 0x1bb   : > { %v1381_v10 = vpop.f32.mrf.mxu1  ;;  %vm1211_vm3 = vweird.f32 %v4362_v19  ;;  %4371 = vrcp.f32 %v5875_v63  ;;  %v1202_v38 = vor.u32 1.1754944e-38, %v1201_v60  ;;  %v5890_v29 = vpack.c.bf16 %v2043_v18, %v2042_v27 }
 0x1bc   : > { %v5871_v34 = vadd.f32 %v5845_v22, %v1381_v10  ;;  %v1208_v47 = vmul.f32 %v4362_v19, %v1207_v16  ;;  %v4366_v3 = vpop.eup %4365  ;;  %vm1200_vm4 = vcmp.eq.f32.partialorder %v1199_v45, 8.507059e+37  ;;  %vm1210_vm5 = vweird.f32 %v5810_v12 }
 0x1bd   : > { %v1705_v44 = vmul.f32 %v4366_v3, %v5856_v53  ;;  %v1203_v8 = vsel %vm1200_vm4, %v1202_v38, %v1198_v15  ;;  %vm1212_vm6 = vmor %vm1210_vm5, %vm1211_vm3  ;;  %v1217_v9 = vor.u32 1.1754944e-38, %v1216_v6  ;;  %vm1215_vm7 = vcmp.eq.f32.partialorder %v1214_v36, 8.507059e+37 }
 0x1be   : > { %v3921_v37 = vmul.f32 -1.442695, %v5871_v34  ;;  %v1209_v54 = vadd.f32 %v4362_v19, %v1208_v47  ;;  %v4368_v46 = vpop.eup %4367  ;;  %v1250_v59 = vmul.f32 %v1203_v8, %v5674_v40  ;;  %vm1710_vm1 = vweird.f32 %v4366_v3 }
 0x1bf   : > { %v1706_v56 = vsub.f32 1.0, %v1705_v44  ;;  %v5897_v57 = vadd.f32 1.0, %v4368_v46  ;;  %v1715_v31 = vand.u32 2147483648, %v5856_v53  ;;  %vm1709_vm8 = vweird.f32 %v5856_v53 }
 0x1c0   : > { %4373 = vpow2.f32 %v3921_v37  ;;  %v1213_v7 = vsel %vm1212_vm6, %v4362_v19, %v1209_v54  ;;  %v4370_v58 = vpop.eup %4369  ;;  %v1713_v40 = vand.u32 2147483647, %v5856_v53  ;;  %vm5916_vm9 = vmor %vm1709_vm8, %vm1710_vm1  ;;  %v1728_v10 = vand.u32 2147483647, %v5875_v63 }
 0x1c1   : > { %v1218_v55 = vsel %vm1215_vm7, %v1217_v9, %v1213_v7  ;;  %v4372_v41 = vpop.eup %4371  ;;  %v1707_v52 = vmul.f32 %v4366_v3, %v1706_v56  ;;  %4375 = vrcp.f32 %v5897_v57  ;;  %v5906_v5 = vadd.f32 1.0, %v4370_v58 }
 0x1c2   : > { %v1251_v39 = vmul.f32 %v1218_v55, %v5718_v42  ;;  %v1720_v49 = vmul.f32 %v4372_v41, %v5875_v63  ;;  %v1730_v42 = vand.u32 2147483648, %v5875_v63  ;;  %vm1725_vm11 = vweird.f32 %v4372_v41 }
 0x1c3   : > { %v1383_v26 = vpop.f32.mrf.mxu1  ;;  %3951 = vmatmul.msk.bf16.gmra.mxu2 %vm1288_vm10, %v5890_v29  ;;  %v1708_v4 = vadd.f32 %v4366_v3, %v1707_v52  ;;  %v1716_v43 = vor.u32 1.1754944e-38, %v1715_v31  ;;  %vm1724_vm12 = vweird.f32 %v5875_v63  ;;  %vm1714_vm13 = vcmp.eq.f32.partialorder %v1713_v40, 8.507059e+37 }
 0x1c4   : > { %v5895_v51 = vadd.f32 %v5845_v22, %v1383_v26  ;;  %v1267_v1 = vpack.c.bf16 %v1251_v39, %v1250_v59  ;;  %v1721_v45 = vsub.f32 1.0, %v1720_v49  ;;  %vm1726_vm14 = vmor %vm1724_vm12, %vm1725_vm11  ;;  %v1731_v2 = vor.u32 1.1754944e-38, %v1730_v42 }
 0x1c5   : > { %v1712_v53 = vsel %vm5916_vm9, %v4366_v3, %v1708_v4  ;;  %vm1729_vm15 = vcmp.eq.f32.partialorder %v1728_v10, 8.507059e+37  ;;  %v1745_v38 = vand.u32 2147483648, %v5897_v57  ;;  %v1760_v44 = vand.u32 2147483648, %v5906_v5 }
 0x1c6   : > { %v3922_v12 = vmul.f32 -1.442695, %v5895_v51  ;;  %v4374_v24 = vpop.eup %4373  ;;  %v1722_v21 = vmul.f32 %v4372_v41, %v1721_v45  ;;  %v1717_v60 = vsel %vm1714_vm13, %v1716_v43, %v1712_v53  ;;  %v1758_v9 = vand.u32 2147483647, %v5906_v5 }
 0x1c7   : > { %v5908_v48 = vadd.f32 1.0, %v4374_v24  ;;  %3906 = vmatmul.msk.bf16.gmra.mxu1 %vm1288_vm10, %v1267_v1  ;;  %v5922_v30 = vpop.eup %4375  ;;  %v2044_v15 = vmul.f32 %v1717_v60, %v5745_v23  ;;  %vm1739_vm3 = vweird.f32 %v5897_v57  ;;  %vm1754_vm4 = vweird.f32 %v5906_v5 }
 0x1c8   : > { %4377 = vpow2.f32 %v3922_v12  ;;  %v1723_v61 = vadd.f32 %v4372_v41, %v1722_v21  ;;  %v1735_v32 = vmul.f32 %v5922_v30, %v5897_v57  ;;  %vm1740_vm2 = vweird.f32 %v5922_v30 }
 0x1c9   : > { %4379 = vrcp.f32 %v5906_v5  ;;  %v1746_v59 = vor.u32 1.1754944e-38, %v1745_v38  ;;  %v1761_v39 = vor.u32 1.1754944e-38, %v1760_v44  ;;  %vm5961_vm6 = vmor %vm1739_vm3, %vm1740_vm2  ;;  %vm1759_vm1 = vcmp.eq.f32.partialorder %v1758_v9, 8.507059e+37 }
 0x1ca   : > { %4381 = vrcp.f32 %v5908_v48  ;;  %v1727_v13 = vsel %vm1726_vm14, %v4372_v41, %v1723_v61  ;;  %v1736_v27 = vsub.f32 1.0, %v1735_v32  ;;  %v1743_v41 = vand.u32 2147483647, %v5897_v57 }
 0x1cb   : > { %v1386_v19 = vpop.f32.mrf.mxu1  ;;  %v1732_v16 = vsel %vm1729_vm15, %v1731_v2, %v1727_v13  ;;  %v1775_v31 = vand.u32 2147483648, %v5908_v48  ;;  %vm1769_vm8 = vweird.f32 %v5908_v48 }
 0x1cc   : > { %v5930_v11 = vadd.f32 %v5845_v22, %v1386_v19  ;;  %v2045_v6 = vmul.f32 %v1732_v16, %v5787_v33  ;;  %v1737_v47 = vmul.f32 %v5922_v30, %v1736_v27  ;;  %vm1744_vm9 = vcmp.eq.f32.partialorder %v1743_v41, 8.507059e+37 }
 0x1cd   : > { %v1776_v32 = vor.u32 1.1754944e-38, %v1775_v31 }
 0x1ce   : > { %v4378_v28 = vpop.eup %4377  ;;  %v3923_v63 = vmul.f32 -1.442695, %v5930_v11  ;;  %v5946_v8 = vpack.c.bf16 %v2045_v6, %v2044_v15  ;;  %v1738_v7 = vadd.f32 %v5922_v30, %v1737_v47 }
 0x1cf   : > { %v4380_v18 = vpop.eup %4379  ;;  %v5932_v35 = vadd.f32 1.0, %v4378_v28 }
 0x1d0   : > { %v5935_v36 = vpop.eup %4381  ;;  %v1750_v37 = vmul.f32 %v4380_v18, %v5906_v5  ;;  %vm1755_vm0 = vweird.f32 %v4380_v18  ;;  %v1742_v57 = vsel %vm5961_vm6, %v5922_v30, %v1738_v7  ;;  %v1773_v5 = vand.u32 2147483647, %v5908_v48 }
 0x1d1   : > { %v1765_v3 = vmul.f32 %v5935_v36, %v5908_v48  ;;  %4383 = vrcp.f32 %v5932_v35  ;;  %vm1756_vm5 = vmor %vm1754_vm4, %vm1755_vm0  ;;  %vm1770_vm7 = vweird.f32 %v5935_v36  ;;  %v1790_v42 = vand.u32 2147483648, %v5932_v35 }
 0x1d2   : > { %v1751_v54 = vsub.f32 1.0, %v1750_v37  ;;  %4385 = vpow2.f32 %v3923_v63  ;;  %vm5975_vm11 = vmor %vm1769_vm8, %vm1770_vm7  ;;  %v1788_v21 = vand.u32 2147483647, %v5932_v35  ;;  %v1747_v30 = vsel %vm1744_vm9, %v1746_v59, %v1742_v57 }
 0x1d3   : > { %v1388_v26 = vpop.f32.mrf.mxu1  ;;  %v1766_v46 = vsub.f32 1.0, %v1765_v3  ;;  %3952 = vmatmul.msk.bf16.gmra.mxu2 %vm1288_vm10, %v5946_v8  ;;  %vm1774_vm13 = vcmp.eq.f32.partialorder %v1773_v5, 8.507059e+37  ;;  %vm1784_vm14 = vweird.f32 %v5932_v35  ;;  %v1791_v60 = vor.u32 1.1754944e-38, %v1790_v42 }
 0x1d4   : > { %v5949_v33 = vadd.f32 %v5845_v22, %v1388_v26  ;;  %v1752_v23 = vmul.f32 %v4380_v18, %v1751_v54  ;;  %v2046_v27 = vmul.f32 %v1747_v30, %v5849_v62  ;;  %vm1789_vm0 = vcmp.eq.f32.partialorder %v1788_v21, 8.507059e+37 }
 0x1d5   : > { %v1767_v56 = vmul.f32 %v5935_v36, %v1766_v46 }
 0x1d6   : > { %v3924_v58 = vmul.f32 -1.442695, %v5949_v33  ;;  %v1753_v55 = vadd.f32 %v4380_v18, %v1752_v23 }
 0x1d7   : > { %v4384_v12 = vpop.eup %4383  ;;  %v1768_v49 = vadd.f32 %v5935_v36, %v1767_v56 }
 0x1d8   : > { %4387 = vpow2.f32 %v3924_v58  ;;  %v1757_v24 = vsel %vm1756_vm5, %v4380_v18, %v1753_v55  ;;  %v1780_v1 = vmul.f32 %v4384_v12, %v5932_v35  ;;  %v4386_v4 = vpop.eup %4385  ;;  %vm1785_vm12 = vweird.f32 %v4384_v12 }
 0x1d9   : > { %v1762_v45 = vsel %vm1759_vm1, %v1761_v39, %v1757_v24  ;;  %v5980_v10 = vadd.f32 1.0, %v4386_v4  ;;  %v1772_v53 = vsel %vm5975_vm11, %v5935_v36, %v1768_v49  ;;  %vm1786_vm15 = vmor %vm1784_vm14, %vm1785_vm12 }
 0x1da   : > { %v1781_v40 = vsub.f32 1.0, %v1780_v1  ;;  %v2047_v61 = vmul.f32 %v1762_v45, %v5852_v14  ;;  %v1777_v18 = vsel %vm1774_vm13, %v1776_v32, %v1772_v53  ;;  %v6058_v53 = vld [vmem:[#allocation6] ss:$0 sm:$0xff] }
 0x1db   : > { %v1391_v19 = vpop.f32.mrf.mxu1  ;;  %4389 = vrcp.f32 %v5980_v10  ;;  %v2048_v35 = vmul.f32 %v1777_v18, %v5871_v34  ;;  %vm1799_vm5 = vweird.f32 %v5980_v10  ;;  %v1803_v57 = vand.u32 2147483647, %v5980_v10 }
 0x1dc   : > { %v1782_v43 = vmul.f32 %v4384_v12, %v1781_v40  ;;  %v5987_v2 = vadd.f32 %v5845_v22, %v1391_v19  ;;  %v2072_v36 = vpack.c.bf16 %v2047_v61, %v2046_v27 }
 0x1dd   : > { %vm1804_vm8 = vcmp.eq.f32.partialorder %v1803_v57, 8.507059e+37 }
 0x1de   : > { %v4388_v48 = vpop.eup %4387  ;;  %v1783_v28 = vadd.f32 %v4384_v12, %v1782_v43  ;;  %v3925_v16 = vmul.f32 -1.442695, %v5987_v2 }
 0x1df   : > { %v5990_v13 = vadd.f32 1.0, %v4388_v48 }
 0x1e0   : > { %v1787_v14 = vsel %vm1786_vm15, %v4384_v12, %v1783_v28 }
 0x1e1   : > { %4391 = vrcp.f32 %v5990_v13  ;;  %v1792_v63 = vsel %vm1789_vm0, %v1791_v60, %v1787_v14  ;;  %v6001_v47 = vpop.eup %4389  ;;  %vm1814_vm3 = vweird.f32 %v5990_v13  ;;  %v1818_v24 = vand.u32 2147483647, %v5990_v13 }
 0x1e2   : > { %4393 = vpow2.f32 %v3925_v16  ;;  %v2049_v6 = vmul.f32 %v1792_v63, %v5895_v51  ;;  %v1795_v34 = vmul.f32 %v6001_v47, %v5980_v10  ;;  %vm1800_vm4 = vweird.f32 %v6001_v47 }
 0x1e3   : > { %v1393_v37 = vpop.f32.mrf.mxu1  ;;  %3953 = vmatmul.msk.bf16.gmra.mxu2 %vm1288_vm10, %v2072_v36  ;;  %vm6047_vm7 = vmor %vm1799_vm5, %vm1800_vm4  ;;  %vm1819_vm1 = vcmp.eq.f32.partialorder %v1818_v24, 8.507059e+37 }
 0x1e4   : > { %v5999_v62 = vadd.f32 %v5845_v22, %v1393_v37  ;;  %v2073_v15 = vpack.c.bf16 %v2049_v6, %v2048_v35  ;;  %v1796_v23 = vsub.f32 1.0, %v1795_v34 }
 0x1e6   : > { %v3926_v38 = vmul.f32 -1.442695, %v5999_v62  ;;  %2995 = vmatpush.bf16.msra.mxu3 %v2073_v15  ;;  %v1797_v12 = vmul.f32 %v6001_v47, %v1796_v23 }
 0x1e7   : > { %v4392_v3 = vpop.eup %4391 }
 0x1e8   : > { %v4394_v54 = vpop.eup %4393  ;;  %v1810_v44 = vmul.f32 %v4392_v3, %v5990_v13  ;;  %4395 = vpow2.f32 %v3926_v38  ;;  %vm1815_vm2 = vweird.f32 %v4392_v3  ;;  %v1798_v52 = vadd.f32 %v6001_v47, %v1797_v12 }
 0x1e9   : > { %v6008_v51 = vadd.f32 1.0, %v4394_v54  ;;  %vm6034_vm6 = vmor %vm1814_vm3, %vm1815_vm2 }
 0x1ea   : > { %2996 = vmatpush.bf16.msra.mxu3 %v2072_v36  ;;  %v1811_v26 = vsub.f32 1.0, %v1810_v44  ;;  %v1802_v21 = vsel %vm6047_vm7, %v6001_v47, %v1798_v52 }
 0x1eb   : > { %v1396_v46 = vpop.f32.mrf.mxu1  ;;  %4397 = vrcp.f32 %v6008_v51  ;;  %vm1829_vm9 = vweird.f32 %v6008_v51 }
 0x1ec   : > { %v6011_v9 = vadd.f32 %v5845_v22, %v1396_v46  ;;  %v1812_v56 = vmul.f32 %v4392_v3, %v1811_v26 }
 0x1ee   : > { %v4396_v7 = vpop.eup %4395  ;;  %2997 = vmatpush.bf16.msra.mxu3 %v5946_v8  ;;  %v3927_v55 = vmul.f32 -1.442695, %v6011_v9  ;;  %v1813_v41 = vadd.f32 %v4392_v3, %v1812_v56  ;;  %v1820_v8 = vand.u32 2147483648, %v5990_v13 }
 0x1ef   : > { %v6015_v58 = vadd.f32 1.0, %v4396_v7 }
 0x1f0   : > { %v1817_v5 = vsel %vm6034_vm6, %v4392_v3, %v1813_v41  ;;  %v1821_v17 = vor.u32 1.1754944e-38, %v1820_v8 }
 0x1f1   : > { %4399 = vrcp.f32 %v6015_v58  ;;  %v6021_v59 = vpop.eup %4397  ;;  %v1850_v47 = vand.u32 2147483648, %v6015_v58  ;;  %vm1844_vm14 = vweird.f32 %v6015_v58 }
 0x1f2   : > { %4401 = vpow2.f32 %v3927_v55  ;;  %2998 = vmatpush.bf16.msra.mxu3 %v5890_v29  ;;  %v1805_v29 = vand.u32 2147483648, %v5980_v10  ;;  %v1825_v31 = vmul.f32 %v6021_v59, %v6008_v51  ;;  %v1822_v30 = vsel %vm1819_vm1, %v1821_v17, %v1817_v5 }
 0x1f3   : > { %v1398_v39 = vpop.f32.mrf.mxu1  ;;  %3954 = vmatmul.msk.bf16.gmra.mxu2 %vm1288_vm10, %v2073_v15  ;;  %v2051_v32 = vmul.f32 %v1822_v30, %v5949_v33  ;;  %vm1830_vm11 = vweird.f32 %v6021_v59  ;;  %v1835_v15 = vand.u32 2147483648, %v6008_v51 }
 0x1f4   : > { %v6030_v49 = vadd.f32 %v5845_v22, %v1398_v39  ;;  %v1806_v19 = vor.u32 1.1754944e-38, %v1805_v29  ;;  %v1826_v43 = vsub.f32 1.0, %v1825_v31  ;;  %vm6095_vm13 = vmor %vm1829_vm9, %vm1830_vm11 }
 0x1f5   : > { %v1836_v56 = vor.u32 1.1754944e-38, %v1835_v15 }
 0x1f6   : > { %2999 = vmatpush.bf16.msra.mxu3 %v5814_v25  ;;  %v3928_v45 = vmul.f32 -1.442695, %v6030_v49  ;;  %v1807_v61 = vsel %vm1804_vm8, %v1806_v19, %v1802_v21  ;;  %v1827_v18 = vmul.f32 %v6021_v59, %v1826_v43 }
 0x1f7   : > { %v6039_v4 = vpop.eup %4399  ;;  %v2050_v27 = vmul.f32 %v1807_v61, %v5930_v11  ;;  %v1833_v11 = vand.u32 2147483647, %v6008_v51 }
 0x1f8   : > { %v4402_v40 = vpop.eup %4401  ;;  %v1840_v25 = vmul.f32 %v6039_v4, %v6015_v58  ;;  %4403 = vpow2.f32 %v3928_v45  ;;  %v1828_v6 = vadd.f32 %v6021_v59, %v1827_v18  ;;  %vm1845_vm12 = vweird.f32 %v6039_v4 }
 0x1f9   : > { %v6056_v10 = vadd.f32 1.0, %v4402_v40  ;;  %v6076_v33 = vpack.c.bf16 %v2051_v32, %v2050_v27  ;;  %vm6103_vm15 = vmor %vm1844_vm14, %vm1845_vm12  ;;  %vm1834_vm0 = vcmp.eq.f32.partialorder %v1833_v11, 8.507059e+37  ;;  %vm2914_vm12 = vcmask 257024  }
 0x1fa   : > { %3000 = vmatpush.bf16.msra.mxu3 %v5699_v20  ;;  %v1841_v48 = vsub.f32 1.0, %v1840_v25  ;;  %v1832_v51 = vsel %vm6095_vm13, %v6021_v59, %v1828_v6  ;;  %v2239_v59 = vlaneseq }
 0x1fb   : > { %4405 = vrcp.f32 %v6056_v10  ;;  %v2159_v28 = vpop.f32.mrf.mxu2  ;;  %v1837_v52 = vsel %vm1834_vm0, %v1836_v56, %v1832_v51  ;;  %vm1859_vm4 = vweird.f32 %v6056_v10  ;;  %v1863_v31 = vand.u32 2147483647, %v6056_v10 }
 0x1fc   : > { %v6064_v60 = vadd.f32 %v6058_v53, %v2159_v28  ;;  %v1842_v20 = vmul.f32 %v6039_v4, %v1841_v48  ;;  %v1865_v45 = vand.u32 2147483648, %v6056_v10  ;;  %v2052_v25 = vmul.f32 %v1837_v52, %v5987_v2 }
 0x1fd   : > { %vm1864_vm7 = vcmp.eq.f32.partialorder %v1863_v31, 8.507059e+37  ;;  %v6150_v2 = vand.u32 127, %v2239_v59 }
 0x1fe   : > { %3001 = vmatpush.bf16.msra.mxu3 %v5610_v0  ;;  %v4404_v13 = vpop.eup %4403  ;;  %v3963_v14 = vmul.f32 -1.442695, %v6064_v60  ;;  %v1843_v37 = vadd.f32 %v6039_v4, %v1842_v20  ;;  %v1866_v30 = vor.u32 1.1754944e-38, %v1865_v45 }
 0x1ff   : > { %v6070_v16 = vadd.f32 1.0, %v4404_v13  ;;  %v1401_v63 = vpop.f32.mrf.mxu1  ;;  %vm2241_vm9 = vcmp.ge.s32.totalorder %v6150_v2, 4 }
 0x200   : > { %v6079_v0 = vadd.f32 %v5845_v22, %v1401_v63  ;;  %v1847_v46 = vsel %vm6103_vm15, %v6039_v4, %v1843_v37 }
 0x201   : > { %v6073_v36 = vpop.eup %4405  ;;  %4407 = vrcp.f32 %v6070_v16  ;;  %v1880_v43 = vand.u32 2147483648, %v6070_v16  ;;  %vm1874_vm1 = vweird.f32 %v6070_v16  ;;  %v1878_v48 = vand.u32 2147483647, %v6070_v16 }
 0x202   : > { %v1855_v35 = vmul.f32 %v6073_v36, %v6056_v10  ;;  %3002 = vmatpush.bf16.msra.mxu3 %v5481_v50  ;;  %4409 = vpow2.f32 %v3963_v14  ;;  %v3929_v38 = vmul.f32 -1.442695, %v6079_v0  ;;  %v1848_v50 = vand.u32 2147483647, %v6015_v58 }
 0x203   : > { %3955 = vmatmul.msk.bf16.gmra.mxu2 %vm1288_vm10, %v6076_v33  ;;  %v2161_v44 = vpop.f32.mrf.mxu2  ;;  %v1851_v58 = vor.u32 1.1754944e-38, %v1850_v47  ;;  %vm1860_vm3 = vweird.f32 %v6073_v36  ;;  %vm1879_vm11 = vcmp.eq.f32.partialorder %v1878_v48, 8.507059e+37 }
 0x204   : > { %v1856_v3 = vsub.f32 1.0, %v1855_v35  ;;  %4411 = vpow2.f32 %v3929_v38  ;;  %v6108_v26 = vadd.f32 %v6058_v53, %v2161_v44  ;;  %vm1849_vm2 = vcmp.eq.f32.partialorder %v1848_v50, 8.507059e+37  ;;  %vm6139_vm5 = vmor %vm1859_vm4, %vm1860_vm3 }
 0x205   : > { %v1852_v24 = vsel %vm1849_vm2, %v1851_v58, %v1847_v46  ;;  %v1881_v35 = vor.u32 1.1754944e-38, %v1880_v43 }
 0x206   : > { %v1857_v23 = vmul.f32 %v6073_v36, %v1856_v3  ;;  %v3964_v55 = vmul.f32 -1.442695, %v6108_v26  ;;  %v2053_v40 = vmul.f32 %v1852_v24, %v5999_v62 }
 0x207   : > { %v6117_v7 = vpop.eup %4407  ;;  %v1403_v12 = vpop.f32.mrf.mxu1 }
 0x208   : > { %v4410_v41 = vpop.eup %4409  ;;  %v1870_v8 = vmul.f32 %v6117_v7, %v6070_v16  ;;  %v6123_v39 = vadd.f32 %v5845_v22, %v1403_v12  ;;  %4413 = vpow2.f32 %v3964_v55  ;;  %v1858_v1 = vadd.f32 %v6073_v36, %v1857_v23 }
 0x209   : > { %v6125_v29 = vadd.f32 1.0, %v4410_v41  ;;  %vm1875_vm6 = vweird.f32 %v6117_v7  ;;  %v6156_v32 = vpack.c.bf16 %v2053_v40, %v2052_v25 }
 0x20a   : > { %v1871_v4 = vsub.f32 1.0, %v1870_v8  ;;  %v3930_v57 = vmul.f32 -1.442695, %v6123_v39  ;;  %v4412_v5 = vpop.eup %4411  ;;  %v1862_v19 = vsel %vm6139_vm5, %v6073_v36, %v1858_v1  ;;  %vm6158_vm8 = vmor %vm1874_vm1, %vm1875_vm6 }
 0x20b   : > { %4415 = vrcp.f32 %v6125_v29  ;;  %v6136_v17 = vadd.f32 1.0, %v4412_v5  ;;  %v1867_v27 = vsel %vm1864_vm7, %v1866_v30, %v1862_v19  ;;  %v2379_v11 = vand.u32 2147483647, %v6125_v29 }
 0x20c   : > { %v1872_v42 = vmul.f32 %v6117_v7, %v1871_v4  ;;  %4417 = vpow2.f32 %v3930_v57  ;;  %v2381_v6 = vand.u32 2147483648, %v6125_v29  ;;  %v2054_v54 = vmul.f32 %v1867_v27, %v6011_v9 }
 0x20d   : > { %4419 = vrcp.f32 %v6136_v17  ;;  %vm2375_vm13 = vweird.f32 %v6125_v29  ;;  %vm6187_vm15 = vcmp.eq.f32.partialorder %v2379_v11, 8.507059e+37  ;;  %vm1889_vm0 = vweird.f32 %v6136_v17 }
 0x20e   : > { %v1873_v10 = vadd.f32 %v6117_v7, %v1872_v42  ;;  %v4414_v62 = vpop.eup %4413  ;;  %v2382_v46 = vor.u32 1.1754944e-38, %v2381_v6  ;;  %v1893_v55 = vand.u32 2147483647, %v6136_v17  ;;  %v1895_v8 = vand.u32 2147483648, %v6136_v17 }
 0x20f   : > { %v6154_v61 = vadd.f32 1.0, %v4414_v62 }
 0x210   : > { %v1406_v28 = vpop.f32.mrf.mxu1  ;;  %v1877_v16 = vsel %vm6158_vm8, %v6117_v7, %v1873_v10 }
 0x211   : > { %v4416_v13 = vpop.eup %4415  ;;  %v2164_v20 = vpop.f32.mrf.mxu2  ;;  %v6163_v14 = vadd.f32 %v5845_v22, %v1406_v28  ;;  %4421 = vrcp.f32 %v6154_v61  ;;  %v1882_v50 = vsel %vm1879_vm11, %v1881_v35, %v1877_v16  ;;  %vm2390_vm3 = vweird.f32 %v6154_v61 }
 0x212   : > { %v4418_v63 = vpop.eup %4417  ;;  %v2371_v36 = vmul.f32 %v4416_v13, %v6125_v29  ;;  %v6180_v3 = vadd.f32 %v6058_v53, %v2164_v20  ;;  %vm2376_vm14 = vweird.f32 %v4416_v13  ;;  %v2055_v56 = vmul.f32 %v1882_v50, %v6030_v49 }
 0x213   : > { %v6173_v37 = vadd.f32 1.0, %v4418_v63  ;;  %v6175_v15 = vpop.eup %4419  ;;  %3956 = vmatmul.msk.bf16.gmra.mxu2 %vm1288_vm10, %v6156_v32  ;;  %v3931_v38 = vmul.f32 -1.442695, %v6163_v14  ;;  %vm2377_vm2 = vmor %vm2375_vm13, %vm2376_vm14  ;;  %v2394_v57 = vand.u32 2147483647, %v6154_v61  ;;  %v2396_v5 = vand.u32 2147483648, %v6154_v61 }
 0x214   : > { %v2372_v47 = vsub.f32 1.0, %v2371_v36  ;;  %v1885_v44 = vmul.f32 %v6175_v15, %v6136_v17  ;;  %v3965_v7 = vmul.f32 -1.442695, %v6180_v3  ;;  %v6225_v25 = vpack.c.bf16 %v2055_v56, %v2054_v54 }
 0x215   : > { %4423 = vrcp.f32 %v6173_v37  ;;  %vm1890_vm5 = vweird.f32 %v6175_v15  ;;  %vm6235_vm6 = vcmp.eq.f32.partialorder %v2394_v57, 8.507059e+37  ;;  %v2397_v27 = vor.u32 1.1754944e-38, %v2396_v5 }
 0x216   : > { %v2373_v34 = vmul.f32 %v4416_v13, %v2372_v47  ;;  %v1886_v23 = vsub.f32 1.0, %v1885_v44  ;;  %4425 = vpow2.f32 %v3931_v38  ;;  %v1908_v18 = vand.u32 2147483647, %v6173_v37  ;;  %vm6248_vm1 = vmor %vm1889_vm0, %vm1890_vm5 }
 0x217   : > { %v4422_v9 = vpop.eup %4421  ;;  %4427 = vpow2.f32 %v3965_v7  ;;  %v1910_v20 = vand.u32 2147483648, %v6173_v37  ;;  %vm1904_vm11 = vweird.f32 %v6173_v37  ;;  %vm1894_vm13 = vcmp.eq.f32.partialorder %v1893_v55, 8.507059e+37 }
 0x218   : > { %v2374_v58 = vadd.f32 %v4416_v13, %v2373_v34  ;;  %v1408_v12 = vpop.f32.mrf.mxu1  ;;  %v1887_v41 = vmul.f32 %v6175_v15, %v1886_v23  ;;  %v2386_v59 = vmul.f32 %v4422_v9, %v6154_v61  ;;  %vm2391_vm4 = vweird.f32 %v4422_v9 }
 0x219   : > { %v2166_v52 = vpop.f32.mrf.mxu2  ;;  %v6207_v1 = vadd.f32 %v5845_v22, %v1408_v12  ;;  %vm2392_vm7 = vmor %vm2390_vm3, %vm2391_vm4 }
 0x21a   : > { %v2378_v49 = vsel %vm2377_vm2, %v4416_v13, %v2374_v58  ;;  %v6204_v24 = vadd.f32 %v6058_v53, %v2166_v52  ;;  %v2387_v4 = vsub.f32 1.0, %v2386_v59  ;;  %v1888_v30 = vadd.f32 %v6175_v15, %v1887_v41 }
 0x21b   : > { %v2383_v29 = vsel %vm6187_vm15, %v2382_v46, %v2378_v49  ;;  %v6213_v31 = vpop.eup %4423  ;;  %v3932_v42 = vmul.f32 -1.442695, %v6207_v1  ;;  %vm1909_vm15 = vcmp.eq.f32.partialorder %v1908_v18, 8.507059e+37  ;;  %v1911_v46 = vor.u32 1.1754944e-38, %v1910_v20 }
 0x21c   : > { %v2850_v45 = vsel %vm2241_vm9, %v2383_v29, %v6064_v60  ;;  %v3966_v40 = vmul.f32 -1.442695, %v6204_v24  ;;  %v4426_v21 = vpop.eup %4425  ;;  %v2388_v10 = vmul.f32 %v4422_v9, %v2387_v4  ;;  %v1900_v62 = vmul.f32 %v6213_v31, %v6173_v37 }
 0x21d   : > { %v2882_v19 = vpack.c.bf16 %v2850_v45, %v2850_v45  ;;  %v6231_v43 = vadd.f32 1.0, %v4426_v21  ;;  %v4428_v13 = vpop.eup %4427  ;;  %vm1905_vm8 = vweird.f32 %v6213_v31  ;;  %v1892_v6 = vsel %vm6248_vm1, %v6175_v15, %v1888_v30 }
 0x21e   : > { %4429 = vpow2.f32 %v3966_v40  ;;  %v2389_v60 = vadd.f32 %v4422_v9, %v2388_v10  ;;  %v1901_v28 = vsub.f32 1.0, %v1900_v62  ;;  %v6254_v11 = vadd.f32 1.0, %v4428_v13  ;;  %vm6270_vm14 = vmor %vm1904_vm11, %vm1905_vm8 }
 0x21f   : > { %2915 = vst.msk [vmem:[%s6218_s22] sm:$0xf] %vm2914_vm12, %v2882_v19  ;;  %4431 = vpow2.f32 %v3932_v42  ;;  %v1896_v15 = vor.u32 1.1754944e-38, %v1895_v8  ;;  %v1925_v58 = vand.u32 2147483648, %v6231_v43  ;;  %v1923_v57 = vand.u32 2147483647, %v6231_v43 }
 0x220   : > { %4433 = vrcp.f32 %v6231_v43  ;;  %v1411_v63 = vpop.f32.mrf.mxu1  ;;  %v2393_v36 = vsel %vm2392_vm7, %v4422_v9, %v2389_v60  ;;  %v1902_v61 = vmul.f32 %v6213_v31, %v1901_v28  ;;  %v2409_v56 = vand.u32 2147483647, %v6254_v11 }
 0x221   : > { %v2169_v35 = vpop.f32.mrf.mxu2  ;;  %v2398_v47 = vsel %vm6235_vm6, %v2397_v27, %v2393_v36  ;;  %4435 = vrcp.f32 %v6254_v11  ;;  %v1897_v9 = vsel %vm1894_vm13, %v1896_v15, %v1892_v6  ;;  %v2411_v12 = vand.u32 2147483648, %v6254_v11  ;;  %v3997_v36 = vld [vmem:[#allocation7] sm:$0xf] }
 0x222   : > { %v2851_v17 = vsel %vm2241_vm9, %v2398_v47, %v6108_v26  ;;  %v1903_v38 = vadd.f32 %v6213_v31, %v1902_v61  ;;  %v6268_v54 = vadd.f32 %v6058_v53, %v2169_v35  ;;  %v6277_v26 = vadd.f32 %v5845_v22, %v1411_v63  ;;  %v4104_v61 = vld [vmem:[#allocation7 + $0x4] sm:$0xf0] }
 0x223   : > { %v2883_v44 = vpack.c.bf16 %v2851_v17, %v2851_v17  ;;  %3957 = vmatmul.msk.bf16.gmra.mxu2 %vm1288_vm10, %v6225_v25  ;;  %v2056_v29 = vmul.f32 %v1897_v9, %v6079_v0  ;;  %vm2405_vm0 = vweird.f32 %v6254_v11  ;;  %vm6303_vm2 = vcmp.eq.f32.partialorder %v2409_v56, 8.507059e+37 }
 0x224   : > { %v4430_v50 = vpop.eup %4429  ;;  %v1907_v51 = vsel %vm6270_vm14, %v6213_v31, %v1903_v38  ;;  %v3967_v8 = vmul.f32 -1.442695, %v6268_v54  ;;  %v3933_v52 = vmul.f32 -1.442695, %v6277_v26  ;;  %v6307_v42 = vor.u32 1.1754944e-38, %v1925_v58 }
 0x225   : > { %v4432_v37 = vpop.eup %4431  ;;  %v6282_v23 = vadd.f32 1.0, %v4430_v50  ;;  %2916 = vst.msk [vmem:[%s6218_s22 + $0x4] sm:$0xf] %vm2914_vm12, %v2883_v44  ;;  %v1912_v59 = vsel %vm1909_vm15, %v1911_v46, %v1907_v51  ;;  %v2412_v19 = vor.u32 1.1754944e-38, %v2411_v12  ;;  %vm1919_vm3 = vweird.f32 %v6231_v43 }
 0x226   : > { %v6284_v7 = vpop.eup %4433  ;;  %v6290_v55 = vadd.f32 1.0, %v4432_v37  ;;  %v2057_v21 = vmul.f32 %v1912_v59, %v6123_v39  ;;  %v3998_v15 = vor.u32 %v4104_v61, %v3997_v36 }
 0x227   : > { %v1915_v41 = vmul.f32 %v6284_v7, %v6231_v43  ;;  %4437 = vrcp.f32 %v6282_v23  ;;  %v4436_v49 = vpop.eup %4435  ;;  %v2424_v0 = vand.u32 2147483647, %v6282_v23  ;;  %v2426_v28 = vand.u32 2147483648, %v6282_v23 }
 0x228   : > { %4439 = vrcp.f32 %v6290_v55  ;;  %v1413_v31 = vpop.f32.mrf.mxu1  ;;  %v2401_v45 = vmul.f32 %v4436_v49, %v6254_v11  ;;  %v1938_v39 = vand.u32 2147483647, %v6290_v55  ;;  %v1940_v13 = vand.u32 2147483648, %v6290_v55  ;;  %3003 = vmatmul.bf16.vlgmr.msra.gmra.mxu3 %v3998_v15 }
 0x229   : > { %v1916_v4 = vsub.f32 1.0, %v1915_v41  ;;  %v2171_v5 = vpop.f32.mrf.mxu2  ;;  %4441 = vpow2.f32 %v3967_v8  ;;  %v6316_v30 = vadd.f32 %v5845_v22, %v1413_v31  ;;  %vm2406_vm4 = vweird.f32 %v4436_v49 }
 0x22a   : > { %v2402_v10 = vsub.f32 1.0, %v2401_v45  ;;  %4443 = vpow2.f32 %v3933_v52  ;;  %v6313_v62 = vadd.f32 %v6058_v53, %v2171_v5  ;;  %vm1920_vm5 = vweird.f32 %v6284_v7  ;;  %vm2407_vm7 = vmor %vm2405_vm0, %vm2406_vm4 }
 0x22b   : > { %v1917_v48 = vmul.f32 %v6284_v7, %v1916_v4  ;;  %vm2420_vm6 = vweird.f32 %v6282_v23  ;;  %v3934_v16 = vmul.f32 -1.442695, %v6316_v30  ;;  %v6328_v47 = vpack.c.bf16 %v2057_v21, %v2056_v29  ;;  %vm6346_vm11 = vmor %vm1919_vm3, %vm1920_vm5 }
 0x22c   : > { %v2403_v18 = vmul.f32 %v4436_v49, %v2402_v10  ;;  %v3968_v63 = vmul.f32 -1.442695, %v6313_v62  ;;  %vm1934_vm13 = vweird.f32 %v6290_v55  ;;  %v2427_v59 = vor.u32 1.1754944e-38, %v2426_v28  ;;  %v6388_v28 = vld [vmem:[%s7099_s4] ss:$0 sm:$0xff] }
 0x22d   : > { %v4438_v60 = vpop.eup %4437  ;;  %v1918_v38 = vadd.f32 %v6284_v7, %v1917_v48  ;;  %vm2425_vm15 = vcmp.eq.f32.partialorder %v2424_v0, 8.507059e+37  ;;  %v1941_v29 = vor.u32 1.1754944e-38, %v1940_v13  ;;  %vm1939_vm3 = vcmp.eq.f32.partialorder %v1938_v39, 8.507059e+37 }
 0x22e   : > { %v4440_v27 = vpop.eup %4439  ;;  %v2416_v20 = vmul.f32 %v4438_v60, %v6282_v23  ;;  %v2404_v35 = vadd.f32 %v4436_v49, %v2403_v18  ;;  %4445 = vpow2.f32 %v3968_v63  ;;  %vm2421_vm1 = vweird.f32 %v4438_v60 }
 0x22f   : > { %v1930_v22 = vmul.f32 %v4440_v27, %v6290_v55  ;;  %v4442_v17 = vpop.eup %4441  ;;  %4447 = vpow2.f32 %v3934_v16  ;;  %vm1935_vm8 = vweird.f32 %v4440_v27  ;;  %vm2422_vm14 = vmor %vm2420_vm6, %vm2421_vm1 }
 0x230   : > { %v2417_v6 = vsub.f32 1.0, %v2416_v20  ;;  %v4444_v44 = vpop.eup %4443  ;;  %v2408_v34 = vsel %vm2407_vm7, %v4436_v49, %v2404_v35  ;;  %v6333_v51 = vadd.f32 1.0, %v4442_v17  ;;  %vm1936_vm0 = vmor %vm1934_vm13, %vm1935_vm8 }
 0x231   : > { %v1931_v50 = vsub.f32 1.0, %v1930_v22  ;;  %v2413_v46 = vsel %vm6303_vm2, %v2412_v19, %v2408_v34  ;;  %v6337_v56 = vadd.f32 1.0, %v4444_v44  ;;  %vm1924_vm2 = vcmp.eq.f32.partialorder %v1923_v57, 8.507059e+37 }
 0x232   : > { %v2418_v37 = vmul.f32 %v4438_v60, %v2417_v6  ;;  %v2852_v11 = vsel %vm2241_vm9, %v2413_v46, %v6180_v3  ;;  %4449 = vrcp.f32 %v6333_v51  ;;  %v1922_v3 = vsel %vm6346_vm11, %v6284_v7, %v1918_v38 }
 0x233   : > { %v1932_v9 = vmul.f32 %v4440_v27, %v1931_v50  ;;  %3958 = vmatmul.msk.bf16.gmra.mxu2 %vm1288_vm10, %v6328_v47  ;;  %v2884_v8 = vpack.c.bf16 %v2852_v11, %v2852_v11  ;;  %4451 = vrcp.f32 %v6337_v56  ;;  %v1927_v31 = vsel %vm1924_vm2, %v6307_v42, %v1922_v3 }
 0x234   : > { %v2419_v12 = vadd.f32 %v4438_v60, %v2418_v37  ;;  %v1416_v41 = vpop.f32.mrf.mxu1  ;;  %v4446_v49 = vpop.eup %4445  ;;  %v2439_v21 = vand.u32 2147483647, %v6333_v51  ;;  %v2441_v0 = vand.u32 2147483648, %v6333_v51  ;;  %v1955_v48 = vand.u32 2147483648, %v6337_v56 }
 0x235   : > { %v1933_v52 = vadd.f32 %v4440_v27, %v1932_v9  ;;  %v4448_v5 = vpop.eup %4447  ;;  %2917 = vst.msk [vmem:[%s6218_s22 + $0x8] sm:$0xf] %vm2914_vm12, %v2884_v8  ;;  %v6372_v10 = vadd.f32 1.0, %v4446_v49  ;;  %v6391_v39 = vadd.f32 %v6388_v28, %v1416_v41  ;;  %v2058_v13 = vmul.f32 %v1927_v31, %v6163_v14 }
 0x236   : > { %v2423_v55 = vsel %vm2422_vm14, %v4438_v60, %v2419_v12  ;;  %v2174_v4 = vpop.f32.mrf.mxu2  ;;  %v6374_v43 = vadd.f32 1.0, %v4448_v5  ;;  %vm2435_vm4 = vweird.f32 %v6333_v51  ;;  %vm6399_vm5 = vcmp.eq.f32.partialorder %v2439_v21, 8.507059e+37 }
 0x237   : > { %v2428_v23 = vsel %vm2425_vm15, %v2427_v59, %v2423_v55  ;;  %v1937_v7 = vsel %vm1936_vm0, %v4440_v27, %v1933_v52  ;;  %4453 = vrcp.f32 %v6372_v10  ;;  %v1953_v27 = vand.u32 2147483647, %v6337_v56 }
 0x238   : > { %v2853_v45 = vsel %vm2241_vm9, %v2428_v23, %v6204_v24  ;;  %v1942_v40 = vsel %vm1939_vm3, %v1941_v29, %v1937_v7  ;;  %v4450_v57 = vpop.eup %4449  ;;  %v6383_v24 = vadd.f32 %v6058_v53, %v2174_v4  ;;  %4455 = vrcp.f32 %v6374_v43 }
 0x239   : > { %v2885_v19 = vpack.c.bf16 %v2853_v45, %v2853_v45  ;;  %v2059_v60 = vmul.f32 %v1942_v40, %v6207_v1  ;;  %v2431_v42 = vmul.f32 %v4450_v57, %v6333_v51  ;;  %v6393_v1 = vpop.eup %4451  ;;  %v2442_v22 = vor.u32 1.1754944e-38, %v2441_v0 }
 0x23a   : > { %v1945_v16 = vmul.f32 %v6393_v1, %v6337_v56  ;;  %vm1949_vm6 = vweird.f32 %v6337_v56  ;;  %vm2436_vm7 = vweird.f32 %v4450_v57  ;;  %v6408_v14 = vor.u32 1.1754944e-38, %v1955_v48  ;;  %v4005_v56 = vld [vmem:[#allocation7 + $0x10] sm:$0xf]  ;;  %v4106_v48 = vld [vmem:[#allocation7 + $0x14] sm:$0xf0] }
 0x23b   : > { %2918 = vst.msk [vmem:[%s6218_s22 + $0xc] sm:$0xf] %vm2914_vm12, %v2885_v19  ;;  %v2432_v20 = vsub.f32 1.0, %v2431_v42  ;;  %v6406_v36 = vpack.c.bf16 %v2059_v60, %v2058_v13  ;;  %v2454_v61 = vand.u32 2147483647, %v6372_v10  ;;  %vm1950_vm1 = vweird.f32 %v6393_v1  ;;  %vm2437_vm14 = vmor %vm2435_vm4, %vm2436_vm7 }
 0x23c   : > { %v1418_v18 = vpop.f32.mrf.mxu1  ;;  %v1946_v17 = vsub.f32 1.0, %v1945_v16  ;;  %v3969_v38 = vmul.f32 -1.442695, %v6383_v24  ;;  %v3935_v50 = vmul.f32 -1.442695, %v6391_v39  ;;  %vm2450_vm8 = vweird.f32 %v6372_v10  ;;  %vm6453_vm2 = vmor %vm1949_vm6, %vm1950_vm1 }
 0x23d   : > { %v2433_v6 = vmul.f32 %v4450_v57, %v2432_v20  ;;  %v2456_v15 = vand.u32 2147483648, %v6372_v10  ;;  %v6420_v34 = vadd.f32 %v6388_v28, %v1418_v18  ;;  %v4454_v37 = vpop.eup %4453  ;;  %vm6423_vm11 = vcmp.eq.f32.partialorder %v1953_v27, 8.507059e+37 }
 0x23e   : > { %v2176_v35 = vpop.f32.mrf.mxu2  ;;  %v1947_v9 = vmul.f32 %v6393_v1, %v1946_v17  ;;  %vm1964_vm13 = vweird.f32 %v6374_v43  ;;  %4457 = vpow2.f32 %v3969_v38  ;;  %v4456_v58 = vpop.eup %4455  ;;  %v2446_v12 = vmul.f32 %v4454_v37, %v6372_v10 }
 0x23f   : > { %v6417_v44 = vadd.f32 %v6058_v53, %v2176_v35  ;;  %v2434_v46 = vadd.f32 %v4450_v57, %v2433_v6  ;;  %vm6432_vm15 = vcmp.eq.f32.partialorder %v2454_v61, 8.507059e+37  ;;  %4459 = vpow2.f32 %v3935_v50 }
 0x240   : > { %v1948_v59 = vadd.f32 %v6393_v1, %v1947_v9  ;;  %v1960_v52 = vmul.f32 %v4456_v58, %v6374_v43  ;;  %v1968_v49 = vand.u32 2147483647, %v6374_v43  ;;  %v2447_v55 = vsub.f32 1.0, %v2446_v12 }
 0x241   : > { %v3970_v8 = vmul.f32 -1.442695, %v6417_v44  ;;  %v2438_v3 = vsel %vm2437_vm14, %v4450_v57, %v2434_v46  ;;  %v1970_v29 = vand.u32 2147483648, %v6374_v43  ;;  %v3936_v4 = vmul.f32 -1.442695, %v6420_v34 }
 0x242   : > { %v2443_v51 = vsel %vm6399_vm5, %v2442_v22, %v2438_v3  ;;  %vm2451_vm0 = vweird.f32 %v4454_v37  ;;  %v1961_v23 = vsub.f32 1.0, %v1960_v52  ;;  %v2448_v40 = vmul.f32 %v4454_v37, %v2447_v55 }
 0x243   : > { %3959 = vmatmul.msk.bf16.gmra.mxu2 %vm1288_vm10, %v6406_v36  ;;  %v2854_v5 = vsel %vm2241_vm9, %v2443_v51, %v6268_v54  ;;  %4461 = vpow2.f32 %v3970_v8  ;;  %vm1965_vm3 = vweird.f32 %v4456_v58  ;;  %v1952_v54 = vsel %vm6453_vm2, %v6393_v1, %v1948_v59  ;;  %vm2452_vm4 = vmor %vm2450_vm8, %vm2451_vm0 }
 0x244   : > { %v1421_v7 = vpop.f32.mrf.mxu1  ;;  %v2886_v31 = vpack.c.bf16 %v2854_v5, %v2854_v5  ;;  %4463 = vpow2.f32 %v3936_v4  ;;  %v4458_v19 = vpop.eup %4457  ;;  %v1962_v0 = vmul.f32 %v4456_v58, %v1961_v23  ;;  %v2449_v13 = vadd.f32 %v4454_v37, %v2448_v40  ;;  %vm1966_vm6 = vmor %vm1964_vm13, %vm1965_vm3 }
 0x245   : > { %v6464_v60 = vadd.f32 %v6388_v28, %v1421_v7  ;;  %v4460_v42 = vpop.eup %4459  ;;  %v2457_v27 = vor.u32 1.1754944e-38, %v2456_v15  ;;  %v6468_v18 = vadd.f32 1.0, %v4458_v19  ;;  %v4006_v20 = vor.u32 %v4106_v48, %v4005_v56  ;;  %v4108_v19 = vld [vmem:[#allocation7 + $0x24] sm:$0xf0] }
 0x246   : > { %v2179_v21 = vpop.f32.mrf.mxu2  ;;  %2919 = vst.msk [vmem:[%s6218_s22 + $0x10] sm:$0xf] %vm2914_vm12, %v2886_v31  ;;  %v1963_v1 = vadd.f32 %v4456_v58, %v1962_v0  ;;  %vm6473_vm5 = vcmp.eq.f32.partialorder %v1968_v49, 8.507059e+37  ;;  %v1971_v22 = vor.u32 1.1754944e-38, %v1970_v29  ;;  %v6477_v16 = vadd.f32 1.0, %v4460_v42 }
 0x247   : > { %v6461_v57 = vadd.f32 %v6058_v53, %v2179_v21  ;;  %v1957_v61 = vsel %vm6423_vm11, %v6408_v14, %v1952_v54  ;;  %v2453_v35 = vsel %vm2452_vm4, %v4454_v37, %v2449_v13  ;;  %4465 = vrcp.f32 %v6468_v18  ;;  %3008 = vmatmul.bf16.gmra.mxu3 %v4006_v20 }
 0x248   : > { %v2458_v17 = vsel %vm6432_vm15, %v2457_v27, %v2453_v35  ;;  %v1967_v38 = vsel %vm1966_vm6, %v4456_v58, %v1963_v1  ;;  %4467 = vrcp.f32 %v6477_v16  ;;  %v3937_v14 = vmul.f32 -1.442695, %v6464_v60 }
 0x249   : > { %v3971_v10 = vmul.f32 -1.442695, %v6461_v57  ;;  %v4462_v6 = vpop.eup %4461  ;;  %v2855_v43 = vsel %vm2241_vm9, %v2458_v17, %v6313_v62  ;;  %v1972_v15 = vsel %vm6473_vm5, %v1971_v22, %v1967_v38  ;;  %v2060_v9 = vmul.f32 %v1957_v61, %v6277_v26 }
 0x24a   : > { %v4464_v50 = vpop.eup %4463  ;;  %v2887_v37 = vpack.c.bf16 %v2855_v43, %v2855_v43  ;;  %v2061_v46 = vmul.f32 %v1972_v15, %v6316_v30  ;;  %v6498_v11 = vadd.f32 1.0, %v4462_v6  ;;  %v2469_v41 = vand.u32 2147483647, %v6468_v18 }
 0x24b   : > { %v6500_v58 = vadd.f32 1.0, %v4464_v50  ;;  %4469 = vpow2.f32 %v3971_v10  ;;  %v2471_v62 = vand.u32 2147483648, %v6468_v18  ;;  %v1985_v30 = vand.u32 2147483648, %v6477_v16 }
 0x24c   : > { %2920 = vst.msk [vmem:[%s6218_s22 + $0x14] sm:$0xf] %vm2914_vm12, %v2887_v37  ;;  %4471 = vpow2.f32 %v3937_v14  ;;  %v6506_v3 = vpack.c.bf16 %v2061_v46, %v2060_v9  ;;  %v1983_v49 = vand.u32 2147483647, %v6477_v16  ;;  %vm2465_vm7 = vweird.f32 %v6468_v18  ;;  %v1423_v4 = vpop.f32.mrf.mxu1 }
 0x24d   : > { %v4466_v8 = vpop.eup %4465  ;;  %4473 = vrcp.f32 %v6498_v11  ;;  %vm6521_vm1 = vcmp.eq.f32.partialorder %v2469_v41, 8.507059e+37  ;;  %vm1979_vm8 = vweird.f32 %v6477_v16  ;;  %v2472_v23 = vor.u32 1.1754944e-38, %v2471_v62 }
 0x24e   : > { %v2181_v12 = vpop.f32.mrf.mxu2  ;;  %v6513_v59 = vpop.eup %4467  ;;  %v2461_v52 = vmul.f32 %v4466_v8, %v6468_v18  ;;  %4475 = vrcp.f32 %v6500_v58  ;;  %v1986_v31 = vor.u32 1.1754944e-38, %v1985_v30  ;;  %vm2466_vm11 = vweird.f32 %v4466_v8 }
 0x24f   : > { %v6511_v26 = vadd.f32 %v6058_v53, %v2181_v12  ;;  %v1975_v51 = vmul.f32 %v6513_v59, %v6477_v16  ;;  %vm6529_vm13 = vcmp.eq.f32.partialorder %v1983_v49, 8.507059e+37  ;;  %vm2480_vm14 = vweird.f32 %v6498_v11  ;;  %vm2467_vm0 = vmor %vm2465_vm7, %vm2466_vm11 }
 0x250   : > { %v2462_v55 = vsub.f32 1.0, %v2461_v52  ;;  %v6540_v42 = vadd.f32 %v6388_v28, %v1423_v4  ;;  %vm1980_vm15 = vweird.f32 %v6513_v59  ;;  %v2484_v22 = vand.u32 2147483647, %v6498_v11 }
 0x251   : > { %v4470_v5 = vpop.eup %4469  ;;  %v1976_v7 = vsub.f32 1.0, %v1975_v51  ;;  %v3972_v45 = vmul.f32 -1.442695, %v6511_v26  ;;  %v2486_v28 = vand.u32 2147483648, %v6498_v11  ;;  %v1998_v6 = vand.u32 2147483647, %v6500_v58  ;;  %vm6558_vm2 = vmor %vm1979_vm8, %vm1980_vm15 }
 0x252   : > { %v4472_v40 = vpop.eup %4471  ;;  %v2463_v21 = vmul.f32 %v4466_v8, %v2462_v55  ;;  %v6534_v54 = vadd.f32 1.0, %v4470_v5  ;;  %v2000_v17 = vand.u32 2147483648, %v6500_v58  ;;  %v3938_v50 = vmul.f32 -1.442695, %v6540_v42 }
 0x253   : > { %3960 = vmatmul.msk.bf16.gmra.mxu2 %vm1288_vm10, %v6506_v3  ;;  %v4474_v0 = vpop.eup %4473  ;;  %v1977_v56 = vmul.f32 %v6513_v59, %v1976_v7  ;;  %v6537_v48 = vadd.f32 1.0, %v4472_v40  ;;  %4477 = vpow2.f32 %v3972_v45  ;;  %vm6570_vm4 = vcmp.eq.f32.partialorder %v2484_v22, 8.507059e+37 }
 0x254   : > { %v4476_v13 = vpop.eup %4475  ;;  %v2464_v27 = vadd.f32 %v4466_v8, %v2463_v21  ;;  %v2476_v20 = vmul.f32 %v4474_v0, %v6498_v11  ;;  %4479 = vrcp.f32 %v6534_v54  ;;  %vm2481_vm3 = vweird.f32 %v4474_v0  ;;  %v4013_v21 = vld [vmem:[#allocation7 + $0x20] sm:$0xf] }
 0x255   : > { %v1978_v63 = vadd.f32 %v6513_v59, %v1977_v56  ;;  %v1990_v61 = vmul.f32 %v4476_v13, %v6500_v58  ;;  %4481 = vrcp.f32 %v6537_v48  ;;  %vm1995_vm5 = vweird.f32 %v4476_v13 }
 0x256   : > { %v2184_v1 = vpop.f32.mrf.mxu2  ;;  %v2468_v35 = vsel %vm2467_vm0, %v4466_v8, %v2464_v27  ;;  %v2477_v10 = vsub.f32 1.0, %v2476_v20  ;;  %v2487_v8 = vor.u32 1.1754944e-38, %v2486_v28  ;;  %vm1994_vm6 = vweird.f32 %v6500_v58 }
 0x257   : > { %v2473_v38 = vsel %vm6521_vm1, %v2472_v23, %v2468_v35  ;;  %v1991_v14 = vsub.f32 1.0, %v1990_v61  ;;  %v1982_v15 = vsel %vm6558_vm2, %v6513_v59, %v1978_v63  ;;  %vm6575_vm7 = vcmp.eq.f32.partialorder %v1998_v6, 8.507059e+37  ;;  %vm2482_vm1 = vmor %vm2480_vm14, %vm2481_vm3 }
 0x258   : > { %v2856_v43 = vsel %vm2241_vm9, %v2473_v38, %v6383_v24  ;;  %v2478_v37 = vmul.f32 %v4474_v0, %v2477_v10  ;;  %v1987_v30 = vsel %vm6529_vm13, %v1986_v31, %v1982_v15  ;;  %vm1996_vm8 = vmor %vm1994_vm6, %vm1995_vm5  ;;  %v2001_v58 = vor.u32 1.1754944e-38, %v2000_v17 }
 0x259   : > { %v4478_v16 = vpop.eup %4477  ;;  %v2888_v46 = vpack.c.bf16 %v2856_v43, %v2856_v43  ;;  %v1992_v12 = vmul.f32 %v4476_v13, %v1991_v14  ;;  %v2499_v55 = vand.u32 2147483647, %v6534_v54  ;;  %4483 = vpow2.f32 %v3938_v50 }
 0x25a   : > { %v4480_v41 = vpop.eup %4479  ;;  %v2479_v62 = vadd.f32 %v4474_v0, %v2478_v37  ;;  %v6586_v49 = vadd.f32 1.0, %v4478_v16  ;;  %v2062_v7 = vmul.f32 %v1987_v30, %v6391_v39  ;;  %v2501_v40 = vand.u32 2147483648, %v6534_v54  ;;  %v6628_v37 = vld [vmem:[#allocation6] ss:$0 sm:$0xff] }
 0x25b   : > { %2921 = vst.msk [vmem:[%s6218_s22 + $0x18] sm:$0xf] %vm2914_vm12, %v2888_v46  ;;  %v1993_v59 = vadd.f32 %v4476_v13, %v1992_v12  ;;  %v2491_v52 = vmul.f32 %v4480_v41, %v6534_v54  ;;  %v6589_v4 = vpop.eup %4481  ;;  %vm2496_vm11 = vweird.f32 %v4480_v41  ;;  %vm2495_vm13 = vweird.f32 %v6534_v54 }
 0x25c   : > { %v2483_v51 = vsel %vm2482_vm1, %v4474_v0, %v2479_v62  ;;  %4485 = vrcp.f32 %v6586_v49  ;;  %v2005_v39 = vmul.f32 %v6589_v4, %v6537_v48  ;;  %v6606_v27 = vadd.f32 %v6058_v53, %v2184_v1  ;;  %vm2497_vm14 = vmor %vm2495_vm13, %vm2496_vm11 }
 0x25d   : > { %v2488_v5 = vsel %vm6570_vm4, %v2487_v8, %v2483_v51  ;;  %v1997_v23 = vsel %vm1996_vm8, %v4476_v13, %v1993_v59  ;;  %v2492_v11 = vsub.f32 1.0, %v2491_v52  ;;  %v4014_v22 = vor.u32 %v4108_v19, %v4013_v21  ;;  %v4021_v51 = vld [vmem:[#allocation7 + $0x30] sm:$0xf] }
 0x25e   : > { %v2186_v29 = vpop.f32.mrf.mxu2  ;;  %v2857_v31 = vsel %vm2241_vm9, %v2488_v5, %v6417_v44  ;;  %v2002_v45 = vsel %vm6575_vm7, %v2001_v58, %v1997_v23  ;;  %v2502_v28 = vor.u32 1.1754944e-38, %v2501_v40  ;;  %vm2500_vm15 = vcmp.eq.f32.partialorder %v2499_v55, 8.507059e+37  ;;  %v4110_v58 = vld [vmem:[#allocation7 + $0x34] sm:$0xf0] }
 0x25f   : > { %v2889_v0 = vpack.c.bf16 %v2857_v31, %v2857_v31  ;;  %v2063_v56 = vmul.f32 %v2002_v45, %v6420_v34  ;;  %v2493_v13 = vmul.f32 %v4480_v41, %v2492_v11  ;;  %v6613_v63 = vadd.f32 %v6058_v53, %v2186_v29  ;;  %v4484_v34 = vpop.eup %4483  ;;  %3013 = vmatmul.bf16.gmra.mxu3 %v4014_v22 }
 0x260   : > { %v6615_v35 = vadd.f32 1.0, %v4484_v34  ;;  %v3973_v1 = vmul.f32 -1.442695, %v6606_v27  ;;  %v2006_v6 = vsub.f32 1.0, %v2005_v39  ;;  %v2514_v43 = vand.u32 2147483647, %v6586_v49 }
 0x261   : > { %2922 = vst.msk [vmem:[%s6218_s22 + $0x1c] sm:$0xf] %vm2914_vm12, %v2889_v0  ;;  %v6610_v44 = vpack.c.bf16 %v2063_v56, %v2062_v7  ;;  %v2494_v20 = vadd.f32 %v4480_v41, %v2493_v13  ;;  %v3974_v17 = vmul.f32 -1.442695, %v6613_v63  ;;  %v2516_v15 = vand.u32 2147483648, %v6586_v49 }
 0x262   : > { %v4486_v61 = vpop.eup %4485  ;;  %4487 = vrcp.f32 %v6615_v35  ;;  %v2007_v46 = vmul.f32 %v6589_v4, %v2006_v6  ;;  %vm2009_vm2 = vweird.f32 %v6537_v48  ;;  %vm2510_vm3 = vweird.f32 %v6586_v49 }
 0x263   : > { %v2498_v54 = vsel %vm2497_vm14, %v4480_v41, %v2494_v20  ;;  %3961 = vmatmul.msk.bf16.gmra.mxu2 %vm1288_vm10, %v6610_v44  ;;  %v2506_v53 = vmul.f32 %v4486_v61, %v6586_v49  ;;  %4489 = vpow2.f32 %v3973_v1  ;;  %vm2511_vm0 = vweird.f32 %v4486_v61 }
 0x264   : > { %v2503_v10 = vsel %vm2500_vm15, %v2502_v28, %v2498_v54  ;;  %4491 = vpow2.f32 %v3974_v17  ;;  %vm2010_vm4 = vweird.f32 %v6589_v4  ;;  %v2013_v62 = vand.u32 2147483647, %v6537_v48  ;;  %vm2512_vm5 = vmor %vm2510_vm3, %vm2511_vm0 }
 0x265   : > { %v2858_v18 = vsel %vm2241_vm9, %v2503_v10, %v6461_v57  ;;  %v2507_v50 = vsub.f32 1.0, %v2506_v53  ;;  %v2517_v8 = vor.u32 1.1754944e-38, %v2516_v15  ;;  %v2008_v24 = vadd.f32 %v6589_v4, %v2007_v46  ;;  %vm6658_vm7 = vmor %vm2009_vm2, %vm2010_vm4 }
 0x266   : > { %v2189_v38 = vpop.f32.mrf.mxu2  ;;  %v2890_v14 = vpack.c.bf16 %v2858_v18, %v2858_v18  ;;  %vm2515_vm6 = vcmp.eq.f32.partialorder %v2514_v43, 8.507059e+37  ;;  %v2015_v49 = vand.u32 2147483648, %v6537_v48  ;;  %v2028_v5 = vand.u32 2147483647, %v6615_v35 }
 0x267   : > { %v6631_v16 = vadd.f32 %v6628_v37, %v2189_v38  ;;  %v2508_v9 = vmul.f32 %v4486_v61, %v2507_v50  ;;  %v2030_v45 = vand.u32 2147483648, %v6615_v35  ;;  %v4022_v13 = vor.u32 %v4110_v58, %v4021_v51 }
 0x268   : > { %2923 = vst.msk [vmem:[%s6218_s22 + $0x20] sm:$0xf] %vm2914_vm12, %v2890_v14  ;;  %v4488_v41 = vpop.eup %4487  ;;  %v2016_v48 = vor.u32 1.1754944e-38, %v2015_v49  ;;  %vm2014_vm8 = vcmp.eq.f32.partialorder %v2013_v62, 8.507059e+37  ;;  %vm2024_vm11 = vweird.f32 %v6615_v35  ;;  %vm2029_vm14 = vcmp.eq.f32.partialorder %v2028_v5, 8.507059e+37 }
 0x269   : > { %v3975_v57 = vmul.f32 -1.442695, %v6631_v16  ;;  %v2509_v12 = vadd.f32 %v4486_v61, %v2508_v9  ;;  %v2020_v59 = vmul.f32 %v4488_v41, %v6615_v35  ;;  %v4490_v55 = vpop.eup %4489  ;;  %vm2025_vm1 = vweird.f32 %v4488_v41 }
 0x26a   : > { %v4492_v11 = vpop.eup %4491  ;;  %v6652_v40 = vadd.f32 1.0, %v4490_v55  ;;  %vm2026_vm13 = vmor %vm2024_vm11, %vm2025_vm1 }
 0x26b   : > { %4493 = vpow2.f32 %v3975_v57  ;;  %v2513_v30 = vsel %vm2512_vm5, %v4486_v61, %v2509_v12  ;;  %v2021_v31 = vsub.f32 1.0, %v2020_v59  ;;  %v6662_v0 = vadd.f32 1.0, %v4492_v11 }
 0x26c   : > { %v2518_v29 = vsel %vm2515_vm6, %v2517_v8, %v2513_v30  ;;  %4495 = vrcp.f32 %v6652_v40  ;;  %v2031_v61 = vor.u32 1.1754944e-38, %v2030_v45  ;;  %v2529_v14 = vand.u32 2147483647, %v6652_v40 }
 0x26d   : > { %v2859_v7 = vsel %vm2241_vm9, %v2518_v29, %v6511_v26  ;;  %v2012_v26 = vsel %vm6658_vm7, %v6589_v4, %v2008_v24  ;;  %v2022_v39 = vmul.f32 %v4488_v41, %v2021_v31  ;;  %4497 = vrcp.f32 %v6662_v0 }
 0x26e   : > { %v2191_v52 = vpop.f32.mrf.mxu2  ;;  %v2891_v19 = vpack.c.bf16 %v2859_v7, %v2859_v7  ;;  %v2017_v28 = vsel %vm2014_vm8, %v2016_v48, %v2012_v26  ;;  %vm2525_vm15 = vweird.f32 %v6652_v40  ;;  %v2531_v9 = vand.u32 2147483648, %v6652_v40 }
 0x26f   : > { %v6646_v23 = vadd.f32 %v6628_v37, %v2191_v52  ;;  %v2023_v22 = vadd.f32 %v4488_v41, %v2022_v39  ;;  %3018 = vmatmul.bf16.gmra.mxu3 %v4022_v13  ;;  %v2064_v53 = vmul.f32 %v2017_v28, %v6464_v60  ;;  %vm2540_vm0 = vweird.f32 %v6662_v0 }
 0x270   : > { %2924 = vst.msk [vmem:[%s6218_s22 + $0x24] sm:$0xf] %vm2914_vm12, %v2891_v19  ;;  %v2546_v57 = vand.u32 2147483648, %v6662_v0  ;;  %v2544_v62 = vand.u32 2147483647, %v6662_v0  ;;  %vm6694_vm3 = vcmp.eq.f32.partialorder %v2529_v14, 8.507059e+37 }
 0x271   : > { %v3976_v56 = vmul.f32 -1.442695, %v6646_v23  ;;  %v4494_v20 = vpop.eup %4493  ;;  %v2027_v4 = vsel %vm2026_vm13, %v4488_v41, %v2023_v22  ;;  %v2532_v51 = vor.u32 1.1754944e-38, %v2531_v9 }
 0x272   : > { %v6673_v34 = vadd.f32 1.0, %v4494_v20  ;;  %v2032_v1 = vsel %vm2029_vm14, %v2031_v61, %v2027_v4  ;;  %v4496_v6 = vpop.eup %4495  ;;  %v2547_v29 = vor.u32 1.1754944e-38, %v2546_v57  ;;  %vm2545_vm1 = vcmp.eq.f32.partialorder %v2544_v62, 8.507059e+37 }
 0x273   : > { %4499 = vpow2.f32 %v3976_v56  ;;  %v2065_v35 = vmul.f32 %v2032_v1, %v6540_v42  ;;  %v4498_v17 = vpop.eup %4497  ;;  %v2521_v38 = vmul.f32 %v4496_v6, %v6652_v40  ;;  %vm2526_vm2 = vweird.f32 %v4496_v6 }
 0x274   : > { %4501 = vrcp.f32 %v6673_v34  ;;  %v2536_v50 = vmul.f32 %v4498_v17, %v6662_v0  ;;  %vm2541_vm4 = vweird.f32 %v4498_v17  ;;  %vm2527_vm5 = vmor %vm2525_vm15, %vm2526_vm2  ;;  %v2559_v5 = vand.u32 2147483647, %v6673_v34 }
 0x275   : > { %v2081_v18 = vpack.c.bf16 %v2065_v35, %v2064_v53  ;;  %v2522_v46 = vsub.f32 1.0, %v2521_v38  ;;  %v2561_v11 = vand.u32 2147483648, %v6673_v34  ;;  %vm2542_vm6 = vmor %vm2540_vm0, %vm2541_vm4  ;;  %vm2555_vm8 = vweird.f32 %v6673_v34 }
 0x276   : > { %v2194_v54 = vpop.f32.mrf.mxu2  ;;  %v2537_v42 = vsub.f32 1.0, %v2536_v50  ;;  %vm2560_vm13 = vcmp.eq.f32.partialorder %v2559_v5, 8.507059e+37 }
 0x277   : > { %v6677_v10 = vadd.f32 %v6628_v37, %v2194_v54  ;;  %3962 = vmatmul.msk.bf16.gmra.mxu2 %vm1288_vm10, %v2081_v18  ;;  %3024 = vmatpush.bf16.msrb.mxu3 %v2081_v18  ;;  %v2523_v41 = vmul.f32 %v4496_v6, %v2522_v46  ;;  %v2562_v48 = vor.u32 1.1754944e-38, %v2561_v11 }
 0x278   : > { %v2538_v30 = vmul.f32 %v4498_v17, %v2537_v42 }
 0x279   : > { %v3977_v43 = vmul.f32 -1.442695, %v6677_v10  ;;  %v4500_v15 = vpop.eup %4499  ;;  %v2524_v52 = vadd.f32 %v4496_v6, %v2523_v41 }
 0x27a   : > { %v4502_v60 = vpop.eup %4501  ;;  %v6689_v12 = vadd.f32 1.0, %v4500_v15  ;;  %v2539_v49 = vadd.f32 %v4498_v17, %v2538_v30 }
 0x27b   : > { %4503 = vpow2.f32 %v3977_v43  ;;  %v2551_v8 = vmul.f32 %v4502_v60, %v6673_v34  ;;  %3025 = vmatpush.bf16.msrb.mxu3 %v6610_v44  ;;  %v2528_v7 = vsel %vm2527_vm5, %v4496_v6, %v2524_v52  ;;  %vm2556_vm7 = vweird.f32 %v4502_v60  ;;  %v3999_v52 = vld [vmem:[#allocation7 + $0x8] sm:$0xf0] }
 0x27c   : > { %4505 = vrcp.f32 %v6689_v12  ;;  %v2533_v40 = vsel %vm6694_vm3, %v2532_v51, %v2528_v7  ;;  %v2543_v19 = vsel %vm2542_vm6, %v4498_v17, %v2539_v49  ;;  %vm2557_vm11 = vmor %vm2555_vm8, %vm2556_vm7  ;;  %v2576_v1 = vand.u32 2147483648, %v6689_v12 }
 0x27d   : > { %v2552_v58 = vsub.f32 1.0, %v2551_v8  ;;  %v2860_v44 = vsel %vm2241_vm9, %v2533_v40, %v6606_v27  ;;  %v2548_v56 = vsel %vm2545_vm1, %v2547_v29, %v2543_v19  ;;  %v2574_v53 = vand.u32 2147483647, %v6689_v12 }
 0x27e   : > { %v2196_v59 = vpop.f32.mrf.mxu2  ;;  %v2892_v39 = vpack.c.bf16 %v2860_v44, %v2860_v44  ;;  %v2861_v20 = vsel %vm2241_vm9, %v2548_v56, %v6613_v63  ;;  %vm2570_vm15 = vweird.f32 %v6689_v12  ;;  %v2577_v14 = vor.u32 1.1754944e-38, %v2576_v1 }
 0x27f   : > { %v6700_v55 = vadd.f32 %v6628_v37, %v2196_v59  ;;  %v2553_v31 = vmul.f32 %v4502_v60, %v2552_v58  ;;  %3026 = vmatpush.bf16.msrb.mxu3 %v6506_v3  ;;  %v2893_v22 = vpack.c.bf16 %v2861_v20, %v2861_v20  ;;  %vm2575_vm2 = vcmp.eq.f32.partialorder %v2574_v53, 8.507059e+37 }
 0x280   : > { %2925 = vst.msk [vmem:[%s6218_s22 + $0x28] sm:$0xf] %vm2914_vm12, %v2892_v39 }
 0x281   : > { %v3978_v45 = vmul.f32 -1.442695, %v6700_v55  ;;  %v4504_v21 = vpop.eup %4503  ;;  %v2554_v0 = vadd.f32 %v4502_v60, %v2553_v31  ;;  %2926 = vst.msk [vmem:[%s6218_s22 + $0x2c] sm:$0xf] %vm2914_vm12, %v2893_v22 }
 0x282   : > { %v6716_v13 = vadd.f32 1.0, %v4504_v21  ;;  %v4506_v26 = vpop.eup %4505 }
 0x283   : > { %4507 = vpow2.f32 %v3978_v45  ;;  %v2558_v34 = vsel %vm2557_vm11, %v4502_v60, %v2554_v0  ;;  %v2566_v27 = vmul.f32 %v4506_v26, %v6689_v12  ;;  %3027 = vmatpush.bf16.msrb.mxu3 %v6406_v36  ;;  %vm2571_vm14 = vweird.f32 %v4506_v26 }
 0x284   : > { %v2563_v28 = vsel %vm2560_vm13, %v2562_v48, %v2558_v34  ;;  %4509 = vrcp.f32 %v6716_v13  ;;  %vm2572_vm0 = vmor %vm2570_vm15, %vm2571_vm14  ;;  %v2589_v41 = vand.u32 2147483647, %v6716_v13  ;;  %vm2585_vm4 = vweird.f32 %v6716_v13 }
 0x285   : > { %v2862_v63 = vsel %vm2241_vm9, %v2563_v28, %v6631_v16  ;;  %v2567_v3 = vsub.f32 1.0, %v2566_v27 }
 0x286   : > { %v2199_v61 = vpop.f32.mrf.mxu2  ;;  %v2894_v54 = vpack.c.bf16 %v2862_v63, %v2862_v63  ;;  %vm2590_vm6 = vcmp.eq.f32.partialorder %v2589_v41, 8.507059e+37 }
 0x287   : > { %v6732_v4 = vadd.f32 %v6628_v37, %v2199_v61  ;;  %v2568_v6 = vmul.f32 %v4506_v26, %v2567_v3  ;;  %3028 = vmatpush.bf16.msrb.mxu3 %v6328_v47  ;;  %v2591_v47 = vand.u32 2147483648, %v6716_v13 }
 0x288   : > { %2927 = vst.msk [vmem:[%s6218_s22 + $0x30] sm:$0xf] %vm2914_vm12, %v2894_v54 }
 0x289   : > { %v3979_v35 = vmul.f32 -1.442695, %v6732_v4  ;;  %v4508_v17 = vpop.eup %4507  ;;  %v2569_v38 = vadd.f32 %v4506_v26, %v2568_v6  ;;  %v2592_v30 = vor.u32 1.1754944e-38, %v2591_v47 }
 0x28a   : > { %v6741_v16 = vadd.f32 1.0, %v4508_v17  ;;  %v4510_v18 = vpop.eup %4509  ;;  %v4105_v17 = vld [vmem:[#allocation7 + $0x14] sm:$0xf] }
 0x28b   : > { %4511 = vpow2.f32 %v3979_v35  ;;  %v2573_v36 = vsel %vm2572_vm0, %v4506_v26, %v2569_v38  ;;  %v2581_v50 = vmul.f32 %v4510_v18, %v6716_v13  ;;  %3029 = vmatpush.bf16.msrb.mxu3 %v6225_v25  ;;  %vm2586_vm3 = vweird.f32 %v4510_v18  ;;  %v4103_v25 = vld [vmem:[#allocation7 + $0x4] sm:$0xf]  ;;  %v4007_v38 = vld [vmem:[#allocation7 + $0x18] sm:$0xf0] }
 0x28c   : > { %4513 = vrcp.f32 %v6741_v16  ;;  %v2578_v43 = vsel %vm2575_vm2, %v2577_v14, %v2573_v36  ;;  %vm2587_vm5 = vmor %vm2585_vm4, %vm2586_vm3  ;;  %v2606_v11 = vand.u32 2147483648, %v6741_v16  ;;  %v4002_v7 = vor.u32 %v4103_v25, %v3999_v52 }
 0x28d   : > { %v2863_v46 = vsel %vm2241_vm9, %v2578_v43, %v6646_v23  ;;  %v2582_v9 = vsub.f32 1.0, %v2581_v50  ;;  %v2604_v21 = vand.u32 2147483647, %v6741_v16  ;;  %vm2600_vm1 = vweird.f32 %v6741_v16 }
 0x28e   : > { %v2201_v15 = vpop.f32.mrf.mxu2  ;;  %v2895_v42 = vpack.c.bf16 %v2863_v46, %v2863_v46  ;;  %v2607_v0 = vor.u32 1.1754944e-38, %v2606_v11  ;;  %v4010_v43 = vor.u32 %v4105_v17, %v4007_v38 }
 0x28f   : > { %v6750_v60 = vadd.f32 %v6628_v37, %v2201_v15  ;;  %v2583_v12 = vmul.f32 %v4510_v18, %v2582_v9  ;;  %3030 = vmatpush.bf16.msrb.mxu3 %v6156_v32  ;;  %vm2605_vm11 = vcmp.eq.f32.partialorder %v2604_v21, 8.507059e+37 }
 0x290   : > { %2928 = vst.msk [vmem:[%s6218_s22 + $0x34] sm:$0xf] %vm2914_vm12, %v2895_v42 }
 0x291   : > { %v4512_v57 = vpop.eup %4511  ;;  %v3980_v62 = vmul.f32 -1.442695, %v6750_v60  ;;  %v2584_v24 = vadd.f32 %v4510_v18, %v2583_v12 }
 0x292   : > { %v2354_v8 = vadd.f32 1.0, %v4512_v57  ;;  %v4514_v23 = vpop.eup %4513 }
 0x293   : > { %4515 = vpow2.f32 %v3980_v62  ;;  %v2596_v59 = vmul.f32 %v4514_v23, %v6741_v16  ;;  %v2588_v51 = vsel %vm2587_vm5, %v4510_v18, %v2584_v24  ;;  %vm2601_vm7 = vweird.f32 %v4514_v23  ;;  %3031 = vmatpush.bf16.msrb.mxu3 %v6076_v33 }
 0x294   : > { %4517 = vrcp.f32 %v2354_v8  ;;  %v2593_v58 = vsel %vm2590_vm6, %v2592_v30, %v2588_v51  ;;  %vm2602_vm8 = vmor %vm2600_vm1, %vm2601_vm7  ;;  %v2619_v48 = vand.u32 2147483647, %v2354_v8  ;;  %v2621_v22 = vand.u32 2147483648, %v2354_v8 }
 0x295   : > { %v2597_v49 = vsub.f32 1.0, %v2596_v59  ;;  %v2864_v5 = vsel %vm2241_vm9, %v2593_v58, %v6677_v10  ;;  %vm2615_vm14 = vweird.f32 %v2354_v8 }
 0x296   : > { %v2204_v29 = vpop.f32.mrf.mxu2  ;;  %v2896_v45 = vpack.c.bf16 %v2864_v5, %v2864_v5  ;;  %3032 = vmatmul.bf16.vlgmr.msrb.gmra.mxu3 %v4002_v7  ;;  %v2622_v6 = vor.u32 1.1754944e-38, %v2621_v22  ;;  %vm2620_vm0 = vcmp.eq.f32.partialorder %v2619_v48, 8.507059e+37 }
 0x297   : > { %v6766_v31 = vadd.f32 %v6628_v37, %v2204_v29  ;;  %v2598_v32 = vmul.f32 %v4514_v23, %v2597_v49 }
 0x298   : > { %2929 = vst.msk [vmem:[%s6218_s22 + $0x38] sm:$0xf] %vm2914_vm12, %v2896_v45 }
 0x299   : > { %v4516_v40 = vpop.eup %4515  ;;  %v3981_v19 = vmul.f32 -1.442695, %v6766_v31  ;;  %v2599_v10 = vadd.f32 %v4514_v23, %v2598_v32 }
 0x29a   : > { %v4518_v44 = vpop.eup %4517  ;;  %v2355_v56 = vadd.f32 1.0, %v4516_v40 }
 0x29b   : > { %v2611_v13 = vmul.f32 %v4518_v44, %v2354_v8  ;;  %4519 = vpow2.f32 %v3981_v19  ;;  %v2603_v26 = vsel %vm2602_vm8, %v4514_v23, %v2599_v10  ;;  %vm2616_vm13 = vweird.f32 %v4518_v44  ;;  %v4107_v19 = vld [vmem:[#allocation7 + $0x24] sm:$0xf] }
 0x29c   : > { %4521 = vrcp.f32 %v2355_v56  ;;  %v2608_v33 = vsel %vm2605_vm11, %v2607_v0, %v2603_v26  ;;  %vm2617_vm15 = vmor %vm2615_vm14, %vm2616_vm13  ;;  %v2636_v50 = vand.u32 2147483648, %v2355_v56  ;;  %v2634_v9 = vand.u32 2147483647, %v2355_v56 }
 0x29d   : > { %v2612_v39 = vsub.f32 1.0, %v2611_v13  ;;  %v2865_v20 = vsel %vm2241_vm9, %v2608_v33, %v6700_v55  ;;  %vm2630_vm3 = vweird.f32 %v2355_v56 }
 0x29e   : > { %v2206_v34 = vpop.f32.mrf.mxu2  ;;  %v2897_v27 = vpack.c.bf16 %v2865_v20, %v2865_v20  ;;  %vm2635_vm5 = vcmp.eq.f32.partialorder %v2634_v9, 8.507059e+37 }
 0x29f   : > { %v2613_v28 = vmul.f32 %v4518_v44, %v2612_v39  ;;  %v6778_v61 = vadd.f32 %v6628_v37, %v2206_v34 }
 0x2a0   : > { %2930 = vst.msk [vmem:[%s6218_s22 + $0x3c] sm:$0xf] %vm2914_vm12, %v2897_v27 }
 0x2a1   : > { %v4520_v63 = vpop.eup %4519  ;;  %v2614_v3 = vadd.f32 %v4518_v44, %v2613_v28  ;;  %v3982_v54 = vmul.f32 -1.442695, %v6778_v61 }
 0x2a2   : > { %v4522_v1 = vpop.eup %4521  ;;  %v2356_v55 = vadd.f32 1.0, %v4520_v63 }
 0x2a3   : > { %v2618_v53 = vsel %vm2617_vm15, %v4518_v44, %v2614_v3  ;;  %v2626_v35 = vmul.f32 %v4522_v1, %v2355_v56  ;;  %4523 = vpow2.f32 %v3982_v54  ;;  %vm2631_vm2 = vweird.f32 %v4522_v1  ;;  %v4015_v44 = vld [vmem:[#allocation7 + $0x28] sm:$0xf0] }
 0x2a4   : > { %v2623_v16 = vsel %vm2620_vm0, %v2622_v6, %v2618_v53  ;;  %4525 = vrcp.f32 %v2356_v55  ;;  %vm2632_vm4 = vmor %vm2630_vm3, %vm2631_vm2  ;;  %v2651_v52 = vand.u32 2147483648, %v2356_v55  ;;  %v2649_v49 = vand.u32 2147483647, %v2356_v55 }
 0x2a5   : > { %v2866_v18 = vsel %vm2241_vm9, %v2623_v16, %v6732_v4  ;;  %v2627_v14 = vsub.f32 1.0, %v2626_v35  ;;  %v2637_v4 = vor.u32 1.1754944e-38, %v2636_v50  ;;  %vm2645_vm7 = vweird.f32 %v2356_v55 }
 0x2a6   : > { %v2898_v36 = vpack.c.bf16 %v2866_v18, %v2866_v18  ;;  %v2209_v15 = vpop.f32.mrf.mxu2  ;;  %3037 = vmatmul.bf16.gmra.mxu3 %v4010_v43  ;;  %vm2650_vm8 = vcmp.eq.f32.partialorder %v2649_v49, 8.507059e+37  ;;  %v4018_v33 = vor.u32 %v4107_v19, %v4015_v44 }
 0x2a7   : > { %v2628_v46 = vmul.f32 %v4522_v1, %v2627_v14  ;;  %v6787_v42 = vadd.f32 %v6628_v37, %v2209_v15 }
 0x2a8   : > { %2931 = vst.msk [vmem:[%s6218_s22 + $0x40] sm:$0xf] %vm2914_vm12, %v2898_v36 }
 0x2a9   : > { %v4524_v47 = vpop.eup %4523  ;;  %v2629_v57 = vadd.f32 %v4522_v1, %v2628_v46  ;;  %v3983_v12 = vmul.f32 -1.442695, %v6787_v42 }
 0x2aa   : > { %v4526_v41 = vpop.eup %4525  ;;  %v2357_v62 = vadd.f32 1.0, %v4524_v47 }
 0x2ab   : > { %v2633_v8 = vsel %vm2632_vm4, %v4522_v1, %v2629_v57  ;;  %v2641_v23 = vmul.f32 %v4526_v41, %v2356_v55  ;;  %4527 = vpow2.f32 %v3983_v12  ;;  %vm2646_vm6 = vweird.f32 %v4526_v41  ;;  %v4109_v57 = vld [vmem:[#allocation7 + $0x34] sm:$0xf]  ;;  %v4023_v12 = vld [vmem:[#allocation7 + $0x38] sm:$0xf0] }
 0x2ac   : > { %v2638_v24 = vsel %vm2635_vm5, %v2637_v4, %v2633_v8  ;;  %4529 = vrcp.f32 %v2357_v62  ;;  %vm2647_vm1 = vmor %vm2645_vm7, %vm2646_vm6  ;;  %v2666_v26 = vand.u32 2147483648, %v2357_v62  ;;  %v2664_v48 = vand.u32 2147483647, %v2357_v62 }
 0x2ad   : > { %v2867_v30 = vsel %vm2241_vm9, %v2638_v24, %v6750_v60  ;;  %v2642_v59 = vsub.f32 1.0, %v2641_v23  ;;  %v2652_v60 = vor.u32 1.1754944e-38, %v2651_v52  ;;  %vm2660_vm13 = vweird.f32 %v2357_v62 }
 0x2ae   : > { %v2899_v25 = vpack.c.bf16 %v2867_v30, %v2867_v30  ;;  %v2211_v51 = vpop.f32.mrf.mxu2  ;;  %vm2665_vm15 = vcmp.eq.f32.partialorder %v2664_v48, 8.507059e+37  ;;  %v4026_v24 = vor.u32 %v4109_v57, %v4023_v12 }
 0x2af   : > { %v2643_v58 = vmul.f32 %v4526_v41, %v2642_v59  ;;  %v6796_v29 = vadd.f32 %v6628_v37, %v2211_v51 }
 0x2b0   : > { %2932 = vst.msk [vmem:[%s6218_s22 + $0x44] sm:$0xf] %vm2914_vm12, %v2899_v25 }
 0x2b1   : > { %v4528_v5 = vpop.eup %4527  ;;  %v2644_v11 = vadd.f32 %v4526_v41, %v2643_v58  ;;  %v3984_v7 = vmul.f32 -1.442695, %v6796_v29 }
 0x2b2   : > { %v4530_v45 = vpop.eup %4529  ;;  %v2358_v32 = vadd.f32 1.0, %v4528_v5 }
 0x2b3   : > { %v2648_v21 = vsel %vm2647_vm1, %v4526_v41, %v2644_v11  ;;  %v2656_v40 = vmul.f32 %v4530_v45, %v2357_v62  ;;  %4531 = vpow2.f32 %v3984_v7  ;;  %vm2661_vm11 = vweird.f32 %v4530_v45 }
 0x2b4   : > { %v2653_v10 = vsel %vm2650_vm8, %v2652_v60, %v2648_v21  ;;  %4533 = vrcp.f32 %v2358_v32  ;;  %vm2662_vm14 = vmor %vm2660_vm13, %vm2661_vm11  ;;  %v2681_v17 = vand.u32 2147483648, %v2358_v32  ;;  %v2679_v18 = vand.u32 2147483647, %v2358_v32 }
 0x2b5   : > { %v2868_v56 = vsel %vm2241_vm9, %v2653_v10, %v6766_v31  ;;  %v2657_v0 = vsub.f32 1.0, %v2656_v40  ;;  %v2667_v31 = vor.u32 1.1754944e-38, %v2666_v26  ;;  %vm2675_vm2 = vweird.f32 %v2358_v32 }
 0x2b6   : > { %v2900_v13 = vpack.c.bf16 %v2868_v56, %v2868_v56  ;;  %v2214_v39 = vpop.f32.mrf.mxu2  ;;  %3042 = vmatmul.bf16.gmra.mxu3 %v4018_v33  ;;  %vm2680_vm4 = vcmp.eq.f32.partialorder %v2679_v18, 8.507059e+37 }
 0x2b7   : > { %v2658_v20 = vmul.f32 %v4530_v45, %v2657_v0  ;;  %v6805_v22 = vadd.f32 %v6628_v37, %v2214_v39 }
 0x2b8   : > { %2933 = vst.msk [vmem:[%s6218_s22 + $0x48] sm:$0xf] %vm2914_vm12, %v2900_v13  ;;  %v6836_v13 = vpop.f32.mrf.mxu3 }
 0x2b9   : > { %v4532_v34 = vpop.eup %4531  ;;  %v2659_v27 = vadd.f32 %v4530_v45, %v2658_v20  ;;  %v3985_v28 = vmul.f32 -1.442695, %v6805_v22 }
 0x2ba   : > { %v4534_v63 = vpop.eup %4533  ;;  %v2359_v3 = vadd.f32 1.0, %v4532_v34 }
 0x2bb   : > { %v2663_v54 = vsel %vm2662_vm14, %v4530_v45, %v2659_v27  ;;  %v2671_v1 = vmul.f32 %v4534_v63, %v2358_v32  ;;  %4535 = vpow2.f32 %v3985_v28  ;;  %vm2676_vm0 = vweird.f32 %v4534_v63 }
 0x2bc   : > { %v2668_v6 = vsel %vm2665_vm15, %v2667_v31, %v2663_v54  ;;  %4537 = vrcp.f32 %v2359_v3  ;;  %vm2677_vm3 = vmor %vm2675_vm2, %vm2676_vm0  ;;  %v2696_v23 = vand.u32 2147483648, %v2359_v3  ;;  %v2694_v25 = vand.u32 2147483647, %v2359_v3 }
 0x2bd   : > { %v2869_v55 = vsel %vm2241_vm9, %v2668_v6, %v6778_v61  ;;  %v2672_v53 = vsub.f32 1.0, %v2671_v1  ;;  %v2682_v61 = vor.u32 1.1754944e-38, %v2681_v17  ;;  %vm2690_vm6 = vweird.f32 %v2359_v3 }
 0x2be   : > { %v2901_v35 = vpack.c.bf16 %v2869_v55, %v2869_v55  ;;  %v2216_v38 = vpop.f32.mrf.mxu2  ;;  %vm2695_vm1 = vcmp.eq.f32.partialorder %v2694_v25, 8.507059e+37 }
 0x2bf   : > { %v2673_v16 = vmul.f32 %v4534_v63, %v2672_v53  ;;  %v6814_v14 = vadd.f32 %v6628_v37, %v2216_v38 }
 0x2c0   : > { %2934 = vst.msk [vmem:[%s6218_s22 + $0x4c] sm:$0xf] %vm2914_vm12, %v2901_v35 }
 0x2c1   : > { %v4536_v36 = vpop.eup %4535  ;;  %v2674_v50 = vadd.f32 %v4534_v63, %v2673_v16  ;;  %v3986_v43 = vmul.f32 -1.442695, %v6814_v14 }
 0x2c2   : > { %v4538_v15 = vpop.eup %4537  ;;  %v2360_v46 = vadd.f32 1.0, %v4536_v36  ;;  %v6848_v36 = vpop.f32.mrf.mxu3 }
 0x2c3   : > { %v2678_v9 = vsel %vm2677_vm3, %v4534_v63, %v2674_v50  ;;  %v2686_v47 = vmul.f32 %v4538_v15, %v2359_v3  ;;  %4539 = vpow2.f32 %v3986_v43  ;;  %vm2691_vm5 = vweird.f32 %v4538_v15 }
 0x2c4   : > { %v2683_v41 = vsel %vm2680_vm4, %v2682_v61, %v2678_v9  ;;  %4541 = vrcp.f32 %v2360_v46  ;;  %vm2692_vm7 = vmor %vm2690_vm6, %vm2691_vm5  ;;  %v2711_v19 = vand.u32 2147483648, %v2360_v46  ;;  %v2709_v56 = vand.u32 2147483647, %v2360_v46 }
 0x2c5   : > { %v2870_v4 = vsel %vm2241_vm9, %v2683_v41, %v6787_v42  ;;  %v2687_v62 = vsub.f32 1.0, %v2686_v47  ;;  %v2697_v42 = vor.u32 1.1754944e-38, %v2696_v23  ;;  %vm2705_vm11 = vweird.f32 %v2360_v46 }
 0x2c6   : > { %v2902_v8 = vpack.c.bf16 %v2870_v4, %v2870_v4  ;;  %v2219_v30 = vpop.f32.mrf.mxu2  ;;  %3047 = vmatmul.bf16.gmra.mxu3 %v4026_v24  ;;  %v2712_v20 = vor.u32 1.1754944e-38, %v2711_v19  ;;  %vm2710_vm14 = vcmp.eq.f32.partialorder %v2709_v56, 8.507059e+37 }
 0x2c7   : > { %v2688_v59 = vmul.f32 %v4538_v15, %v2687_v62  ;;  %v6823_v52 = vadd.f32 %v6628_v37, %v2219_v30 }
 0x2c8   : > { %2935 = vst.msk [vmem:[%s6218_s22 + $0x50] sm:$0xf] %vm2914_vm12, %v2902_v8 }
 0x2c9   : > { %v4540_v51 = vpop.eup %4539  ;;  %v2689_v58 = vadd.f32 %v4538_v15, %v2688_v59  ;;  %v3987_v49 = vmul.f32 -1.442695, %v6823_v52 }
 0x2ca   : > { %v4542_v5 = vpop.eup %4541  ;;  %v2361_v11 = vadd.f32 1.0, %v4540_v51 }
 0x2cb   : > { %v2693_v7 = vsel %vm2692_vm7, %v4538_v15, %v2689_v58  ;;  %v2701_v45 = vmul.f32 %v4542_v5, %v2360_v46  ;;  %4543 = vpow2.f32 %v3987_v49  ;;  %vm2706_vm8 = vweird.f32 %v4542_v5  ;;  %v6859_v58 = vpop.f32.mrf.mxu3 }
 0x2cc   : > { %v2698_v60 = vsel %vm2695_vm1, %v2697_v42, %v2693_v7  ;;  %4545 = vrcp.f32 %v2361_v11  ;;  %vm2707_vm13 = vmor %vm2705_vm11, %vm2706_vm8  ;;  %v2726_v54 = vand.u32 2147483648, %v2361_v11  ;;  %v2724_v55 = vand.u32 2147483647, %v2361_v11 }
 0x2cd   : > { %v2871_v32 = vsel %vm2241_vm9, %v2698_v60, %v6796_v29  ;;  %v2702_v21 = vsub.f32 1.0, %v2701_v45  ;;  %vm2720_vm0 = vweird.f32 %v2361_v11 }
 0x2ce   : > { %v2903_v40 = vpack.c.bf16 %v2871_v32, %v2871_v32  ;;  %v2221_v44 = vpop.f32.mrf.mxu2  ;;  %vm2725_vm3 = vcmp.eq.f32.partialorder %v2724_v55, 8.507059e+37 }
 0x2cf   : > { %v2703_v10 = vmul.f32 %v4542_v5, %v2702_v21  ;;  %v6832_v0 = vadd.f32 %v6628_v37, %v2221_v44 }
 0x2d0   : > { %2936 = vst.msk [vmem:[%s6218_s22 + $0x54] sm:$0xf] %vm2914_vm12, %v2903_v40 }
 0x2d1   : > { %v4544_v26 = vpop.eup %4543  ;;  %v2704_v33 = vadd.f32 %v4542_v5, %v2703_v10  ;;  %v3988_v39 = vmul.f32 -1.442695, %v6832_v0 }
 0x2d2   : > { %v4546_v29 = vpop.eup %4545  ;;  %v2362_v48 = vadd.f32 1.0, %v4544_v26 }
 0x2d3   : > { %v2708_v34 = vsel %vm2707_vm13, %v4542_v5, %v2704_v33  ;;  %v2716_v27 = vmul.f32 %v4546_v29, %v2361_v11  ;;  %4547 = vpow2.f32 %v3988_v39  ;;  %vm2721_vm15 = vweird.f32 %v4546_v29 }
 0x2d4   : > { %v2713_v28 = vsel %vm2710_vm14, %v2712_v20, %v2708_v34  ;;  %4549 = vrcp.f32 %v2362_v48  ;;  %vm2722_vm2 = vmor %vm2720_vm0, %vm2721_vm15  ;;  %v2741_v47 = vand.u32 2147483648, %v2362_v48  ;;  %v2739_v41 = vand.u32 2147483647, %v2362_v48  ;;  %v6873_v34 = vpop.f32.mrf.mxu3 }
 0x2d5   : > { %v2872_v63 = vsel %vm2241_vm9, %v2713_v28, %v6805_v22  ;;  %v2717_v31 = vsub.f32 1.0, %v2716_v27  ;;  %v2727_v22 = vor.u32 1.1754944e-38, %v2726_v54  ;;  %vm2735_vm5 = vweird.f32 %v2362_v48 }
 0x2d6   : > { %v2904_v3 = vpack.c.bf16 %v2872_v63, %v2872_v63  ;;  %v2224_v1 = vpop.f32.mrf.mxu2  ;;  %vm2740_vm7 = vcmp.eq.f32.partialorder %v2739_v41, 8.507059e+37 }
 0x2d7   : > { %v2718_v6 = vmul.f32 %v4546_v29, %v2717_v31  ;;  %v6843_v53 = vadd.f32 %v6628_v37, %v2224_v1 }
 0x2d8   : > { %2937 = vst.msk [vmem:[%s6218_s22 + $0x58] sm:$0xf] %vm2914_vm12, %v2904_v3 }
 0x2d9   : > { %v4548_v35 = vpop.eup %4547  ;;  %v2719_v17 = vadd.f32 %v4546_v29, %v2718_v6  ;;  %v3989_v38 = vmul.f32 -1.442695, %v6843_v53 }
 0x2da   : > { %v4550_v16 = vpop.eup %4549  ;;  %v2363_v18 = vadd.f32 1.0, %v4548_v35 }
 0x2db   : > { %v2723_v50 = vsel %vm2722_vm2, %v4546_v29, %v2719_v17  ;;  %v2731_v43 = vmul.f32 %v4550_v16, %v2362_v48  ;;  %4551 = vpow2.f32 %v3989_v38  ;;  %vm2736_vm4 = vweird.f32 %v4550_v16 }
 0x2dc   : > { %v2728_v15 = vsel %vm2725_vm3, %v2727_v22, %v2723_v50  ;;  %4553 = vrcp.f32 %v2363_v18  ;;  %vm2737_vm6 = vmor %vm2735_vm5, %vm2736_vm4  ;;  %v2756_v11 = vand.u32 2147483648, %v2363_v18  ;;  %v2754_v45 = vand.u32 2147483647, %v2363_v18 }
 0x2dd   : > { %v2873_v61 = vsel %vm2241_vm9, %v2728_v15, %v6814_v14  ;;  %v2732_v46 = vsub.f32 1.0, %v2731_v43  ;;  %v2742_v14 = vor.u32 1.1754944e-38, %v2741_v47  ;;  %vm2750_vm8 = vweird.f32 %v2363_v18 }
 0x2de   : > { %v2905_v9 = vpack.c.bf16 %v2873_v61, %v2873_v61  ;;  %v2226_v57 = vpop.f32.mrf.mxu2  ;;  %v2757_v44 = vor.u32 1.1754944e-38, %v2756_v11  ;;  %vm2755_vm13 = vcmp.eq.f32.partialorder %v2754_v45, 8.507059e+37 }
 0x2df   : > { %v2733_v12 = vmul.f32 %v4550_v16, %v2732_v46  ;;  %v6854_v4 = vadd.f32 %v6628_v37, %v2226_v57 }
 0x2e0   : > { %2938 = vst.msk [vmem:[%s6218_s22 + $0x5c] sm:$0xf] %vm2914_vm12, %v2905_v9 }
 0x2e1   : > { %v4552_v62 = vpop.eup %4551  ;;  %v2734_v8 = vadd.f32 %v4550_v16, %v2733_v12  ;;  %v3990_v23 = vmul.f32 -1.442695, %v6854_v4 }
 0x2e2   : > { %v4554_v24 = vpop.eup %4553  ;;  %v2364_v30 = vadd.f32 1.0, %v4552_v62  ;;  %v6886_v15 = vpop.f32.mrf.mxu3 }
 0x2e3   : > { %v2738_v59 = vsel %vm2737_vm6, %v4550_v16, %v2734_v8  ;;  %v2746_v25 = vmul.f32 %v4554_v24, %v2363_v18  ;;  %4555 = vpow2.f32 %v3990_v23  ;;  %vm2751_vm1 = vweird.f32 %v4554_v24 }
 0x2e4   : > { %v2743_v51 = vsel %vm2740_vm7, %v2742_v14, %v2738_v59  ;;  %4557 = vrcp.f32 %v2364_v30  ;;  %vm2752_vm11 = vmor %vm2750_vm8, %vm2751_vm1  ;;  %v2771_v48 = vand.u32 2147483648, %v2364_v30  ;;  %v2769_v28 = vand.u32 2147483647, %v2364_v30 }
 0x2e5   : > { %v2874_v49 = vsel %vm2241_vm9, %v2743_v51, %v6823_v52  ;;  %v2747_v5 = vsub.f32 1.0, %v2746_v25  ;;  %vm2765_vm15 = vweird.f32 %v2364_v30 }
 0x2e6   : > { %v2906_v42 = vpack.c.bf16 %v2874_v49, %v2874_v49  ;;  %v2229_v60 = vpop.f32.mrf.mxu2  ;;  %vm2770_vm2 = vcmp.eq.f32.partialorder %v2769_v28, 8.507059e+37 }
 0x2e7   : > { %v2748_v7 = vmul.f32 %v4554_v24, %v2747_v5  ;;  %v6867_v40 = vadd.f32 %v6628_v37, %v2229_v60 }
 0x2e8   : > { %2939 = vst.msk [vmem:[%s6218_s22 + $0x60] sm:$0xf] %vm2914_vm12, %v2906_v42 }
 0x2e9   : > { %v4556_v32 = vpop.eup %4555  ;;  %v2749_v21 = vadd.f32 %v4554_v24, %v2748_v7  ;;  %v3991_v26 = vmul.f32 -1.442695, %v6867_v40 }
 0x2ea   : > { %v4558_v19 = vpop.eup %4557  ;;  %v2365_v10 = vadd.f32 1.0, %v4556_v32  ;;  %v6895_v49 = vpop.f32.mrf.mxu3 }
 0x2eb   : > { %v2753_v52 = vsel %vm2752_vm11, %v4554_v24, %v2749_v21  ;;  %v2761_v56 = vmul.f32 %v4558_v19, %v2364_v30  ;;  %vm2766_vm14 = vweird.f32 %v4558_v19  ;;  %v4661_v30 = vld [vmem:[#allocation6] ss:$0 sm:$0xff] }
 0x2ec   : > { %v2758_v33 = vsel %vm2755_vm13, %v2757_v44, %v2753_v52  ;;  %4559 = vrcp.f32 %v2365_v10  ;;  %vm2767_vm0 = vmor %vm2765_vm15, %vm2766_vm14  ;;  %v2786_v18 = vand.u32 2147483648, %v2365_v10  ;;  %v2784_v43 = vand.u32 2147483647, %v2365_v10 }
 0x2ed   : > { %v2875_v39 = vsel %vm2241_vm9, %v2758_v33, %v6832_v0  ;;  %v2762_v29 = vsub.f32 1.0, %v2761_v56  ;;  %4561 = vpow2.f32 %v3991_v26  ;;  %v2772_v0 = vor.u32 1.1754944e-38, %v2771_v48  ;;  %v4112_v56 = vld [vmem:[#allocation2 + $0x18] sm:$0xff] }
 0x2ee   : > { %v2907_v20 = vpack.c.bf16 %v2875_v39, %v2875_v39  ;;  %v2231_v63 = vpop.f32.mrf.mxu2  ;;  %vm2780_vm4 = vweird.f32 %v2365_v10  ;;  %v2787_v46 = vor.u32 1.1754944e-38, %v2786_v18  ;;  %vm2785_vm6 = vcmp.eq.f32.partialorder %v2784_v43, 8.507059e+37  ;;  %3097 = vmatpush.bf16.msra.mxu3 %v4112_v56 }
 0x2ef   : > { %v2763_v27 = vmul.f32 %v4558_v19, %v2762_v29  ;;  %v6878_v3 = vadd.f32 %v6628_v37, %v2231_v63 }
 0x2f0   : > { %2940 = vst.msk [vmem:[%s6218_s22 + $0x64] sm:$0xf] %vm2914_vm12, %v2907_v20  ;;  %v4111_v20 = vld [vmem:[#allocation2 + $0x10] sm:$0xff] }
 0x2f1   : > { %v2764_v31 = vadd.f32 %v4558_v19, %v2763_v27  ;;  %v3992_v35 = vmul.f32 -1.442695, %v6878_v3 }
 0x2f2   : > { %v4560_v54 = vpop.eup %4559  ;;  %v6903_v28 = vpop.f32.mrf.mxu3  ;;  %3098 = vmatpush.bf16.msra.mxu3 %v4111_v20 }
 0x2f3   : > { %v4562_v1 = vpop.eup %4561  ;;  %v2768_v6 = vsel %vm2767_vm0, %v4558_v19, %v2764_v31  ;;  %v2776_v55 = vmul.f32 %v4560_v54, %v2365_v10  ;;  %4563 = vpow2.f32 %v3992_v35  ;;  %vm2781_vm3 = vweird.f32 %v4560_v54 }
 0x2f4   : > { %v2773_v17 = vsel %vm2770_vm2, %v2772_v0, %v2768_v6  ;;  %v2366_v38 = vadd.f32 1.0, %v4562_v1  ;;  %vm2782_vm5 = vmor %vm2780_vm4, %vm2781_vm3 }
 0x2f5   : > { %v2876_v16 = vsel %vm2241_vm9, %v2773_v17, %v6843_v53  ;;  %v2777_v22 = vsub.f32 1.0, %v2776_v55 }
 0x2f6   : > { %v2908_v37 = vpack.c.bf16 %v2876_v16, %v2876_v16  ;;  %4565 = vrcp.f32 %v2366_v38  ;;  %v2801_v14 = vand.u32 2147483648, %v2366_v38  ;;  %v2799_v51 = vand.u32 2147483647, %v2366_v38 }
 0x2f7   : > { %v2778_v50 = vmul.f32 %v4560_v54, %v2777_v22  ;;  %vm2795_vm1 = vweird.f32 %v2366_v38 }
 0x2f8   : > { %2941 = vst.msk [vmem:[%s6218_s22 + $0x68] sm:$0xf] %vm2914_vm12, %v2908_v37  ;;  %v2802_v11 = vor.u32 1.1754944e-38, %v2801_v14  ;;  %vm2800_vm11 = vcmp.eq.f32.partialorder %v2799_v51, 8.507059e+37 }
 0x2f9   : > { %v2779_v61 = vadd.f32 %v4560_v54, %v2778_v50  ;;  %v4564_v9 = vpop.eup %4563 }
 0x2fa   : > { %v2367_v12 = vadd.f32 1.0, %v4564_v9  ;;  %v2234_v24 = vpop.f32.mrf.mxu2 }
 0x2fb   : > { %v2783_v47 = vsel %vm2782_vm5, %v4560_v54, %v2779_v61  ;;  %v6893_v59 = vadd.f32 %v4661_v30, %v2234_v24 }
 0x2fc   : > { %v4566_v53 = vpop.eup %4565  ;;  %v2788_v57 = vsel %vm2785_vm6, %v2787_v46, %v2783_v47  ;;  %4567 = vrcp.f32 %v2367_v12  ;;  %v2816_v10 = vand.u32 2147483648, %v2367_v12  ;;  %v2814_v33 = vand.u32 2147483647, %v2367_v12 }
 0x2fd   : > { %v2877_v41 = vsel %vm2241_vm9, %v2788_v57, %v6854_v4  ;;  %v2791_v62 = vmul.f32 %v4566_v53, %v2366_v38  ;;  %vm2796_vm7 = vweird.f32 %v4566_v53  ;;  %v3993_v5 = vmul.f32 -1.442695, %v6893_v59  ;;  %v3021_v38 = vpop.f32.mrf.mxu3 }
 0x2fe   : > { %v2909_v8 = vpack.c.bf16 %v2877_v41, %v2877_v41  ;;  %vm2797_vm8 = vmor %vm2795_vm1, %vm2796_vm7  ;;  %vm2810_vm14 = vweird.f32 %v2367_v12  ;;  %vm2815_vm0 = vcmp.eq.f32.partialorder %v2814_v33, 8.507059e+37 }
 0x2ff   : > { %v2792_v23 = vsub.f32 1.0, %v2791_v62  ;;  %4569 = vpow2.f32 %v3993_v5 }
 0x300   : > { %2942 = vst.msk [vmem:[%s6218_s22 + $0x6c] sm:$0xf] %vm2914_vm12, %v2909_v8 }
 0x301   : > { %v2793_v25 = vmul.f32 %v4566_v53, %v2792_v23 }
 0x302   : > { %v4568_v4 = vpop.eup %4567  ;;  %v2236_v19 = vpop.f32.mrf.mxu2 }
 0x303   : > { %v2794_v42 = vadd.f32 %v4566_v53, %v2793_v25  ;;  %v2806_v45 = vmul.f32 %v4568_v4, %v2367_v12  ;;  %v2237_v52 = vadd.f32 %v4661_v30, %v2236_v19  ;;  %vm2811_vm13 = vweird.f32 %v4568_v4 }
 0x304   : > { %vm2812_vm15 = vmor %vm2810_vm14, %vm2811_vm13 }
 0x305   : > { %v2798_v7 = vsel %vm2797_vm8, %v4566_v53, %v2794_v42  ;;  %v2807_v21 = vsub.f32 1.0, %v2806_v45  ;;  %v4570_v39 = vpop.eup %4569  ;;  %v3994_v29 = vmul.f32 -1.442695, %v2237_v52 }
 0x306   : > { %v2803_v60 = vsel %vm2800_vm11, %v2802_v11, %v2798_v7  ;;  %v2368_v27 = vadd.f32 1.0, %v4570_v39  ;;  %v4114_v39 = vld [vmem:[#allocation4 + $0x18] sm:$0xff] }
 0x307   : > { %v2878_v32 = vsel %vm2241_vm9, %v2803_v60, %v6867_v40  ;;  %v2808_v26 = vmul.f32 %v4568_v4, %v2807_v21  ;;  %v2817_v40 = vor.u32 1.1754944e-38, %v2816_v10  ;;  %4571 = vpow2.f32 %v3994_v29  ;;  %3324 = vmatpush.bf16.msrb.mxu3 %v4114_v39 }
 0x308   : > { %v2910_v44 = vpack.c.bf16 %v2878_v32, %v2878_v32  ;;  %4573 = vrcp.f32 %v2368_v27  ;;  %v2831_v16 = vand.u32 2147483648, %v2368_v27  ;;  %v2829_v37 = vand.u32 2147483647, %v2368_v27 }
 0x309   : > { %v2809_v48 = vadd.f32 %v4568_v4, %v2808_v26  ;;  %vm2825_vm3 = vweird.f32 %v2368_v27 }
 0x30a   : > { %2943 = vst.msk [vmem:[%s6218_s22 + $0x70] sm:$0xf] %vm2914_vm12, %v2910_v44  ;;  %vm2830_vm5 = vcmp.eq.f32.partialorder %v2829_v37, 8.507059e+37 }
 0x30b   : > { %v2813_v63 = vsel %vm2812_vm15, %v4568_v4, %v2809_v48 }
 0x30c   : > { %v2818_v31 = vsel %vm2815_vm0, %v2817_v40, %v2813_v63  ;;  %v4113_v40 = vld [vmem:[#allocation4 + $0x10] sm:$0xff] }
 0x30d   : > { %v2879_v54 = vsel %vm2241_vm9, %v2818_v31, %v6878_v3  ;;  %v4572_v1 = vpop.eup %4571  ;;  %v2832_v3 = vor.u32 1.1754944e-38, %v2831_v16  ;;  %3325 = vmatpush.bf16.msrb.mxu3 %v4113_v40 }
 0x30e   : > { %v2911_v0 = vpack.c.bf16 %v2879_v54, %v2879_v54  ;;  %v4574_v6 = vpop.eup %4573  ;;  %v2369_v55 = vadd.f32 1.0, %v4572_v1 }
 0x30f   : > { %v2821_v35 = vmul.f32 %v4574_v6, %v2368_v27  ;;  %vm2826_vm2 = vweird.f32 %v4574_v6 }
 0x310   : > { %2944 = vst.msk [vmem:[%s6218_s22 + $0x74] sm:$0xf] %vm2914_vm12, %v2911_v0  ;;  %4575 = vrcp.f32 %v2369_v55  ;;  %vm2827_vm4 = vmor %vm2825_vm3, %vm2826_vm2  ;;  %v2846_v12 = vand.u32 2147483648, %v2369_v55  ;;  %v2844_v62 = vand.u32 2147483647, %v2369_v55  ;;  %vm2840_vm7 = vweird.f32 %v2369_v55 }
 0x311   : > { %v2822_v17 = vsub.f32 1.0, %v2821_v35 }
 0x312   : > { %v2847_v23 = vor.u32 1.1754944e-38, %v2846_v12  ;;  %vm2845_vm8 = vcmp.eq.f32.partialorder %v2844_v62, 8.507059e+37 }
 0x313   : > { %v2823_v22 = vmul.f32 %v4574_v6, %v2822_v17 }
 0x315   : > { %v2824_v18 = vadd.f32 %v4574_v6, %v2823_v22 }
 0x316   : > { %v4576_v50 = vpop.eup %4575 }
 0x317   : > { %v2828_v43 = vsel %vm2827_vm4, %v4574_v6, %v2824_v18  ;;  %v2836_v61 = vmul.f32 %v4576_v50, %v2369_v55  ;;  %vm2841_vm6 = vweird.f32 %v4576_v50 }
 0x318   : > { %v2833_v46 = vsel %vm2830_vm5, %v2832_v3, %v2828_v43  ;;  %vm2842_vm1 = vmor %vm2840_vm7, %vm2841_vm6 }
 0x319   : > { %v2880_v9 = vsel %vm2241_vm9, %v2833_v46, %v6893_v59  ;;  %v2837_v47 = vsub.f32 1.0, %v2836_v61  ;;  %v3033_v53 = vpop.f32.mrf.mxu3 }
 0x31a   : > { %v2912_v57 = vpack.c.bf16 %v2880_v9, %v2880_v9  ;;  %v3034_v51 = vadd.f32 %v3033_v53, %v6836_v13 }
 0x31b   : > { %v2838_v41 = vmul.f32 %v4576_v50, %v2837_v47 }
 0x31c   : > { %2945 = vst.msk [vmem:[%s6218_s22 + $0x78] sm:$0xf] %vm2914_vm12, %v2912_v57 }
 0x31d   : > { %v2839_v8 = vadd.f32 %v4576_v50, %v2838_v41 }
 0x31f   : > { %v2843_v24 = vsel %vm2842_vm1, %v4576_v50, %v2839_v8 }
 0x320   : > { %v2848_v14 = vsel %vm2845_vm8, %v2847_v23, %v2843_v24 }
 0x321   : > { %v2881_v30 = vsel %vm2241_vm9, %v2848_v14, %v2237_v52  ;;  %v3035_v59 = vpop.f32.mrf.mxu3 }
 0x322   : > { %v2913_v25 = vpack.c.bf16 %v2881_v30, %v2881_v30  ;;  %v3036_v5 = vadd.f32 %v3035_v59, %v6848_v36 }
 0x324   : > { %2946 = vst.msk [vmem:[%s6218_s22 + $0x7c] sm:$0xf] %vm2914_vm12, %v2913_v25  ;;  %v3053_v42 = vpack.c.bf16 %v3036_v5, %v3034_v51 }
 0x326   : > { %4036 = vmatmul.msk.bf16.vlgmr.msra.gmra.mxu3 %vm1288_vm10, %v3053_v42 }
 0x329   : > { %v3038_v4 = vpop.f32.mrf.mxu3 }
 0x32a   : > { %v3039_v7 = vadd.f32 %v3038_v4, %v6859_v58 }
 0x331   : > { %v3040_v11 = vpop.f32.mrf.mxu3 }
 0x332   : > { %v3041_v45 = vadd.f32 %v3040_v11, %v6873_v34  ;;  %v6933_v34 = vld [vmem:[%s7099_s4 + $0x1] ss:$0 sm:$0xff] }
 0x334   : > { %v3054_v60 = vpack.c.bf16 %v3041_v45, %v3039_v7 }
 0x336   : > { %4037 = vmatmul.msk.bf16.gmra.mxu3 %vm1288_vm10, %v3054_v60 }
 0x339   : > { %v3043_v32 = vpop.f32.mrf.mxu3 }
 0x33a   : > { %v3044_v13 = vadd.f32 %v3043_v32, %v6886_v15 }
 0x341   : > { %v3045_v21 = vpop.f32.mrf.mxu3 }
 0x342   : > { %v3046_v36 = vadd.f32 %v3045_v21, %v6895_v49 }
 0x344   : > { %v3055_v19 = vpack.c.bf16 %v3046_v36, %v3044_v13 }
 0x346   : > { %4038 = vmatmul.msk.bf16.gmra.mxu3 %vm1288_vm10, %v3055_v19 }
 0x349   : > { %v3048_v44 = vpop.f32.mrf.mxu3 }
 0x34a   : > { %v3049_v52 = vadd.f32 %v3048_v44, %v6903_v28 }
 0x351   : > { %v3050_v10 = vpop.f32.mrf.mxu3 }
 0x352   : > { %v3051_v56 = vadd.f32 %v3050_v10, %v3021_v38 }
 0x354   : > { %v3056_v58 = vpack.c.bf16 %v3051_v56, %v3049_v52 }
 0x356   : > { %4039 = vmatmul.msk.bf16.gmra.mxu3 %vm1288_vm10, %v3056_v58 }
 0x3a9   : > { %v3100_v26 = vpop.f32.mrf.mxu3 }
 0x3aa   : > { %v6936_v15 = vadd.f32 %v6933_v34, %v3100_v26 }
 0x3ac   : > { %v4040_v49 = vmul.f32 -1.442695, %v6936_v15 }
 0x3ae   : > { %4577 = vpow2.f32 %v4040_v49 }
 0x3b1   : > { %v3102_v33 = vpop.f32.mrf.mxu3 }
 0x3b2   : > { %v3103_v29 = vadd.f32 %v6933_v34, %v3102_v33 }
 0x3b4   : > { %v4578_v20 = vpop.eup %4577  ;;  %v4041_v48 = vmul.f32 -1.442695, %v3103_v29 }
 0x3b5   : > { %v3144_v27 = vadd.f32 1.0, %v4578_v20 }
 0x3b6   : > { %4579 = vpow2.f32 %v4041_v48 }
 0x3b7   : > { %4581 = vrcp.f32 %v3144_v27  ;;  %v3163_v43 = vand.u32 2147483648, %v3144_v27  ;;  %vm3157_vm13 = vweird.f32 %v3144_v27  ;;  %v3161_v61 = vand.u32 2147483647, %v3144_v27 }
 0x3b9   : > { %v3105_v28 = vpop.f32.mrf.mxu3  ;;  %v3164_v8 = vor.u32 1.1754944e-38, %v3163_v43  ;;  %vm3162_vm0 = vcmp.eq.f32.partialorder %v3161_v61, 8.507059e+37 }
 0x3ba   : > { %v6941_v63 = vadd.f32 %v6933_v34, %v3105_v28 }
 0x3bc   : > { %v4580_v31 = vpop.eup %4579  ;;  %v4042_v54 = vmul.f32 -1.442695, %v6941_v63 }
 0x3bd   : > { %v4582_v0 = vpop.eup %4581  ;;  %v3145_v1 = vadd.f32 1.0, %v4580_v31 }
 0x3be   : > { %v3153_v6 = vmul.f32 %v4582_v0, %v3144_v27  ;;  %4583 = vpow2.f32 %v4042_v54  ;;  %vm3158_vm11 = vweird.f32 %v4582_v0 }
 0x3bf   : > { %4585 = vrcp.f32 %v3145_v1  ;;  %vm6951_vm14 = vmor %vm3157_vm13, %vm3158_vm11  ;;  %v3176_v47 = vand.u32 2147483647, %v3145_v1  ;;  %v3178_v53 = vand.u32 2147483648, %v3145_v1  ;;  %vm3172_vm2 = vweird.f32 %v3145_v1 }
 0x3c0   : > { %v3154_v55 = vsub.f32 1.0, %v3153_v6 }
 0x3c1   : > { %v3107_v35 = vpop.f32.mrf.mxu3  ;;  %v3179_v25 = vor.u32 1.1754944e-38, %v3178_v53  ;;  %vm3177_vm4 = vcmp.eq.f32.partialorder %v3176_v47, 8.507059e+37 }
 0x3c2   : > { %v3155_v17 = vmul.f32 %v4582_v0, %v3154_v55  ;;  %v6945_v38 = vadd.f32 %v6933_v34, %v3107_v35 }
 0x3c4   : > { %v4584_v16 = vpop.eup %4583  ;;  %v4043_v22 = vmul.f32 -1.442695, %v6945_v38  ;;  %v3156_v50 = vadd.f32 %v4582_v0, %v3155_v17 }
 0x3c5   : > { %v4586_v37 = vpop.eup %4585  ;;  %v6948_v18 = vadd.f32 1.0, %v4584_v16 }
 0x3c6   : > { %v3168_v3 = vmul.f32 %v4586_v37, %v3145_v1  ;;  %4587 = vpow2.f32 %v4043_v22  ;;  %v3160_v12 = vsel %vm6951_vm14, %v4582_v0, %v3156_v50  ;;  %vm3173_vm15 = vweird.f32 %v4586_v37 }
 0x3c7   : > { %4589 = vrcp.f32 %v6948_v18  ;;  %v3165_v59 = vsel %vm3162_vm0, %v3164_v8, %v3160_v12  ;;  %vm3174_vm3 = vmor %vm3172_vm2, %vm3173_vm15  ;;  %v3193_v58 = vand.u32 2147483648, %v6948_v18  ;;  %vm3187_vm6 = vweird.f32 %v6948_v18 }
 0x3c8   : > { %v3169_v46 = vsub.f32 1.0, %v3168_v3  ;;  %v3272_v11 = vmul.f32 %v3165_v59, %v6936_v15  ;;  %v3191_v26 = vand.u32 2147483647, %v6948_v18 }
 0x3c9   : > { %v3110_v57 = vpop.f32.mrf.mxu3  ;;  %v3194_v40 = vor.u32 1.1754944e-38, %v3193_v58 }
 0x3ca   : > { %v3170_v41 = vmul.f32 %v4586_v37, %v3169_v46  ;;  %v6958_v62 = vadd.f32 %v6933_v34, %v3110_v57  ;;  %vm3192_vm8 = vcmp.eq.f32.partialorder %v3191_v26, 8.507059e+37 }
 0x3cc   : > { %v4588_v23 = vpop.eup %4587  ;;  %v3171_v24 = vadd.f32 %v4586_v37, %v3170_v41  ;;  %v4044_v14 = vmul.f32 -1.442695, %v6958_v62 }
 0x3cd   : > { %v4590_v30 = vpop.eup %4589  ;;  %v3147_v51 = vadd.f32 1.0, %v4588_v23 }
 0x3ce   : > { %v3175_v5 = vsel %vm3174_vm3, %v4586_v37, %v3171_v24  ;;  %v3183_v42 = vmul.f32 %v4590_v30, %v6948_v18  ;;  %4591 = vpow2.f32 %v4044_v14  ;;  %vm3188_vm5 = vweird.f32 %v4590_v30 }
 0x3cf   : > { %v3180_v4 = vsel %vm3177_vm4, %v3179_v25, %v3175_v5  ;;  %4593 = vrcp.f32 %v3147_v51  ;;  %vm6977_vm7 = vmor %vm3187_vm6, %vm3188_vm5  ;;  %v3206_v33 = vand.u32 2147483647, %v3147_v51  ;;  %v3208_v39 = vand.u32 2147483648, %v3147_v51 }
 0x3d0   : > { %v3273_v7 = vmul.f32 %v3180_v4, %v3103_v29  ;;  %v3184_v45 = vsub.f32 1.0, %v3183_v42  ;;  %vm3202_vm11 = vweird.f32 %v3147_v51 }
 0x3d1   : > { %v3112_v60 = vpop.f32.mrf.mxu3  ;;  %v3209_v6 = vor.u32 1.1754944e-38, %v3208_v39  ;;  %vm3207_vm14 = vcmp.eq.f32.partialorder %v3206_v33, 8.507059e+37 }
 0x3d2   : > { %v6963_v32 = vpack.c.bf16 %v3273_v7, %v3272_v11  ;;  %v3185_v21 = vmul.f32 %v4590_v30, %v3184_v45  ;;  %v6966_v13 = vadd.f32 %v6933_v34, %v3112_v60 }
 0x3d4   : > { %v4592_v36 = vpop.eup %4591  ;;  %v4045_v19 = vmul.f32 -1.442695, %v6966_v13  ;;  %4056 = vmatmul.msk.bf16.vlgmr.msrb.gmra.mxu3 %vm1288_vm10, %v6963_v32  ;;  %v3186_v52 = vadd.f32 %v4590_v30, %v3185_v21 }
 0x3d5   : > { %v4594_v44 = vpop.eup %4593  ;;  %v6971_v10 = vadd.f32 1.0, %v4592_v36 }
 0x3d6   : > { %v3198_v56 = vmul.f32 %v4594_v44, %v3147_v51  ;;  %4595 = vpow2.f32 %v4045_v19  ;;  %v3190_v20 = vsel %vm6977_vm7, %v4590_v30, %v3186_v52  ;;  %vm3203_vm1 = vweird.f32 %v4594_v44 }
 0x3d7   : > { %4597 = vrcp.f32 %v6971_v10  ;;  %v3195_v1 = vsel %vm3192_vm8, %v3194_v40, %v3190_v20  ;;  %vm3204_vm13 = vmor %vm3202_vm11, %vm3203_vm1  ;;  %vm3217_vm0 = vweird.f32 %v6971_v10 }
 0x3d8   : > { %v3199_v15 = vsub.f32 1.0, %v3198_v56  ;;  %v3274_v22 = vmul.f32 %v3195_v1, %v6941_v63  ;;  %v7009_v1 = vld [vmem:[#allocation6 + $0x1] ss:$0 sm:$0xff] }
 0x3d9   : > { %v3115_v29 = vpop.f32.mrf.mxu3 }
 0x3da   : > { %v3200_v48 = vmul.f32 %v4594_v44, %v3199_v15  ;;  %v6984_v27 = vadd.f32 %v6933_v34, %v3115_v29 }
 0x3dc   : > { %v4596_v28 = vpop.eup %4595  ;;  %v3201_v31 = vadd.f32 %v4594_v44, %v3200_v48  ;;  %v4046_v54 = vmul.f32 -1.442695, %v6984_v27 }
 0x3dd   : > { %v4598_v0 = vpop.eup %4597  ;;  %v3149_v55 = vadd.f32 1.0, %v4596_v28 }
 0x3de   : > { %v3205_v35 = vsel %vm3204_vm13, %v4594_v44, %v3201_v31  ;;  %v3213_v17 = vmul.f32 %v4598_v0, %v6971_v10  ;;  %4599 = vpow2.f32 %v4046_v54  ;;  %vm3218_vm15 = vweird.f32 %v4598_v0 }
 0x3df   : > { %v3210_v16 = vsel %vm3207_vm14, %v3209_v6, %v3205_v35  ;;  %4601 = vrcp.f32 %v3149_v55  ;;  %vm3219_vm2 = vmor %vm3217_vm0, %vm3218_vm15  ;;  %v3238_v41 = vand.u32 2147483648, %v3149_v55  ;;  %v3236_v24 = vand.u32 2147483647, %v3149_v55 }
 0x3e0   : > { %v3275_v37 = vmul.f32 %v3210_v16, %v6945_v38  ;;  %v3214_v18 = vsub.f32 1.0, %v3213_v17  ;;  %v3223_v38 = vand.u32 2147483648, %v6971_v10  ;;  %vm3232_vm5 = vweird.f32 %v3149_v55 }
 0x3e1   : > { %v3117_v50 = vpop.f32.mrf.mxu3  ;;  %v3239_v5 = vor.u32 1.1754944e-38, %v3238_v41  ;;  %vm3237_vm7 = vcmp.eq.f32.partialorder %v3236_v24, 8.507059e+37 }
 0x3e2   : > { %v6990_v3 = vpack.c.bf16 %v3275_v37, %v3274_v22  ;;  %v3215_v43 = vmul.f32 %v4598_v0, %v3214_v18  ;;  %v6993_v61 = vadd.f32 %v6933_v34, %v3117_v50  ;;  %v3221_v34 = vand.u32 2147483647, %v6971_v10 }
 0x3e3   : > { %v3224_v14 = vor.u32 1.1754944e-38, %v3223_v38 }
 0x3e4   : > { %v4600_v46 = vpop.eup %4599  ;;  %v4047_v9 = vmul.f32 -1.442695, %v6993_v61  ;;  %4057 = vmatmul.msk.bf16.gmra.mxu3 %vm1288_vm10, %v6990_v3  ;;  %v3216_v57 = vadd.f32 %v4598_v0, %v3215_v43  ;;  %vm3222_vm4 = vcmp.eq.f32.partialorder %v3221_v34, 8.507059e+37 }
 0x3e5   : > { %v4602_v47 = vpop.eup %4601  ;;  %v3150_v53 = vadd.f32 1.0, %v4600_v46 }
 0x3e6   : > { %v3228_v63 = vmul.f32 %v4602_v47, %v3149_v55  ;;  %4603 = vpow2.f32 %v4047_v9  ;;  %v3220_v8 = vsel %vm3219_vm2, %v4598_v0, %v3216_v57  ;;  %vm3233_vm3 = vweird.f32 %v4602_v47  ;;  %v4115_v0 = vld [vmem:[#allocation9] sm:$0xff] }
 0x3e7   : > { %4605 = vrcp.f32 %v3150_v53  ;;  %v3225_v51 = vsel %vm3222_vm4, %v3224_v14, %v3220_v8  ;;  %vm3234_vm6 = vmor %vm3232_vm5, %vm3233_vm3  ;;  %v3253_v56 = vand.u32 2147483648, %v3150_v53  ;;  %vm3247_vm8 = vweird.f32 %v3150_v53 }
 0x3e8   : > { %v3229_v12 = vsub.f32 1.0, %v3228_v63  ;;  %v3276_v45 = vmul.f32 %v3225_v51, %v6958_v62  ;;  %v3251_v58 = vand.u32 2147483647, %v3150_v53  ;;  %vm3530_vm3 = vcmask 523264  }
 0x3ea   : > { %v3230_v23 = vmul.f32 %v4602_v47, %v3229_v12  ;;  %vm3252_vm14 = vcmp.eq.f32.partialorder %v3251_v58, 8.507059e+37 }
 0x3ec   : > { %v4604_v30 = vpop.eup %4603  ;;  %v3231_v59 = vadd.f32 %v4602_v47, %v3230_v23 }
 0x3ed   : > { %v4606_v25 = vpop.eup %4605  ;;  %v3151_v42 = vadd.f32 1.0, %v4604_v30 }
 0x3ee   : > { %v3235_v4 = vsel %vm3234_vm6, %v4602_v47, %v3231_v59  ;;  %v3243_v11 = vmul.f32 %v4606_v25, %v3150_v53  ;;  %vm3248_vm1 = vweird.f32 %v4606_v25 }
 0x3ef   : > { %v3240_v7 = vsel %vm3237_vm7, %v3239_v5, %v3235_v4  ;;  %4607 = vrcp.f32 %v3151_v42  ;;  %vm3249_vm11 = vmor %vm3247_vm8, %vm3248_vm1  ;;  %v3268_v15 = vand.u32 2147483648, %v3151_v42  ;;  %v3266_v62 = vand.u32 2147483647, %v3151_v42 }
 0x3f0   : > { %v3277_v60 = vmul.f32 %v3240_v7, %v6966_v13  ;;  %v3244_v21 = vsub.f32 1.0, %v3243_v11  ;;  %v3254_v13 = vor.u32 1.1754944e-38, %v3253_v56  ;;  %vm3262_vm15 = vweird.f32 %v3151_v42 }
 0x3f1   : > { %v3269_v20 = vor.u32 1.1754944e-38, %v3268_v15  ;;  %vm3267_vm2 = vcmp.eq.f32.partialorder %v3266_v62, 8.507059e+37 }
 0x3f2   : > { %v3282_v36 = vpack.c.bf16 %v3277_v60, %v3276_v45  ;;  %v3245_v19 = vmul.f32 %v4606_v25, %v3244_v21  ;;  %v4117_v60 = vld [vmem:[#allocation2 + $0x28] sm:$0xff] }
 0x3f3   : > { %3580 = vmatpush.bf16.msrb.mxu1 %v4117_v60  ;;  %v4118_v60 = vld [vmem:[#allocation4 + $0x20] sm:$0xff] }
 0x3f4   : > { %4058 = vmatmul.msk.bf16.gmra.mxu3 %vm1288_vm10, %v3282_v36  ;;  %v3246_v10 = vadd.f32 %v4606_v25, %v3245_v19 }
 0x3f5   : > { %v4608_v44 = vpop.eup %4607 }
 0x3f6   : > { %v3258_v52 = vmul.f32 %v4608_v44, %v3151_v42  ;;  %v3250_v49 = vsel %vm3249_vm11, %v4606_v25, %v3246_v10  ;;  %vm3263_vm13 = vweird.f32 %v4608_v44 }
 0x3f7   : > { %v3255_v29 = vsel %vm3252_vm14, %v3254_v13, %v3250_v49  ;;  %vm3264_vm0 = vmor %vm3262_vm15, %vm3263_vm13 }
 0x3f8   : > { %v3259_v26 = vsub.f32 1.0, %v3258_v52  ;;  %v3278_v28 = vmul.f32 %v3255_v29, %v6984_v27 }
 0x3fa   : > { %v3260_v33 = vmul.f32 %v4608_v44, %v3259_v26  ;;  %v4116_v26 = vld [vmem:[#allocation2 + $0x20] sm:$0xff] }
 0x3fb   : > { %3581 = vmatpush.bf16.msrb.mxu1 %v4116_v26 }
 0x3fc   : > { %v3261_v39 = vadd.f32 %v4608_v44, %v3260_v33 }
 0x3fe   : > { %v3265_v48 = vsel %vm3264_vm0, %v4608_v44, %v3261_v39 }
 0x3ff   : > { %v3270_v40 = vsel %vm3267_vm2, %v3269_v20, %v3265_v48 }
 0x400   : > { %v3279_v31 = vmul.f32 %v3270_v40, %v6993_v61 }
 0x402   : > { %v3283_v54 = vpack.c.bf16 %v3279_v31, %v3278_v28 }
 0x404   : > { %4059 = vmatmul.msk.bf16.gmra.mxu3 %vm1288_vm10, %v3283_v54  ;;  %3538 = vmatpush.bf16.msrb.mxu0 %v3283_v54 }
 0x408   : > { %3539 = vmatpush.bf16.msrb.mxu0 %v3282_v36 }
 0x40c   : > { %3540 = vmatpush.bf16.msrb.mxu0 %v6990_v3 }
 0x410   : > { %3541 = vmatpush.bf16.msrb.mxu0 %v6963_v32 }
 0x413   : > { %4072 = vmatmul.msk.bf16.vlgmr.msrb.gmra.mxu0 %vm3530_vm3, %v4115_v0 }
 0x457   : > { %v3327_v6 = vpop.f32.mrf.mxu3 }
 0x458   : > { %v3328_v55 = vadd.f32 %v7009_v1, %v3327_v6 }
 0x45a   : > { %v4060_v27 = vmul.f32 -1.442695, %v3328_v55 }
 0x45c   : > { %4609 = vpow2.f32 %v4060_v27 }
 0x45f   : > { %v3329_v35 = vpop.f32.mrf.mxu3 }
 0x460   : > { %v7013_v17 = vadd.f32 %v7009_v1, %v3329_v35 }
 0x462   : > { %v4610_v16 = vpop.eup %4609  ;;  %v4061_v22 = vmul.f32 -1.442695, %v7013_v17 }
 0x463   : > { %v3371_v37 = vadd.f32 1.0, %v4610_v16 }
 0x464   : > { %4611 = vpow2.f32 %v4061_v22 }
 0x465   : > { %4613 = vrcp.f32 %v3371_v37  ;;  %v3390_v47 = vand.u32 2147483648, %v3371_v37  ;;  %v3388_v63 = vand.u32 2147483647, %v3371_v37  ;;  %vm3384_vm5 = vweird.f32 %v3371_v37 }
 0x467   : > { %v3332_v32 = vpop.f32.mrf.mxu3  ;;  %v3391_v23 = vor.u32 1.1754944e-38, %v3390_v47  ;;  %vm3389_vm7 = vcmp.eq.f32.partialorder %v3388_v63, 8.507059e+37 }
 0x468   : > { %v7017_v18 = vadd.f32 %v7009_v1, %v3332_v32 }
 0x46a   : > { %v4612_v50 = vpop.eup %4611  ;;  %v4062_v3 = vmul.f32 -1.442695, %v7017_v18 }
 0x46b   : > { %v4614_v43 = vpop.eup %4613  ;;  %v3372_v61 = vadd.f32 1.0, %v4612_v50 }
 0x46c   : > { %v3380_v46 = vmul.f32 %v4614_v43, %v3371_v37  ;;  %4615 = vpow2.f32 %v4062_v3  ;;  %vm3385_vm4 = vweird.f32 %v4614_v43 }
 0x46d   : > { %4617 = vrcp.f32 %v3372_v61  ;;  %vm3386_vm6 = vmor %vm3384_vm5, %vm3385_vm4  ;;  %v3405_v42 = vand.u32 2147483648, %v3372_v61  ;;  %v3403_v7 = vand.u32 2147483647, %v3372_v61  ;;  %vm3399_vm8 = vweird.f32 %v3372_v61 }
 0x46e   : > { %v3381_v9 = vsub.f32 1.0, %v3380_v46 }
 0x46f   : > { %v3334_v53 = vpop.f32.mrf.mxu3  ;;  %v3406_v10 = vor.u32 1.1754944e-38, %v3405_v42  ;;  %vm3404_vm13 = vcmp.eq.f32.partialorder %v3403_v7, 8.507059e+37 }
 0x470   : > { %v3382_v57 = vmul.f32 %v4614_v43, %v3381_v9  ;;  %v7021_v38 = vadd.f32 %v7009_v1, %v3334_v53 }
 0x472   : > { %v4616_v34 = vpop.eup %4615  ;;  %v3383_v12 = vadd.f32 %v4614_v43, %v3382_v57  ;;  %v4063_v41 = vmul.f32 -1.442695, %v7021_v38 }
 0x473   : > { %v4618_v8 = vpop.eup %4617  ;;  %v3373_v24 = vadd.f32 1.0, %v4616_v34 }
 0x474   : > { %v3387_v14 = vsel %vm3386_vm6, %v4614_v43, %v3383_v12  ;;  %v3395_v30 = vmul.f32 %v4618_v8, %v3372_v61  ;;  %4619 = vpow2.f32 %v4063_v41  ;;  %vm3400_vm1 = vweird.f32 %v4618_v8 }
 0x475   : > { %v3392_v59 = vsel %vm3389_vm7, %v3391_v23, %v3387_v14  ;;  %4621 = vrcp.f32 %v3373_v24  ;;  %vm3401_vm11 = vmor %vm3399_vm8, %vm3400_vm1  ;;  %v3420_v13 = vand.u32 2147483648, %v3373_v24  ;;  %v3418_v20 = vand.u32 2147483647, %v3373_v24 }
 0x476   : > { %v3499_v25 = vsel %vm2241_vm9, %v3392_v59, %v3328_v55  ;;  %v3396_v51 = vsub.f32 1.0, %v3395_v30  ;;  %vm3414_vm15 = vweird.f32 %v3373_v24 }
 0x477   : > { %v3507_v5 = vpack.c.bf16 %v3499_v25, %v3499_v25  ;;  %v3337_v4 = vpop.f32.mrf.mxu3  ;;  %v3421_v0 = vor.u32 1.1754944e-38, %v3420_v13  ;;  %vm3419_vm2 = vcmp.eq.f32.partialorder %v3418_v20, 8.507059e+37 }
 0x478   : > { %v3397_v11 = vmul.f32 %v4618_v8, %v3396_v51  ;;  %v7027_v45 = vadd.f32 %v7009_v1, %v3337_v4  ;;  %v4119_v51 = vld [vmem:[#allocation4 + $0x28] sm:$0xff] }
 0x479   : > { %3515 = vst.msk [vmem:[%s6218_s22 + $0x80] sm:$0xf] %vm2914_vm12, %v3507_v5  ;;  %3660 = vmatpush.bf16.msrb.mxu2 %v4119_v51 }
 0x47a   : > { %v4620_v21 = vpop.eup %4619  ;;  %v3398_v36 = vadd.f32 %v4618_v8, %v3397_v11  ;;  %v4064_v19 = vmul.f32 -1.442695, %v7027_v45 }
 0x47b   : > { %v4622_v44 = vpop.eup %4621  ;;  %v3374_v52 = vadd.f32 1.0, %v4620_v21 }
 0x47c   : > { %v3402_v56 = vsel %vm3401_vm11, %v4618_v8, %v3398_v36  ;;  %v3410_v58 = vmul.f32 %v4622_v44, %v3373_v24  ;;  %4623 = vpow2.f32 %v4064_v19  ;;  %vm3415_vm14 = vweird.f32 %v4622_v44 }
 0x47d   : > { %v3407_v15 = vsel %vm3404_vm13, %v3406_v10, %v3402_v56  ;;  %4625 = vrcp.f32 %v3374_v52  ;;  %vm3416_vm0 = vmor %vm3414_vm15, %vm3415_vm14  ;;  %v3435_v37 = vand.u32 2147483648, %v3374_v52  ;;  %v3433_v3 = vand.u32 2147483647, %v3374_v52  ;;  %3661 = vmatpush.bf16.msrb.mxu2 %v4118_v60 }
 0x47e   : > { %v3500_v49 = vsel %vm2241_vm9, %v3407_v15, %v7013_v17  ;;  %v3411_v33 = vsub.f32 1.0, %v3410_v58  ;;  %vm3429_vm4 = vweird.f32 %v3374_v52 }
 0x47f   : > { %v3508_v62 = vpack.c.bf16 %v3500_v49, %v3500_v49  ;;  %v3339_v39 = vpop.f32.mrf.mxu3  ;;  %vm3434_vm6 = vcmp.eq.f32.partialorder %v3433_v3, 8.507059e+37 }
 0x480   : > { %v3412_v29 = vmul.f32 %v4622_v44, %v3411_v33  ;;  %v7036_v48 = vadd.f32 %v7009_v1, %v3339_v39 }
 0x481   : > { %3516 = vst.msk [vmem:[%s6218_s22 + $0x84] sm:$0xf] %vm2914_vm12, %v3508_v62 }
 0x482   : > { %v4624_v40 = vpop.eup %4623  ;;  %v3413_v28 = vadd.f32 %v4622_v44, %v3412_v29  ;;  %v4065_v31 = vmul.f32 -1.442695, %v7036_v48 }
 0x483   : > { %v4626_v54 = vpop.eup %4625  ;;  %v3375_v6 = vadd.f32 1.0, %v4624_v40 }
 0x484   : > { %v3417_v55 = vsel %vm3416_vm0, %v4622_v44, %v3413_v28  ;;  %v3425_v27 = vmul.f32 %v4626_v54, %v3374_v52  ;;  %4627 = vpow2.f32 %v4065_v31  ;;  %vm3430_vm3 = vweird.f32 %v4626_v54 }
 0x485   : > { %v3422_v35 = vsel %vm3419_vm2, %v3421_v0, %v3417_v55  ;;  %4629 = vrcp.f32 %v3375_v6  ;;  %vm3431_vm5 = vmor %vm3429_vm4, %vm3430_vm3  ;;  %v3450_v23 = vand.u32 2147483648, %v3375_v6  ;;  %v3448_v30 = vand.u32 2147483647, %v3375_v6 }
 0x486   : > { %v3501_v17 = vsel %vm2241_vm9, %v3422_v35, %v7017_v18  ;;  %v3426_v16 = vsub.f32 1.0, %v3425_v27  ;;  %v3436_v18 = vor.u32 1.1754944e-38, %v3435_v37  ;;  %vm3444_vm1 = vweird.f32 %v3375_v6 }
 0x487   : > { %v3509_v22 = vpack.c.bf16 %v3501_v17, %v3501_v17  ;;  %v3342_v32 = vpop.f32.mrf.mxu3  ;;  %v3451_v11 = vor.u32 1.1754944e-38, %v3450_v23  ;;  %vm3449_vm11 = vcmp.eq.f32.partialorder %v3448_v30, 8.507059e+37 }
 0x488   : > { %v3427_v50 = vmul.f32 %v4626_v54, %v3426_v16  ;;  %v7045_v43 = vadd.f32 %v7009_v1, %v3342_v32 }
 0x489   : > { %3517 = vst.msk [vmem:[%s6218_s22 + $0x88] sm:$0xf] %vm2914_vm12, %v3509_v22 }
 0x48a   : > { %v4628_v61 = vpop.eup %4627  ;;  %v3428_v46 = vadd.f32 %v4626_v54, %v3427_v50  ;;  %v4066_v9 = vmul.f32 -1.442695, %v7045_v43 }
 0x48b   : > { %v4630_v47 = vpop.eup %4629  ;;  %v3376_v53 = vadd.f32 1.0, %v4628_v61 }
 0x48c   : > { %v3432_v57 = vsel %vm3431_vm5, %v4626_v54, %v3428_v46  ;;  %v3440_v63 = vmul.f32 %v4630_v47, %v3375_v6  ;;  %4631 = vpow2.f32 %v4066_v9  ;;  %vm3445_vm7 = vweird.f32 %v4630_v47 }
 0x48d   : > { %v3437_v34 = vsel %vm3434_vm6, %v3436_v18, %v3432_v57  ;;  %4633 = vrcp.f32 %v3376_v53  ;;  %vm3446_vm8 = vmor %vm3444_vm1, %vm3445_vm7  ;;  %v3465_v52 = vand.u32 2147483648, %v3376_v53  ;;  %v3463_v58 = vand.u32 2147483647, %v3376_v53  ;;  %v4191_v57 = vld [vmem:[%s7099_s4 + $0x2] ss:$0 sm:$0xff] }
 0x48e   : > { %v3502_v12 = vsel %vm2241_vm9, %v3437_v34, %v7021_v38  ;;  %v3441_v41 = vsub.f32 1.0, %v3440_v63  ;;  %vm3459_vm14 = vweird.f32 %v3376_v53 }
 0x48f   : > { %v3510_v8 = vpack.c.bf16 %v3502_v12, %v3502_v12  ;;  %v3344_v24 = vpop.f32.mrf.mxu3  ;;  %v3466_v13 = vor.u32 1.1754944e-38, %v3465_v52  ;;  %vm3464_vm0 = vcmp.eq.f32.partialorder %v3463_v58, 8.507059e+37 }
 0x490   : > { %v3442_v14 = vmul.f32 %v4630_v47, %v3441_v41  ;;  %v7054_v59 = vadd.f32 %v7009_v1, %v3344_v24  ;;  %v3543_v25 = vpop.f32.mrf.mxu0 }
 0x491   : > { %3518 = vst.msk [vmem:[%s6218_s22 + $0x8c] sm:$0xf] %vm2914_vm12, %v3510_v8 }
 0x492   : > { %v4632_v5 = vpop.eup %4631  ;;  %v3443_v42 = vadd.f32 %v4630_v47, %v3442_v14  ;;  %v4067_v4 = vmul.f32 -1.442695, %v7054_v59 }
 0x493   : > { %v4634_v38 = vpop.eup %4633  ;;  %v3377_v7 = vadd.f32 1.0, %v4632_v5 }
 0x494   : > { %v3447_v21 = vsel %vm3446_vm8, %v4630_v47, %v3443_v42  ;;  %v3455_v1 = vmul.f32 %v4634_v38, %v3376_v53  ;;  %4635 = vpow2.f32 %v4067_v4  ;;  %vm3460_vm13 = vweird.f32 %v4634_v38 }
 0x495   : > { %v3452_v36 = vsel %vm3449_vm11, %v3451_v11, %v3447_v21  ;;  %4637 = vrcp.f32 %v3377_v7  ;;  %vm3461_vm15 = vmor %vm3459_vm14, %vm3460_vm13  ;;  %v3480_v54 = vand.u32 2147483648, %v3377_v7  ;;  %v3478_v6 = vand.u32 2147483647, %v3377_v7 }
 0x496   : > { %v3503_v19 = vsel %vm2241_vm9, %v3452_v36, %v7027_v45  ;;  %v3456_v44 = vsub.f32 1.0, %v3455_v1  ;;  %vm3474_vm3 = vweird.f32 %v3377_v7 }
 0x497   : > { %v3511_v10 = vpack.c.bf16 %v3503_v19, %v3503_v19  ;;  %v3481_v35 = vor.u32 1.1754944e-38, %v3480_v54  ;;  %vm3479_vm5 = vcmp.eq.f32.partialorder %v3478_v6, 8.507059e+37 }
 0x498   : > { %v3457_v56 = vmul.f32 %v4634_v38, %v3456_v44  ;;  %v3545_v26 = vpop.f32.mrf.mxu0 }
 0x499   : > { %3519 = vst.msk [vmem:[%s6218_s22 + $0x90] sm:$0xf] %vm2914_vm12, %v3511_v10  ;;  %v3548_v15 = vpack.c.bf16 %v3545_v26, %v3543_v25 }
 0x49a   : > { %v4636_v49 = vpop.eup %4635  ;;  %v3458_v33 = vadd.f32 %v4634_v38, %v3457_v56 }
 0x49b   : > { %v4638_v62 = vpop.eup %4637  ;;  %v3378_v39 = vadd.f32 1.0, %v4636_v49  ;;  %4082 = vmatmul.msk.bf16.vlgmr.msrb.gmra.mxu1 %vm1288_vm10, %v3548_v15 }
 0x49c   : > { %v3462_v45 = vsel %vm3461_vm15, %v4634_v38, %v3458_v33  ;;  %v3470_v29 = vmul.f32 %v4638_v62, %v3377_v7  ;;  %vm3475_vm2 = vweird.f32 %v4638_v62 }
 0x49d   : > { %v3467_v20 = vsel %vm3464_vm0, %v3466_v13, %v3462_v45  ;;  %4639 = vrcp.f32 %v3378_v39  ;;  %vm3476_vm4 = vmor %vm3474_vm3, %vm3475_vm2  ;;  %v3495_v50 = vand.u32 2147483648, %v3378_v39  ;;  %v3493_v61 = vand.u32 2147483647, %v3378_v39  ;;  %v4192_v13 = vld [vmem:[#allocation6 + $0x2] ss:$0 sm:$0xff] }
 0x49e   : > { %v3504_v40 = vsel %vm2241_vm9, %v3467_v20, %v7036_v48  ;;  %v3471_v28 = vsub.f32 1.0, %v3470_v29  ;;  %vm3489_vm7 = vweird.f32 %v3378_v39 }
 0x49f   : > { %v3512_v31 = vpack.c.bf16 %v3504_v40, %v3504_v40  ;;  %v3496_v9 = vor.u32 1.1754944e-38, %v3495_v50  ;;  %vm3494_vm8 = vcmp.eq.f32.partialorder %v3493_v61, 8.507059e+37 }
 0x4a0   : > { %v3472_v0 = vmul.f32 %v4638_v62, %v3471_v28 }
 0x4a1   : > { %3520 = vst.msk [vmem:[%s6218_s22 + $0x94] sm:$0xf] %vm2914_vm12, %v3512_v31 }
 0x4a2   : > { %v3473_v55 = vadd.f32 %v4638_v62, %v3472_v0 }
 0x4a3   : > { %v4640_v27 = vpop.eup %4639 }
 0x4a4   : > { %v3477_v17 = vsel %vm3476_vm4, %v4638_v62, %v3473_v55  ;;  %v3485_v16 = vmul.f32 %v4640_v27, %v3378_v39  ;;  %vm3490_vm6 = vweird.f32 %v4640_v27 }
 0x4a5   : > { %v3482_v22 = vsel %vm3479_vm5, %v3481_v35, %v3477_v17  ;;  %vm3491_vm1 = vmor %vm3489_vm7, %vm3490_vm6 }
 0x4a6   : > { %v3505_v48 = vsel %vm2241_vm9, %v3482_v22, %v7045_v43  ;;  %v3486_v37 = vsub.f32 1.0, %v3485_v16 }
 0x4a7   : > { %v3513_v32 = vpack.c.bf16 %v3505_v48, %v3505_v48 }
 0x4a8   : > { %v3487_v3 = vmul.f32 %v4640_v27, %v3486_v37 }
 0x4a9   : > { %3521 = vst.msk [vmem:[%s6218_s22 + $0x98] sm:$0xf] %vm2914_vm12, %v3513_v32 }
 0x4aa   : > { %v3488_v46 = vadd.f32 %v4640_v27, %v3487_v3 }
 0x4ac   : > { %v3492_v47 = vsel %vm3491_vm1, %v4640_v27, %v3488_v46 }
 0x4ad   : > { %v3497_v18 = vsel %vm3494_vm8, %v3496_v9, %v3492_v47 }
 0x4ae   : > { %v3506_v43 = vsel %vm2241_vm9, %v3497_v18, %v7054_v59 }
 0x4af   : > { %v3514_v53 = vpack.c.bf16 %v3506_v43, %v3506_v43 }
 0x4b1   : > { %3522 = vst.msk [vmem:[%s6218_s22 + $0x9c] sm:$0xf] %vm2914_vm12, %v3514_v53 }
 0x518   : > { %v3583_v63 = vpop.f32.mrf.mxu1 }
 0x519   : > { %v3584_v34 = vadd.f32 %v4191_v57, %v3583_v63 }
 0x51b   : > { %v4083_v12 = vmul.f32 -1.442695, %v3584_v34 }
 0x51d   : > { %4641 = vpow2.f32 %v4083_v12 }
 0x520   : > { %v3585_v41 = vpop.f32.mrf.mxu1 }
 0x521   : > { %v3586_v8 = vadd.f32 %v4191_v57, %v3585_v41 }
 0x523   : > { %v4642_v23 = vpop.eup %4641  ;;  %v4084_v24 = vmul.f32 -1.442695, %v3586_v8 }
 0x524   : > { %v3594_v14 = vadd.f32 1.0, %v4642_v23 }
 0x525   : > { %4643 = vpow2.f32 %v4084_v24 }
 0x526   : > { %4645 = vrcp.f32 %v3594_v14  ;;  %v3607_v7 = vand.u32 2147483648, %v3594_v14  ;;  %vm3601_vm13 = vweird.f32 %v3594_v14  ;;  %v3605_v60 = vand.u32 2147483647, %v3594_v14 }
 0x528   : > { %v3608_v10 = vor.u32 1.1754944e-38, %v3607_v7  ;;  %vm3606_vm0 = vcmp.eq.f32.partialorder %v3605_v60, 8.507059e+37 }
 0x52b   : > { %v4644_v30 = vpop.eup %4643 }
 0x52c   : > { %v4646_v59 = vpop.eup %4645  ;;  %v3595_v25 = vadd.f32 1.0, %v4644_v30 }
 0x52d   : > { %v3597_v51 = vmul.f32 %v4646_v59, %v3594_v14  ;;  %vm3602_vm11 = vweird.f32 %v4646_v59 }
 0x52e   : > { %4647 = vrcp.f32 %v3595_v25  ;;  %vm3603_vm14 = vmor %vm3601_vm13, %vm3602_vm11  ;;  %v3622_v1 = vand.u32 2147483648, %v3595_v25  ;;  %v3620_v44 = vand.u32 2147483647, %v3595_v25  ;;  %vm3616_vm2 = vweird.f32 %v3595_v25 }
 0x52f   : > { %v3598_v5 = vsub.f32 1.0, %v3597_v51 }
 0x530   : > { %v3623_v58 = vor.u32 1.1754944e-38, %v3622_v1  ;;  %vm3621_vm4 = vcmp.eq.f32.partialorder %v3620_v44, 8.507059e+37 }
 0x531   : > { %v3599_v42 = vmul.f32 %v4646_v59, %v3598_v5 }
 0x533   : > { %v3600_v38 = vadd.f32 %v4646_v59, %v3599_v42 }
 0x534   : > { %v4648_v4 = vpop.eup %4647 }
 0x535   : > { %v3612_v11 = vmul.f32 %v4648_v4, %v3595_v25  ;;  %v3604_v36 = vsel %vm3603_vm14, %v4646_v59, %v3600_v38  ;;  %vm3617_vm15 = vweird.f32 %v4648_v4 }
 0x536   : > { %v3609_v56 = vsel %vm3606_vm0, %v3608_v10, %v3604_v36  ;;  %vm3618_vm3 = vmor %vm3616_vm2, %vm3617_vm15 }
 0x537   : > { %v3613_v21 = vsub.f32 1.0, %v3612_v11  ;;  %v3626_v49 = vmul.f32 %v3609_v56, %v3584_v34 }
 0x539   : > { %v3614_v19 = vmul.f32 %v4648_v4, %v3613_v21 }
 0x53b   : > { %v3615_v52 = vadd.f32 %v4648_v4, %v3614_v19 }
 0x53d   : > { %v3619_v26 = vsel %vm3618_vm3, %v4648_v4, %v3615_v52 }
 0x53e   : > { %v3624_v15 = vsel %vm3621_vm4, %v3623_v58, %v3619_v26 }
 0x53f   : > { %v3627_v33 = vmul.f32 %v3624_v15, %v3586_v8 }
 0x541   : > { %v3628_v62 = vpack.c.bf16 %v3627_v33, %v3626_v49 }
 0x543   : > { %4093 = vmatmul.msk.bf16.vlgmr.msrb.gmra.mxu2 %vm1288_vm10, %v3628_v62 }
 0x5c6   : > { %v3663_v39 = vpop.f32.mrf.mxu2 }
 0x5c7   : > { %v3664_v45 = vadd.f32 %v4192_v13, %v3663_v39 }
 0x5c9   : > { %v4094_v29 = vmul.f32 -1.442695, %v3664_v45 }
 0x5cb   : > { %4649 = vpow2.f32 %v4094_v29 }
 0x5ce   : > { %v3665_v20 = vpop.f32.mrf.mxu2 }
 0x5cf   : > { %v3666_v40 = vadd.f32 %v4192_v13, %v3665_v20 }
 0x5d1   : > { %v4650_v28 = vpop.eup %4649  ;;  %v4095_v31 = vmul.f32 -1.442695, %v3666_v40 }
 0x5d2   : > { %v3674_v54 = vadd.f32 1.0, %v4650_v28 }
 0x5d3   : > { %4651 = vpow2.f32 %v4095_v31 }
 0x5d4   : > { %4653 = vrcp.f32 %v3674_v54  ;;  %v3687_v17 = vand.u32 2147483648, %v3674_v54  ;;  %v3685_v22 = vand.u32 2147483647, %v3674_v54  ;;  %vm3681_vm5 = vweird.f32 %v3674_v54 }
 0x5d6   : > { %v3688_v32 = vor.u32 1.1754944e-38, %v3687_v17  ;;  %vm3686_vm7 = vcmp.eq.f32.partialorder %v3685_v22, 8.507059e+37 }
 0x5d9   : > { %v4652_v0 = vpop.eup %4651 }
 0x5da   : > { %v4654_v6 = vpop.eup %4653  ;;  %v3675_v55 = vadd.f32 1.0, %v4652_v0 }
 0x5db   : > { %v3677_v27 = vmul.f32 %v4654_v6, %v3674_v54  ;;  %vm3682_vm10 = vweird.f32 %v4654_v6 }
 0x5dc   : > { %4655 = vrcp.f32 %v3675_v55  ;;  %vm3683_vm6 = vmor %vm3681_vm5, %vm3682_vm10  ;;  %v3702_v18 = vand.u32 2147483648, %v3675_v55  ;;  %v3700_v53 = vand.u32 2147483647, %v3675_v55  ;;  %vm3696_vm8 = vweird.f32 %v3675_v55 }
 0x5dd   : > { %v3678_v35 = vsub.f32 1.0, %v3677_v27 }
 0x5de   : > { %v3703_v63 = vor.u32 1.1754944e-38, %v3702_v18  ;;  %vm3701_vm13 = vcmp.eq.f32.partialorder %v3700_v53, 8.507059e+37 }
 0x5df   : > { %v3679_v16 = vmul.f32 %v4654_v6, %v3678_v35 }
 0x5e1   : > { %v3680_v48 = vadd.f32 %v4654_v6, %v3679_v16 }
 0x5e2   : > { %v4656_v37 = vpop.eup %4655 }
 0x5e3   : > { %v3684_v50 = vsel %vm3683_vm6, %v4654_v6, %v3680_v48  ;;  %v3692_v3 = vmul.f32 %v4656_v37, %v3675_v55  ;;  %vm3697_vm1 = vweird.f32 %v4656_v37 }
 0x5e4   : > { %v3689_v61 = vsel %vm3686_vm7, %v3688_v32, %v3684_v50  ;;  %vm3698_vm11 = vmor %vm3696_vm8, %vm3697_vm1 }
 0x5e5   : > { %v3706_v46 = vsel %vm2241_vm9, %v3689_v61, %v3664_v45  ;;  %v3693_v9 = vsub.f32 1.0, %v3692_v3 }
 0x5e6   : > { %v3708_v47 = vpack.c.bf16 %v3706_v46, %v3706_v46 }
 0x5e7   : > { %v3694_v43 = vmul.f32 %v4656_v37, %v3693_v9 }
 0x5e8   : > { %3710 = vst.msk [vmem:[%s6218_s22 + $0xa0] sm:$0xf] %vm2914_vm12, %v3708_v47 }
 0x5e9   : > { %v3695_v57 = vadd.f32 %v4656_v37, %v3694_v43 }
 0x5eb   : > { %v3699_v34 = vsel %vm3698_vm11, %v4656_v37, %v3695_v57 }
 0x5ec   : > { %v3704_v12 = vsel %vm3701_vm13, %v3703_v63, %v3699_v34 }
 0x5ed   : > { %v3707_v41 = vsel %vm2241_vm9, %v3704_v12, %v3666_v40 }
 0x5ee   : > { %v3709_v8 = vpack.c.bf16 %v3707_v41, %v3707_v41 }
 0x5f0   : > { %3711 = vst.msk [vmem:[%s6218_s22 + $0xa4] sm:$0xf] %vm2914_vm12, %v3709_v8 }
 0x5f1 PF: > { %s22_s30 = sadd.s32 1, %s4830_s30  }
 0x5f2   : > { %p19_p7 = scmp.ge.s32.totalorder %s22_s30, 4  }
 0x5f4   :  { %21 = sbr.rel (!%p19_p7) target bundleno = 3 (0x3), region = 115 }
 0x5f9   :  { %3733 = vsyncpa [#allocation3], 1 }
 0x5fa   :  { %3735 = vsyncpa [#allocation3 + $0x1], 1 }
 0x5fb   :  { %3736 = vsyncpa [#allocation5], 1 }
 0x5fc   :  { %3737 = vsyncpa [#allocation8], 1 }

</bundles_post_ra>
